<compile_context>
chip_gen: v6e
topology: v6e:2x2x1
jax: 0.10.0
libtpu: 0.0.40
codegen_flags: <defaults>
</compile_context>

<pallas_src>
import functools
import math

import jax
import jax.numpy as jnp
import numpy as np
from jax.experimental import pallas as pl
from jax.experimental.pallas import tpu as pltpu

# ----------------------------- model config ---------------------------------
VOCAB_SIZE = 50
VOCAB_PAD = 128          # embedding table rows padded to 128 (lane-dense one-hot)
D_MODEL = 32
NUM_HEADS = 4
NUM_LAYERS = 2
D_FF = 64
MAX_LEN = 64
BATCH = 2
SEQ = 8                  # target sequence length
SRC_SEQ = 8              # encoder-output sequence length
LN_EPS = 1e-5
HEAD_DIM = D_MODEL // NUM_HEADS
SEG = 128                # lane-aligned segment width for fused projections
VEC_ROWS = 16
VEC_W = 128


# ------------------------------ Pallas kernel --------------------------------
def decoder_stack_kernel(ids_ref, emb_ref, pe_ref, enc_ref, tmask_ref, smask_ref,
                         w_sa_qkv_ref, w_sa_out_ref,
                         w_ca_q_ref, w_ca_kv_ref, w_ca_out_ref,
                         ffw1_ref, ffw2_ref, vec_ref,
                         out_ref, *, num_heads, num_layers):
    """Whole decoder stack for the whole batch in one invocation.

    ids_ref    : (B*S, 1)  int32 token ids
    emb_ref    : (128, D)  zero-padded embedding table
    pe_ref     : (B*S, D)  positional encoding, pre-tiled over batch
    enc_ref    : (B*Se, D) encoder output (flattened)
    tmask_ref  : (B, S, S)   additive target mask (0 / -1e9)
    smask_ref  : (B, S, Se)  additive source mask (0 / -1e9)
    w_sa_qkv   : (L, D, 3*128)  Q|K|V each in its own 128-lane segment
                                (Q pre-scaled by 1/sqrt(hd))
    w_sa_out   : (L, D, D)
    w_ca_q     : (L, D, D)      (pre-scaled by 1/sqrt(hd))
    w_ca_kv    : (D, L*2*128)   all layers' cross K|V in 128-lane segments
    w_ca_out   : (L, D, D)
    ffw1       : (L, D, Dff)    ffw2: (L, Dff, D)
    vec        : (L, 16, 128)   packed biases + layernorm params
    out_ref    : (B*S, D)
    """
    B, S, _ = tmask_ref.shape
    Se = smask_ref.shape[2]
    D = emb_ref.shape[1]
    vocab_pad = emb_ref.shape[0]
    Dff = ffw1_ref.shape[2]
    hd = D // num_heads

    # ---- fused embedding lookup (one-hot matmul on MXU) + positional enc ----
    ids = ids_ref[...]                                              # (B*S, 1)
    vocab_iota = jax.lax.broadcasted_iota(jnp.int32, (B * S, vocab_pad), 1)
    onehot = (vocab_iota == ids).astype(jnp.float32)                # (B*S, 128)
    x = jnp.dot(onehot, emb_ref[...],
                preferred_element_type=jnp.float32) + pe_ref[...]   # (B*S, D)

    enc2d = enc_ref[...]                                            # (B*Se, D)
    tmask = tmask_ref[...]
    smask = smask_ref[...]

    # Per-head 0/1 lane masks over the feature dim (hoisted, compile-time).
    lane_iota = jax.lax.broadcasted_iota(jnp.int32, (1, D), 1)
    head_masks = [((lane_iota >= h * hd) & (lane_iota < (h + 1) * hd))
                  .astype(jnp.float32) for h in range(num_heads)]

    def layer_norm(y, g, b):
        mu = jnp.mean(y, axis=-1, keepdims=True)
        var = jnp.mean((y - mu) ** 2, axis=-1, keepdims=True)
        return (y - mu) * jax.lax.rsqrt(var + LN_EPS) * g + b

    def attend(q2d, k2d, v2d, addmask, w_out, b_out, Sk):
        # Multi-head attention without lane slices / lane concat:
        # per head, mask K and V down to that head's lanes and sum the
        # full-width head outputs (columns partition exactly by head).
        q3 = q2d.reshape(B, S, D)
        k3 = k2d.reshape(B, Sk, D)
        v3 = v2d.reshape(B, Sk, D)
        acc = jnp.zeros((B, S, D), jnp.float32)
        for hm in head_masks:                      # static unroll over heads
            kh = k3 * hm
            s = jnp.einsum('bqd,bkd->bqk', q3, kh,
                           preferred_element_type=jnp.float32) + addmask
            s = s - jnp.max(s, axis=-1, keepdims=True)
            p = jnp.exp(s)
            p = p * pl.reciprocal(jnp.sum(p, axis=-1, keepdims=True), approx=True)
            vh = v3 * hm
            acc = acc + jnp.einsum('bqk,bkd->bqd', p, vh,
                                   preferred_element_type=jnp.float32)
        out2d = acc.reshape(B * S, D)
        return jnp.dot(out2d, w_out, preferred_element_type=jnp.float32) + b_out

    # Layer-invariant cross-attention K/V projection, hoisted out of the loop.
    enc_kv = jnp.dot(enc2d, w_ca_kv_ref[...],
                     preferred_element_type=jnp.float32)            # (B*Se, L*2*128)

    for l in range(num_layers):                     # static unroll over layers
        vl = vec_ref[l]                             # (16, 128) unmasked load
        b_sa_q = vl[0:1, 0:D]
        b_sa_k = vl[1:2, 0:D]
        b_sa_v = vl[2:3, 0:D]
        b_sa_o = vl[3:4, 0:D]
        b_ca_q = vl[4:5, 0:D]
        b_ca_k = vl[5:6, 0:D]
        b_ca_v = vl[6:7, 0:D]
        b_ca_o = vl[7:8, 0:D]
        ffb1 = vl[8:9, 0:Dff]
        ffb2 = vl[9:10, 0:D]
        g1, be1 = vl[10:11, 0:D], vl[11:12, 0:D]
        g2, be2 = vl[12:13, 0:D], vl[13:14, 0:D]
        g3, be3 = vl[14:15, 0:D], vl[15:16, 0:D]

        # ---- self attention (fused QKV, 128-lane segments) + res + LN1 ----
        qkv = jnp.dot(x, w_sa_qkv_ref[l], preferred_element_type=jnp.float32)
        q2d = qkv[:, 0:D] + b_sa_q                  # already scaled by 1/sqrt(hd)
        k2d = qkv[:, SEG:SEG + D] + b_sa_k
        v2d = qkv[:, 2 * SEG:2 * SEG + D] + b_sa_v
        sa = attend(q2d, k2d, v2d, tmask, w_sa_out_ref[l], b_sa_o, S)
        x = layer_norm(x + sa, g1, be1)

        # ---- cross attention (hoisted KV) + residual + LN2 ----
        q2d = jnp.dot(x, w_ca_q_ref[l], preferred_element_type=jnp.float32) + b_ca_q
        koff = (2 * l) * SEG
        voff = (2 * l + 1) * SEG
        ck2d = enc_kv[:, koff:koff + D] + b_ca_k
        cv2d = enc_kv[:, voff:voff + D] + b_ca_v
        ca = attend(q2d, ck2d, cv2d, smask, w_ca_out_ref[l], b_ca_o, Se)
        x = layer_norm(x + ca, g2, be2)

        # ---- feed forward + residual + LN3 ----
        h1 = jnp.dot(x, ffw1_ref[l], preferred_element_type=jnp.float32) + ffb1
        h1 = jnp.maximum(h1, 0.0)
        ff = jnp.dot(h1, ffw2_ref[l], preferred_element_type=jnp.float32) + ffb2
        x = layer_norm(x + ff, g3, be3)

    out_ref[...] = x.astype(out_ref.dtype)


def decoder_stack_pallas(ids2d, enc2d, tmask_add, smask_add, p):
    N = ids2d.shape[0]
    inputs = (ids2d, p["emb"], p["pe"], enc2d, tmask_add, smask_add,
              p["w_sa_qkv"], p["w_sa_out"],
              p["w_ca_q"], p["w_ca_kv"], p["w_ca_out"],
              p["ffw1"], p["ffw2"], p["vec"])

    def full_spec(shape):
        nd = len(shape)
        return pl.BlockSpec(shape, lambda i, nd=nd: (0,) * nd)

    kernel = functools.partial(decoder_stack_kernel,
                               num_heads=NUM_HEADS, num_layers=NUM_LAYERS)
    return pl.pallas_call(
        kernel,
        out_shape=jax.ShapeDtypeStruct((N, D_MODEL), jnp.float32),
        grid_spec=pltpu.PrefetchScalarGridSpec(
            num_scalar_prefetch=0,
            grid=(1,),                                # whole stack, one step:
            in_specs=[full_spec(a.shape) for a in inputs],  # working set << VMEM
            out_specs=full_spec((N, D_MODEL)),
        ),
        compiler_params=pltpu.CompilerParams(
            dimension_semantics=("arbitrary",)),
    )(*inputs)


# ---------------------------- plain-JAX glue ---------------------------------
def positional_encoding(max_len, d_model):
    pos = np.arange(max_len, dtype=np.float32)[:, None]
    div = np.exp(np.arange(0, d_model, 2, dtype=np.float32)
                 * (-np.log(10000.0) / d_model))
    pe = np.zeros((max_len, d_model), dtype=np.float32)
    pe[:, 0::2] = np.sin(pos * div)
    pe[:, 1::2] = np.cos(pos * div)
    return pe


def init_layer_params(key):
    ks = jax.random.split(key, 6)
    scale = 0.05
    return {
        "wsa": jax.random.normal(ks[0], (4, D_MODEL, D_MODEL), jnp.float32) * scale,
        "bsa": jax.random.normal(ks[1], (4, D_MODEL), jnp.float32) * scale,
        "wca": jax.random.normal(ks[2], (4, D_MODEL, D_MODEL), jnp.float32) * scale,
        "bca": jax.random.normal(ks[3], (4, D_MODEL), jnp.float32) * scale,
        "ffw1": jax.random.normal(ks[4], (D_MODEL, D_FF), jnp.float32) * scale,
        "ffb1": jnp.zeros((1, D_FF), jnp.float32),
        "ffw2": jax.random.normal(ks[5], (D_FF, D_MODEL), jnp.float32) * scale,
        "ffb2": jnp.zeros((1, D_MODEL), jnp.float32),
        "lng": jnp.ones((3, D_MODEL), jnp.float32),
        "lnb": jnp.zeros((3, D_MODEL), jnp.float32),
    }


def pack_params(layer_params, emb_table):
    """Host-side packing: 128-lane-padded fused weights, hoisted cross-KV
    weight, (L,16,128) bias/LN slab, padded embedding table, tiled pos-enc.
    1/sqrt(head_dim) is folded into the Q projections."""
    L, D, Dff = NUM_LAYERS, D_MODEL, D_FF
    qs = 1.0 / math.sqrt(HEAD_DIM)

    w_sa_qkv = np.zeros((L, D, 3 * SEG), np.float32)
    w_sa_out = np.zeros((L, D, D), np.float32)
    w_ca_q = np.zeros((L, D, D), np.float32)
    w_ca_kv = np.zeros((D, L * 2 * SEG), np.float32)
    w_ca_out = np.zeros((L, D, D), np.float32)
    ffw1 = np.zeros((L, D, Dff), np.float32)
    ffw2 = np.zeros((L, Dff, D), np.float32)
    vec = np.zeros((L, VEC_ROWS, VEC_W), np.float32)

    for l, p in enumerate(layer_params):
        wsa, bsa = np.asarray(p["wsa"]), np.asarray(p["bsa"])
        wca, bca = np.asarray(p["wca"]), np.asarray(p["bca"])
        w_sa_qkv[l, :, 0:D] = wsa[0] * qs            # Q (scale folded)
        w_sa_qkv[l, :, SEG:SEG + D] = wsa[1]         # K
        w_sa_qkv[l, :, 2 * SEG:2 * SEG + D] = wsa[2] # V
        w_sa_out[l] = wsa[3]
        w_ca_q[l] = wca[0] * qs
        w_ca_kv[:, (2 * l) * SEG:(2 * l) * SEG + D] = wca[1]
        w_ca_kv[:, (2 * l + 1) * SEG:(2 * l + 1) * SEG + D] = wca[2]
        w_ca_out[l] = wca[3]
        ffw1[l] = np.asarray(p["ffw1"])
        ffw2[l] = np.asarray(p["ffw2"])
        vec[l, 0, 0:D] = bsa[0] * qs
        vec[l, 1, 0:D] = bsa[1]
        vec[l, 2, 0:D] = bsa[2]
        vec[l, 3, 0:D] = bsa[3]
        vec[l, 4, 0:D] = bca[0] * qs
        vec[l, 5, 0:D] = bca[1]
        vec[l, 6, 0:D] = bca[2]
        vec[l, 7, 0:D] = bca[3]
        vec[l, 8, 0:Dff] = np.asarray(p["ffb1"]).reshape(-1)
        vec[l, 9, 0:D] = np.asarray(p["ffb2"]).reshape(-1)
        lng, lnb = np.asarray(p["lng"]), np.asarray(p["lnb"])
        vec[l, 10, 0:D], vec[l, 11, 0:D] = lng[0], lnb[0]
        vec[l, 12, 0:D], vec[l, 13, 0:D] = lng[1], lnb[1]
        vec[l, 14, 0:D], vec[l, 15, 0:D] = lng[2], lnb[2]

    emb_pad = np.zeros((VOCAB_PAD, D), np.float32)
    emb_pad[:VOCAB_SIZE] = np.asarray(emb_table)

    pe = positional_encoding(MAX_LEN, D)
    pe_bs = np.tile(pe[:SEQ], (BATCH, 1))            # (B*S, D)

    packed = {
        "w_sa_qkv": w_sa_qkv, "w_sa_out": w_sa_out,
        "w_ca_q": w_ca_q, "w_ca_kv": w_ca_kv, "w_ca_out": w_ca_out,
        "ffw1": ffw1, "ffw2": ffw2, "vec": vec,
        "emb": emb_pad, "pe": pe_bs,
    }
    return {k: jnp.asarray(v) for k, v in packed.items()}


@jax.jit
def decoder_forward(token_ids, enc_output, src_mask, tgt_mask, packed):
    B, S = token_ids.shape
    ids2d = token_ids.reshape(B * S, 1).astype(jnp.int32)
    enc2d = enc_output.reshape(-1, D_MODEL)
    # Additive masks: 0 where visible, -1e9 where masked (prepared in wrapper).
    tadd = (tgt_mask - 1.0) * 1e9
    sadd = (src_mask - 1.0) * 1e9
    out2d = decoder_stack_pallas(ids2d, enc2d, tadd, sadd, packed)
    return out2d.reshape(B, S, D_MODEL)


# ------------------------- pure-JAX reference --------------------------------
def ref_mha(q_in, kv_in, mask, w, b, num_heads):
    q = q_in @ w[0] + b[0]
    k = kv_in @ w[1] + b[1]
    v = kv_in @ w[2] + b[2]
    B, Sq, D = q.shape
    Sk = k.shape[1]
    hd = D // num_heads
    qh = q.reshape(B, Sq, num_heads, hd).transpose(0, 2, 1, 3)
    kh = k.reshape(B, Sk, num_heads, hd).transpose(0, 2, 1, 3)
    vh = v.reshape(B, Sk, num_heads, hd).transpose(0, 2, 1, 3)
    s = (qh @ kh.transpose(0, 1, 3, 2)) / math.sqrt(hd)
    s = jnp.where(mask[:, None, :, :] == 0.0, -1000000000.0, s)
    a = jax.nn.softmax(s, axis=-1)
    o = (a @ vh).transpose(0, 2, 1, 3).reshape(B, Sq, D)
    return o @ w[3] + b[3]


def ref_layer_norm(y, g, b):
    mu = jnp.mean(y, axis=-1, keepdims=True)
    var = jnp.mean((y - mu) ** 2, axis=-1, keepdims=True)
    return (y - mu) / jnp.sqrt(var + LN_EPS) * g + b


def ref_decoder(token_ids, enc_output, src_mask, tgt_mask, emb_table, layer_params):
    x = jnp.take(emb_table, token_ids, axis=0)
    pe = positional_encoding(MAX_LEN, D_MODEL)
    x = x + pe[None, : x.shape[1], :]
    for p in layer_params:
        sa = ref_mha(x, x, tgt_mask, p["wsa"], p["bsa"], NUM_HEADS)
        x = ref_layer_norm(x + sa, p["lng"][0], p["lnb"][0])
        ca = ref_mha(x, enc_output, src_mask, p["wca"], p["bca"], NUM_HEADS)
        x = ref_layer_norm(x + ca, p["lng"][1], p["lnb"][1])
        h1 = jnp.maximum(x @ p["ffw1"] + p["ffb1"], 0.0)
        ff = h1 @ p["ffw2"] + p["ffb2"]
        x = ref_layer_norm(x + ff, p["lng"][2], p["lnb"][2])
    return x


# --------------------------------- main --------------------------------------
if __name__ == "__main__":
    key = jax.random.PRNGKey(0)
    k_emb, k_tok, k_enc, *k_layers = jax.random.split(key, 3 + NUM_LAYERS)

    emb_table = jax.random.normal(k_emb, (VOCAB_SIZE, D_MODEL), jnp.float32)
    layer_params = [init_layer_params(k) for k in k_layers]
    packed = pack_params(layer_params, emb_table)

    token_ids = jax.random.randint(k_tok, (BATCH, SEQ), 0, VOCAB_SIZE, jnp.int32)
    enc_output = jax.random.normal(k_enc, (BATCH, SRC_SEQ, D_MODEL), jnp.float32)

    # Causal target mask (0 => masked), full source mask (PyTorch-style 0/1).
    tgt_mask = jnp.broadcast_to(
        jnp.tril(jnp.ones((SEQ, SEQ), jnp.float32))[None], (BATCH, SEQ, SEQ))
    src_mask = jnp.ones((BATCH, SEQ, SRC_SEQ), jnp.float32)

    out = decoder_forward(token_ids, enc_output, src_mask, tgt_mask, packed)
    out = jax.block_until_ready(out)

    ref = jax.block_until_ready(
        ref_decoder(token_ids, enc_output, src_mask, tgt_mask,
                    emb_table, layer_params))

    np.testing.assert_allclose(np.asarray(out), np.asarray(ref),
                               rtol=2e-2, atol=2e-2)
    print("KERNEL_OK")
</pallas_src>

<mosaic_0001>
module attributes {stable_mosaic.version = 11 : i64} {
  func.func @decoder_stack_kernel(%arg0: i32, %arg1: memref<16x1xi32, #tpu.memory_space<vmem>>, %arg2: memref<128x32xf32, #tpu.memory_space<vmem>>, %arg3: memref<16x32xf32, #tpu.memory_space<vmem>>, %arg4: memref<16x32xf32, #tpu.memory_space<vmem>>, %arg5: memref<2x8x8xf32, #tpu.memory_space<vmem>>, %arg6: memref<2x8x8xf32, #tpu.memory_space<vmem>>, %arg7: memref<2x32x384xf32, #tpu.memory_space<vmem>>, %arg8: memref<2x32x32xf32, #tpu.memory_space<vmem>>, %arg9: memref<2x32x32xf32, #tpu.memory_space<vmem>>, %arg10: memref<32x512xf32, #tpu.memory_space<vmem>>, %arg11: memref<2x32x32xf32, #tpu.memory_space<vmem>>, %arg12: memref<2x32x64xf32, #tpu.memory_space<vmem>>, %arg13: memref<2x64x32xf32, #tpu.memory_space<vmem>>, %arg14: memref<2x16x128xf32, #tpu.memory_space<vmem>>, %arg15: memref<16x32xf32, #tpu.memory_space<vmem>>) attributes {dimension_semantics = [#tpu.dimension_semantics<arbitrary>], iteration_bounds = array<i64: 1>, scalar_prefetch = 0 : i64, scratch_operands = 0 : i64, tpu.core_type = #tpu.core_type<tc>, window_params = [{pipeline_mode = #tpu.pipeline_mode<synchronous>, transform_indices = @transform_0, window_bounds = array<i64: 16, 1>}, {pipeline_mode = #tpu.pipeline_mode<synchronous>, transform_indices = @transform_1, window_bounds = array<i64: 128, 32>}, {pipeline_mode = #tpu.pipeline_mode<synchronous>, transform_indices = @transform_2, window_bounds = array<i64: 16, 32>}, {pipeline_mode = #tpu.pipeline_mode<synchronous>, transform_indices = @transform_3, window_bounds = array<i64: 16, 32>}, {pipeline_mode = #tpu.pipeline_mode<synchronous>, transform_indices = @transform_4, window_bounds = array<i64: 2, 8, 8>}, {pipeline_mode = #tpu.pipeline_mode<synchronous>, transform_indices = @transform_5, window_bounds = array<i64: 2, 8, 8>}, {pipeline_mode = #tpu.pipeline_mode<synchronous>, transform_indices = @transform_6, window_bounds = array<i64: 2, 32, 384>}, {pipeline_mode = #tpu.pipeline_mode<synchronous>, transform_indices = @transform_7, window_bounds = array<i64: 2, 32, 32>}, {pipeline_mode = #tpu.pipeline_mode<synchronous>, transform_indices = @transform_8, window_bounds = array<i64: 2, 32, 32>}, {pipeline_mode = #tpu.pipeline_mode<synchronous>, transform_indices = @transform_9, window_bounds = array<i64: 32, 512>}, {pipeline_mode = #tpu.pipeline_mode<synchronous>, transform_indices = @transform_10, window_bounds = array<i64: 2, 32, 32>}, {pipeline_mode = #tpu.pipeline_mode<synchronous>, transform_indices = @transform_11, window_bounds = array<i64: 2, 32, 64>}, {pipeline_mode = #tpu.pipeline_mode<synchronous>, transform_indices = @transform_12, window_bounds = array<i64: 2, 64, 32>}, {pipeline_mode = #tpu.pipeline_mode<synchronous>, transform_indices = @transform_13, window_bounds = array<i64: 2, 16, 128>}, {pipeline_mode = #tpu.pipeline_mode<synchronous>, transform_indices = @transform_14, window_bounds = array<i64: 16, 32>}]} {
    %c0 = arith.constant 0 : index
    %c0_0 = arith.constant 0 : index
    %0 = vector.load %arg1[%c0, %c0_0] : memref<16x1xi32, #tpu.memory_space<vmem>>, vector<16x1xi32>
    %1 = tpu.iota {dimensions = array<i32: 1>} : vector<16x128xi32>
    %2 = vector.broadcast %0 : vector<16x1xi32> to vector<16x128xi32>
    %3 = arith.cmpi eq, %1, %2 : vector<16x128xi32>
    %4 = arith.extui %3 : vector<16x128xi1> to vector<16x128xi32>
    %5 = arith.sitofp %4 : vector<16x128xi32> to vector<16x128xf32>
    %c0_1 = arith.constant 0 : index
    %c0_2 = arith.constant 0 : index
    %6 = vector.load %arg2[%c0_1, %c0_2] : memref<128x32xf32, #tpu.memory_space<vmem>>, vector<128x32xf32>
    %cst = arith.constant dense<0.000000e+00> : vector<16x32xf32>
    %7 = tpu.matmul %5, %6, %cst {dimension_numbers = #tpu.dot_dimension_numbers<[1], [0], [0], [1], [0, 0, 1, 1], [], []>} : vector<16x128xf32>, vector<128x32xf32>, vector<16x32xf32> -> vector<16x32xf32>
    %c0_3 = arith.constant 0 : index
    %c0_4 = arith.constant 0 : index
    %8 = vector.load %arg3[%c0_3, %c0_4] : memref<16x32xf32, #tpu.memory_space<vmem>>, vector<16x32xf32>
    %9 = arith.addf %7, %8 : vector<16x32xf32>
    %c0_5 = arith.constant 0 : index
    %c0_6 = arith.constant 0 : index
    %10 = vector.load %arg4[%c0_5, %c0_6] : memref<16x32xf32, #tpu.memory_space<vmem>>, vector<16x32xf32>
    %c0_7 = arith.constant 0 : index
    %c0_8 = arith.constant 0 : index
    %c0_9 = arith.constant 0 : index
    %11 = vector.load %arg5[%c0_7, %c0_8, %c0_9] : memref<2x8x8xf32, #tpu.memory_space<vmem>>, vector<2x8x8xf32>
    %c0_10 = arith.constant 0 : index
    %c0_11 = arith.constant 0 : index
    %c0_12 = arith.constant 0 : index
    %12 = vector.load %arg6[%c0_10, %c0_11, %c0_12] : memref<2x8x8xf32, #tpu.memory_space<vmem>>, vector<2x8x8xf32>
    %13 = tpu.iota {dimensions = array<i32: 1>} : vector<1x32xi32>
    %c0_i32 = arith.constant 0 : i32
    %14 = vector.broadcast %c0_i32 : i32 to vector<1x32xi32>
    %15 = arith.cmpi sge, %13, %14 : vector<1x32xi32>
    %c8_i32 = arith.constant 8 : i32
    %16 = vector.broadcast %c8_i32 : i32 to vector<1x32xi32>
    %17 = arith.cmpi slt, %13, %16 : vector<1x32xi32>
    %18 = arith.andi %15, %17 : vector<1x32xi1>
    %19 = arith.extui %18 : vector<1x32xi1> to vector<1x32xi32>
    %20 = arith.sitofp %19 : vector<1x32xi32> to vector<1x32xf32>
    %c8_i32_13 = arith.constant 8 : i32
    %21 = vector.broadcast %c8_i32_13 : i32 to vector<1x32xi32>
    %22 = arith.cmpi sge, %13, %21 : vector<1x32xi32>
    %c16_i32 = arith.constant 16 : i32
    %23 = vector.broadcast %c16_i32 : i32 to vector<1x32xi32>
    %24 = arith.cmpi slt, %13, %23 : vector<1x32xi32>
    %25 = arith.andi %22, %24 : vector<1x32xi1>
    %26 = arith.extui %25 : vector<1x32xi1> to vector<1x32xi32>
    %27 = arith.sitofp %26 : vector<1x32xi32> to vector<1x32xf32>
    %c16_i32_14 = arith.constant 16 : i32
    %28 = vector.broadcast %c16_i32_14 : i32 to vector<1x32xi32>
    %29 = arith.cmpi sge, %13, %28 : vector<1x32xi32>
    %c24_i32 = arith.constant 24 : i32
    %30 = vector.broadcast %c24_i32 : i32 to vector<1x32xi32>
    %31 = arith.cmpi slt, %13, %30 : vector<1x32xi32>
    %32 = arith.andi %29, %31 : vector<1x32xi1>
    %33 = arith.extui %32 : vector<1x32xi1> to vector<1x32xi32>
    %34 = arith.sitofp %33 : vector<1x32xi32> to vector<1x32xf32>
    %c24_i32_15 = arith.constant 24 : i32
    %35 = vector.broadcast %c24_i32_15 : i32 to vector<1x32xi32>
    %36 = arith.cmpi sge, %13, %35 : vector<1x32xi32>
    %c32_i32 = arith.constant 32 : i32
    %37 = vector.broadcast %c32_i32 : i32 to vector<1x32xi32>
    %38 = arith.cmpi slt, %13, %37 : vector<1x32xi32>
    %39 = arith.andi %36, %38 : vector<1x32xi1>
    %40 = arith.extui %39 : vector<1x32xi1> to vector<1x32xi32>
    %41 = arith.sitofp %40 : vector<1x32xi32> to vector<1x32xf32>
    %c0_16 = arith.constant 0 : index
    %c0_17 = arith.constant 0 : index
    %42 = vector.load %arg10[%c0_16, %c0_17] : memref<32x512xf32, #tpu.memory_space<vmem>>, vector<32x512xf32>
    %cst_18 = arith.constant dense<0.000000e+00> : vector<16x512xf32>
    %43 = tpu.matmul %10, %42, %cst_18 {dimension_numbers = #tpu.dot_dimension_numbers<[1], [0], [0], [1], [0, 0, 1, 1], [], []>} : vector<16x32xf32>, vector<32x512xf32>, vector<16x512xf32> -> vector<16x512xf32>
    %c0_19 = arith.constant 0 : index
    %c0_20 = arith.constant 0 : index
    %c0_21 = arith.constant 0 : index
    %44 = vector.load %arg14[%c0_19, %c0_20, %c0_21] : memref<2x16x128xf32, #tpu.memory_space<vmem>>, vector<1x16x128xf32>
    %45 = vector.shape_cast %44 : vector<1x16x128xf32> to vector<16x128xf32>
    %46 = vector.extract_strided_slice %45 {offsets = [0, 0], sizes = [1, 32], strides = [1, 1]} : vector<16x128xf32> to vector<1x32xf32>
    %47 = vector.extract_strided_slice %45 {offsets = [1, 0], sizes = [1, 32], strides = [1, 1]} : vector<16x128xf32> to vector<1x32xf32>
    %48 = vector.extract_strided_slice %45 {offsets = [2, 0], sizes = [1, 32], strides = [1, 1]} : vector<16x128xf32> to vector<1x32xf32>
    %49 = vector.extract_strided_slice %45 {offsets = [3, 0], sizes = [1, 32], strides = [1, 1]} : vector<16x128xf32> to vector<1x32xf32>
    %50 = vector.extract_strided_slice %45 {offsets = [4, 0], sizes = [1, 32], strides = [1, 1]} : vector<16x128xf32> to vector<1x32xf32>
    %51 = vector.extract_strided_slice %45 {offsets = [5, 0], sizes = [1, 32], strides = [1, 1]} : vector<16x128xf32> to vector<1x32xf32>
    %52 = vector.extract_strided_slice %45 {offsets = [6, 0], sizes = [1, 32], strides = [1, 1]} : vector<16x128xf32> to vector<1x32xf32>
    %53 = vector.extract_strided_slice %45 {offsets = [7, 0], sizes = [1, 32], strides = [1, 1]} : vector<16x128xf32> to vector<1x32xf32>
    %54 = vector.extract_strided_slice %45 {offsets = [8, 0], sizes = [1, 64], strides = [1, 1]} : vector<16x128xf32> to vector<1x64xf32>
    %55 = vector.extract_strided_slice %45 {offsets = [9, 0], sizes = [1, 32], strides = [1, 1]} : vector<16x128xf32> to vector<1x32xf32>
    %56 = vector.extract_strided_slice %45 {offsets = [10, 0], sizes = [1, 32], strides = [1, 1]} : vector<16x128xf32> to vector<1x32xf32>
    %57 = vector.extract_strided_slice %45 {offsets = [11, 0], sizes = [1, 32], strides = [1, 1]} : vector<16x128xf32> to vector<1x32xf32>
    %58 = vector.extract_strided_slice %45 {offsets = [12, 0], sizes = [1, 32], strides = [1, 1]} : vector<16x128xf32> to vector<1x32xf32>
    %59 = vector.extract_strided_slice %45 {offsets = [13, 0], sizes = [1, 32], strides = [1, 1]} : vector<16x128xf32> to vector<1x32xf32>
    %60 = vector.extract_strided_slice %45 {offsets = [14, 0], sizes = [1, 32], strides = [1, 1]} : vector<16x128xf32> to vector<1x32xf32>
    %61 = vector.extract_strided_slice %45 {offsets = [15, 0], sizes = [1, 32], strides = [1, 1]} : vector<16x128xf32> to vector<1x32xf32>
    %c0_22 = arith.constant 0 : index
    %c0_23 = arith.constant 0 : index
    %c0_24 = arith.constant 0 : index
    %62 = vector.load %arg7[%c0_22, %c0_23, %c0_24] : memref<2x32x384xf32, #tpu.memory_space<vmem>>, vector<1x32x384xf32>
    %63 = vector.shape_cast %62 : vector<1x32x384xf32> to vector<32x384xf32>
    %cst_25 = arith.constant dense<0.000000e+00> : vector<16x384xf32>
    %64 = tpu.matmul %9, %63, %cst_25 {dimension_numbers = #tpu.dot_dimension_numbers<[1], [0], [0], [1], [0, 0, 1, 1], [], []>} : vector<16x32xf32>, vector<32x384xf32>, vector<16x384xf32> -> vector<16x384xf32>
    %65 = vector.extract_strided_slice %64 {offsets = [0, 0], sizes = [16, 32], strides = [1, 1]} : vector<16x384xf32> to vector<16x32xf32>
    %66 = vector.broadcast %46 : vector<1x32xf32> to vector<16x32xf32>
    %67 = arith.addf %65, %66 : vector<16x32xf32>
    %68 = vector.extract_strided_slice %64 {offsets = [0, 128], sizes = [16, 32], strides = [1, 1]} : vector<16x384xf32> to vector<16x32xf32>
    %69 = vector.broadcast %47 : vector<1x32xf32> to vector<16x32xf32>
    %70 = arith.addf %68, %69 : vector<16x32xf32>
    %71 = vector.extract_strided_slice %64 {offsets = [0, 256], sizes = [16, 32], strides = [1, 1]} : vector<16x384xf32> to vector<16x32xf32>
    %72 = vector.broadcast %48 : vector<1x32xf32> to vector<16x32xf32>
    %73 = arith.addf %71, %72 : vector<16x32xf32>
    %c0_26 = arith.constant 0 : index
    %c0_27 = arith.constant 0 : index
    %c0_28 = arith.constant 0 : index
    %74 = vector.load %arg8[%c0_26, %c0_27, %c0_28] : memref<2x32x32xf32, #tpu.memory_space<vmem>>, vector<1x32x32xf32>
    %75 = vector.shape_cast %74 : vector<1x32x32xf32> to vector<32x32xf32>
    %76 = vector.shape_cast %67 : vector<16x32xf32> to vector<2x8x32xf32>
    %77 = vector.shape_cast %70 : vector<16x32xf32> to vector<2x8x32xf32>
    %78 = vector.shape_cast %73 : vector<16x32xf32> to vector<2x8x32xf32>
    %cst_29 = arith.constant 0.000000e+00 : f32
    %79 = vector.broadcast %cst_29 : f32 to vector<2x8x32xf32>
    %80 = vector.shape_cast %20 : vector<1x32xf32> to vector<1x1x32xf32>
    %81 = vector.broadcast %80 : vector<1x1x32xf32> to vector<2x8x32xf32>
    %82 = arith.mulf %77, %81 : vector<2x8x32xf32>
    "tpu.trace_start"() <{level = 10 : i32, message = "bqd,bkd->bqk"}> : () -> ()
    %cst_30 = arith.constant dense<0.000000e+00> : vector<2x8x8xf32>
    %83 = tpu.matmul %76, %82, %cst_30 {dimension_numbers = #tpu.dot_dimension_numbers<[2], [2], [1], [1], [0, 0, 0, 1, 1, 1], [0], [0]>} : vector<2x8x32xf32>, vector<2x8x32xf32>, vector<2x8x8xf32> -> vector<2x8x8xf32>
    "tpu.trace_stop"() : () -> ()
    %84 = arith.addf %83, %11 : vector<2x8x8xf32>
    %cst_31 = arith.constant dense<0xFF800000> : vector<2x8xf32>
    %85 = vector.multi_reduction <maximumf>, %84, %cst_31 [2] : vector<2x8x8xf32> to vector<2x8xf32>
    %86 = vector.shape_cast %85 : vector<2x8xf32> to vector<2x8x1xf32>
    %87 = vector.broadcast %86 : vector<2x8x1xf32> to vector<2x8x8xf32>
    %88 = arith.subf %84, %87 : vector<2x8x8xf32>
    %89 = math.exp %88 : vector<2x8x8xf32>
    %cst_32 = arith.constant dense<0.000000e+00> : vector<2x8xf32>
    %90 = vector.multi_reduction <add>, %89, %cst_32 [2] : vector<2x8x8xf32> to vector<2x8xf32>
    %91 = vector.shape_cast %90 : vector<2x8xf32> to vector<2x8x1xf32>
    %92 = tpu.reciprocal %91 {approx = true} : vector<2x8x1xf32> -> vector<2x8x1xf32>
    %93 = vector.broadcast %92 : vector<2x8x1xf32> to vector<2x8x8xf32>
    %94 = arith.mulf %89, %93 : vector<2x8x8xf32>
    %95 = vector.shape_cast %20 : vector<1x32xf32> to vector<1x1x32xf32>
    %96 = vector.broadcast %95 : vector<1x1x32xf32> to vector<2x8x32xf32>
    %97 = arith.mulf %78, %96 : vector<2x8x32xf32>
    "tpu.trace_start"() <{level = 10 : i32, message = "bqk,bkd->bqd"}> : () -> ()
    %cst_33 = arith.constant dense<0.000000e+00> : vector<2x8x32xf32>
    %98 = tpu.matmul %94, %97, %cst_33 {dimension_numbers = #tpu.dot_dimension_numbers<[2], [1], [1], [2], [0, 0, 0, 1, 1, 2], [0], [0]>} : vector<2x8x8xf32>, vector<2x8x32xf32>, vector<2x8x32xf32> -> vector<2x8x32xf32>
    "tpu.trace_stop"() : () -> ()
    %99 = arith.addf %79, %98 : vector<2x8x32xf32>
    %100 = vector.shape_cast %27 : vector<1x32xf32> to vector<1x1x32xf32>
    %101 = vector.broadcast %100 : vector<1x1x32xf32> to vector<2x8x32xf32>
    %102 = arith.mulf %77, %101 : vector<2x8x32xf32>
    "tpu.trace_start"() <{level = 10 : i32, message = "bqd,bkd->bqk"}> : () -> ()
    %cst_34 = arith.constant dense<0.000000e+00> : vector<2x8x8xf32>
    %103 = tpu.matmul %76, %102, %cst_34 {dimension_numbers = #tpu.dot_dimension_numbers<[2], [2], [1], [1], [0, 0, 0, 1, 1, 1], [0], [0]>} : vector<2x8x32xf32>, vector<2x8x32xf32>, vector<2x8x8xf32> -> vector<2x8x8xf32>
    "tpu.trace_stop"() : () -> ()
    %104 = arith.addf %103, %11 : vector<2x8x8xf32>
    %cst_35 = arith.constant dense<0xFF800000> : vector<2x8xf32>
    %105 = vector.multi_reduction <maximumf>, %104, %cst_35 [2] : vector<2x8x8xf32> to vector<2x8xf32>
    %106 = vector.shape_cast %105 : vector<2x8xf32> to vector<2x8x1xf32>
    %107 = vector.broadcast %106 : vector<2x8x1xf32> to vector<2x8x8xf32>
    %108 = arith.subf %104, %107 : vector<2x8x8xf32>
    %109 = math.exp %108 : vector<2x8x8xf32>
    %cst_36 = arith.constant dense<0.000000e+00> : vector<2x8xf32>
    %110 = vector.multi_reduction <add>, %109, %cst_36 [2] : vector<2x8x8xf32> to vector<2x8xf32>
    %111 = vector.shape_cast %110 : vector<2x8xf32> to vector<2x8x1xf32>
    %112 = tpu.reciprocal %111 {approx = true} : vector<2x8x1xf32> -> vector<2x8x1xf32>
    %113 = vector.broadcast %112 : vector<2x8x1xf32> to vector<2x8x8xf32>
    %114 = arith.mulf %109, %113 : vector<2x8x8xf32>
    %115 = vector.shape_cast %27 : vector<1x32xf32> to vector<1x1x32xf32>
    %116 = vector.broadcast %115 : vector<1x1x32xf32> to vector<2x8x32xf32>
    %117 = arith.mulf %78, %116 : vector<2x8x32xf32>
    "tpu.trace_start"() <{level = 10 : i32, message = "bqk,bkd->bqd"}> : () -> ()
    %cst_37 = arith.constant dense<0.000000e+00> : vector<2x8x32xf32>
    %118 = tpu.matmul %114, %117, %cst_37 {dimension_numbers = #tpu.dot_dimension_numbers<[2], [1], [1], [2], [0, 0, 0, 1, 1, 2], [0], [0]>} : vector<2x8x8xf32>, vector<2x8x32xf32>, vector<2x8x32xf32> -> vector<2x8x32xf32>
    "tpu.trace_stop"() : () -> ()
    %119 = arith.addf %99, %118 : vector<2x8x32xf32>
    %120 = vector.shape_cast %34 : vector<1x32xf32> to vector<1x1x32xf32>
    %121 = vector.broadcast %120 : vector<1x1x32xf32> to vector<2x8x32xf32>
    %122 = arith.mulf %77, %121 : vector<2x8x32xf32>
    "tpu.trace_start"() <{level = 10 : i32, message = "bqd,bkd->bqk"}> : () -> ()
    %cst_38 = arith.constant dense<0.000000e+00> : vector<2x8x8xf32>
    %123 = tpu.matmul %76, %122, %cst_38 {dimension_numbers = #tpu.dot_dimension_numbers<[2], [2], [1], [1], [0, 0, 0, 1, 1, 1], [0], [0]>} : vector<2x8x32xf32>, vector<2x8x32xf32>, vector<2x8x8xf32> -> vector<2x8x8xf32>
    "tpu.trace_stop"() : () -> ()
    %124 = arith.addf %123, %11 : vector<2x8x8xf32>
    %cst_39 = arith.constant dense<0xFF800000> : vector<2x8xf32>
    %125 = vector.multi_reduction <maximumf>, %124, %cst_39 [2] : vector<2x8x8xf32> to vector<2x8xf32>
    %126 = vector.shape_cast %125 : vector<2x8xf32> to vector<2x8x1xf32>
    %127 = vector.broadcast %126 : vector<2x8x1xf32> to vector<2x8x8xf32>
    %128 = arith.subf %124, %127 : vector<2x8x8xf32>
    %129 = math.exp %128 : vector<2x8x8xf32>
    %cst_40 = arith.constant dense<0.000000e+00> : vector<2x8xf32>
    %130 = vector.multi_reduction <add>, %129, %cst_40 [2] : vector<2x8x8xf32> to vector<2x8xf32>
    %131 = vector.shape_cast %130 : vector<2x8xf32> to vector<2x8x1xf32>
    %132 = tpu.reciprocal %131 {approx = true} : vector<2x8x1xf32> -> vector<2x8x1xf32>
    %133 = vector.broadcast %132 : vector<2x8x1xf32> to vector<2x8x8xf32>
    %134 = arith.mulf %129, %133 : vector<2x8x8xf32>
    %135 = vector.shape_cast %34 : vector<1x32xf32> to vector<1x1x32xf32>
    %136 = vector.broadcast %135 : vector<1x1x32xf32> to vector<2x8x32xf32>
    %137 = arith.mulf %78, %136 : vector<2x8x32xf32>
    "tpu.trace_start"() <{level = 10 : i32, message = "bqk,bkd->bqd"}> : () -> ()
    %cst_41 = arith.constant dense<0.000000e+00> : vector<2x8x32xf32>
    %138 = tpu.matmul %134, %137, %cst_41 {dimension_numbers = #tpu.dot_dimension_numbers<[2], [1], [1], [2], [0, 0, 0, 1, 1, 2], [0], [0]>} : vector<2x8x8xf32>, vector<2x8x32xf32>, vector<2x8x32xf32> -> vector<2x8x32xf32>
    "tpu.trace_stop"() : () -> ()
    %139 = arith.addf %119, %138 : vector<2x8x32xf32>
    %140 = vector.shape_cast %41 : vector<1x32xf32> to vector<1x1x32xf32>
    %141 = vector.broadcast %140 : vector<1x1x32xf32> to vector<2x8x32xf32>
    %142 = arith.mulf %77, %141 : vector<2x8x32xf32>
    "tpu.trace_start"() <{level = 10 : i32, message = "bqd,bkd->bqk"}> : () -> ()
    %cst_42 = arith.constant dense<0.000000e+00> : vector<2x8x8xf32>
    %143 = tpu.matmul %76, %142, %cst_42 {dimension_numbers = #tpu.dot_dimension_numbers<[2], [2], [1], [1], [0, 0, 0, 1, 1, 1], [0], [0]>} : vector<2x8x32xf32>, vector<2x8x32xf32>, vector<2x8x8xf32> -> vector<2x8x8xf32>
    "tpu.trace_stop"() : () -> ()
    %144 = arith.addf %143, %11 : vector<2x8x8xf32>
    %cst_43 = arith.constant dense<0xFF800000> : vector<2x8xf32>
    %145 = vector.multi_reduction <maximumf>, %144, %cst_43 [2] : vector<2x8x8xf32> to vector<2x8xf32>
    %146 = vector.shape_cast %145 : vector<2x8xf32> to vector<2x8x1xf32>
    %147 = vector.broadcast %146 : vector<2x8x1xf32> to vector<2x8x8xf32>
    %148 = arith.subf %144, %147 : vector<2x8x8xf32>
    %149 = math.exp %148 : vector<2x8x8xf32>
    %cst_44 = arith.constant dense<0.000000e+00> : vector<2x8xf32>
    %150 = vector.multi_reduction <add>, %149, %cst_44 [2] : vector<2x8x8xf32> to vector<2x8xf32>
    %151 = vector.shape_cast %150 : vector<2x8xf32> to vector<2x8x1xf32>
    %152 = tpu.reciprocal %151 {approx = true} : vector<2x8x1xf32> -> vector<2x8x1xf32>
    %153 = vector.broadcast %152 : vector<2x8x1xf32> to vector<2x8x8xf32>
    %154 = arith.mulf %149, %153 : vector<2x8x8xf32>
    %155 = vector.shape_cast %41 : vector<1x32xf32> to vector<1x1x32xf32>
    %156 = vector.broadcast %155 : vector<1x1x32xf32> to vector<2x8x32xf32>
    %157 = arith.mulf %78, %156 : vector<2x8x32xf32>
    "tpu.trace_start"() <{level = 10 : i32, message = "bqk,bkd->bqd"}> : () -> ()
    %cst_45 = arith.constant dense<0.000000e+00> : vector<2x8x32xf32>
    %158 = tpu.matmul %154, %157, %cst_45 {dimension_numbers = #tpu.dot_dimension_numbers<[2], [1], [1], [2], [0, 0, 0, 1, 1, 2], [0], [0]>} : vector<2x8x8xf32>, vector<2x8x32xf32>, vector<2x8x32xf32> -> vector<2x8x32xf32>
    "tpu.trace_stop"() : () -> ()
    %159 = arith.addf %139, %158 : vector<2x8x32xf32>
    %160 = vector.shape_cast %159 : vector<2x8x32xf32> to vector<16x32xf32>
    %cst_46 = arith.constant dense<0.000000e+00> : vector<16x32xf32>
    %161 = tpu.matmul %160, %75, %cst_46 {dimension_numbers = #tpu.dot_dimension_numbers<[1], [0], [0], [1], [0, 0, 1, 1], [], []>} : vector<16x32xf32>, vector<32x32xf32>, vector<16x32xf32> -> vector<16x32xf32>
    %162 = vector.broadcast %49 : vector<1x32xf32> to vector<16x32xf32>
    %163 = arith.addf %161, %162 : vector<16x32xf32>
    %164 = arith.addf %9, %163 : vector<16x32xf32>
    %cst_47 = arith.constant dense<0.000000e+00> : vector<16xf32>
    %165 = vector.multi_reduction <add>, %164, %cst_47 [1] : vector<16x32xf32> to vector<16xf32>
    %166 = vector.shape_cast %165 : vector<16xf32> to vector<16x1xf32>
    %cst_48 = arith.constant 3.200000e+01 : f32
    %167 = vector.broadcast %cst_48 : f32 to vector<16x1xf32>
    %168 = arith.divf %166, %167 : vector<16x1xf32>
    %169 = vector.broadcast %168 : vector<16x1xf32> to vector<16x32xf32>
    %170 = arith.subf %164, %169 : vector<16x32xf32>
    %171 = arith.mulf %170, %170 : vector<16x32xf32>
    %cst_49 = arith.constant dense<0.000000e+00> : vector<16xf32>
    %172 = vector.multi_reduction <add>, %171, %cst_49 [1] : vector<16x32xf32> to vector<16xf32>
    %173 = vector.shape_cast %172 : vector<16xf32> to vector<16x1xf32>
    %cst_50 = arith.constant 3.200000e+01 : f32
    %174 = vector.broadcast %cst_50 : f32 to vector<16x1xf32>
    %175 = arith.divf %173, %174 : vector<16x1xf32>
    %176 = vector.broadcast %168 : vector<16x1xf32> to vector<16x32xf32>
    %177 = arith.subf %164, %176 : vector<16x32xf32>
    %cst_51 = arith.constant 9.99999974E-6 : f32
    %178 = vector.broadcast %cst_51 : f32 to vector<16x1xf32>
    %179 = arith.addf %175, %178 : vector<16x1xf32>
    %180 = math.rsqrt %179 : vector<16x1xf32>
    %181 = vector.broadcast %180 : vector<16x1xf32> to vector<16x32xf32>
    %182 = arith.mulf %177, %181 : vector<16x32xf32>
    %183 = vector.broadcast %56 : vector<1x32xf32> to vector<16x32xf32>
    %184 = arith.mulf %182, %183 : vector<16x32xf32>
    %185 = vector.broadcast %57 : vector<1x32xf32> to vector<16x32xf32>
    %186 = arith.addf %184, %185 : vector<16x32xf32>
    %c0_52 = arith.constant 0 : index
    %c0_53 = arith.constant 0 : index
    %c0_54 = arith.constant 0 : index
    %187 = vector.load %arg9[%c0_52, %c0_53, %c0_54] : memref<2x32x32xf32, #tpu.memory_space<vmem>>, vector<1x32x32xf32>
    %188 = vector.shape_cast %187 : vector<1x32x32xf32> to vector<32x32xf32>
    %cst_55 = arith.constant dense<0.000000e+00> : vector<16x32xf32>
    %189 = tpu.matmul %186, %188, %cst_55 {dimension_numbers = #tpu.dot_dimension_numbers<[1], [0], [0], [1], [0, 0, 1, 1], [], []>} : vector<16x32xf32>, vector<32x32xf32>, vector<16x32xf32> -> vector<16x32xf32>
    %190 = vector.broadcast %50 : vector<1x32xf32> to vector<16x32xf32>
    %191 = arith.addf %189, %190 : vector<16x32xf32>
    %192 = vector.extract_strided_slice %43 {offsets = [0, 0], sizes = [16, 32], strides = [1, 1]} : vector<16x512xf32> to vector<16x32xf32>
    %193 = vector.broadcast %51 : vector<1x32xf32> to vector<16x32xf32>
    %194 = arith.addf %192, %193 : vector<16x32xf32>
    %195 = vector.extract_strided_slice %43 {offsets = [0, 128], sizes = [16, 32], strides = [1, 1]} : vector<16x512xf32> to vector<16x32xf32>
    %196 = vector.broadcast %52 : vector<1x32xf32> to vector<16x32xf32>
    %197 = arith.addf %195, %196 : vector<16x32xf32>
    %c0_56 = arith.constant 0 : index
    %c0_57 = arith.constant 0 : index
    %c0_58 = arith.constant 0 : index
    %198 = vector.load %arg11[%c0_56, %c0_57, %c0_58] : memref<2x32x32xf32, #tpu.memory_space<vmem>>, vector<1x32x32xf32>
    %199 = vector.shape_cast %198 : vector<1x32x32xf32> to vector<32x32xf32>
    %200 = vector.shape_cast %191 : vector<16x32xf32> to vector<2x8x32xf32>
    %201 = vector.shape_cast %194 : vector<16x32xf32> to vector<2x8x32xf32>
    %202 = vector.shape_cast %197 : vector<16x32xf32> to vector<2x8x32xf32>
    %cst_59 = arith.constant 0.000000e+00 : f32
    %203 = vector.broadcast %cst_59 : f32 to vector<2x8x32xf32>
    %204 = vector.shape_cast %20 : vector<1x32xf32> to vector<1x1x32xf32>
    %205 = vector.broadcast %204 : vector<1x1x32xf32> to vector<2x8x32xf32>
    %206 = arith.mulf %201, %205 : vector<2x8x32xf32>
    "tpu.trace_start"() <{level = 10 : i32, message = "bqd,bkd->bqk"}> : () -> ()
    %cst_60 = arith.constant dense<0.000000e+00> : vector<2x8x8xf32>
    %207 = tpu.matmul %200, %206, %cst_60 {dimension_numbers = #tpu.dot_dimension_numbers<[2], [2], [1], [1], [0, 0, 0, 1, 1, 1], [0], [0]>} : vector<2x8x32xf32>, vector<2x8x32xf32>, vector<2x8x8xf32> -> vector<2x8x8xf32>
    "tpu.trace_stop"() : () -> ()
    %208 = arith.addf %207, %12 : vector<2x8x8xf32>
    %cst_61 = arith.constant dense<0xFF800000> : vector<2x8xf32>
    %209 = vector.multi_reduction <maximumf>, %208, %cst_61 [2] : vector<2x8x8xf32> to vector<2x8xf32>
    %210 = vector.shape_cast %209 : vector<2x8xf32> to vector<2x8x1xf32>
    %211 = vector.broadcast %210 : vector<2x8x1xf32> to vector<2x8x8xf32>
    %212 = arith.subf %208, %211 : vector<2x8x8xf32>
    %213 = math.exp %212 : vector<2x8x8xf32>
    %cst_62 = arith.constant dense<0.000000e+00> : vector<2x8xf32>
    %214 = vector.multi_reduction <add>, %213, %cst_62 [2] : vector<2x8x8xf32> to vector<2x8xf32>
    %215 = vector.shape_cast %214 : vector<2x8xf32> to vector<2x8x1xf32>
    %216 = tpu.reciprocal %215 {approx = true} : vector<2x8x1xf32> -> vector<2x8x1xf32>
    %217 = vector.broadcast %216 : vector<2x8x1xf32> to vector<2x8x8xf32>
    %218 = arith.mulf %213, %217 : vector<2x8x8xf32>
    %219 = vector.shape_cast %20 : vector<1x32xf32> to vector<1x1x32xf32>
    %220 = vector.broadcast %219 : vector<1x1x32xf32> to vector<2x8x32xf32>
    %221 = arith.mulf %202, %220 : vector<2x8x32xf32>
    "tpu.trace_start"() <{level = 10 : i32, message = "bqk,bkd->bqd"}> : () -> ()
    %cst_63 = arith.constant dense<0.000000e+00> : vector<2x8x32xf32>
    %222 = tpu.matmul %218, %221, %cst_63 {dimension_numbers = #tpu.dot_dimension_numbers<[2], [1], [1], [2], [0, 0, 0, 1, 1, 2], [0], [0]>} : vector<2x8x8xf32>, vector<2x8x32xf32>, vector<2x8x32xf32> -> vector<2x8x32xf32>
    "tpu.trace_stop"() : () -> ()
    %223 = arith.addf %203, %222 : vector<2x8x32xf32>
    %224 = vector.shape_cast %27 : vector<1x32xf32> to vector<1x1x32xf32>
    %225 = vector.broadcast %224 : vector<1x1x32xf32> to vector<2x8x32xf32>
    %226 = arith.mulf %201, %225 : vector<2x8x32xf32>
    "tpu.trace_start"() <{level = 10 : i32, message = "bqd,bkd->bqk"}> : () -> ()
    %cst_64 = arith.constant dense<0.000000e+00> : vector<2x8x8xf32>
    %227 = tpu.matmul %200, %226, %cst_64 {dimension_numbers = #tpu.dot_dimension_numbers<[2], [2], [1], [1], [0, 0, 0, 1, 1, 1], [0], [0]>} : vector<2x8x32xf32>, vector<2x8x32xf32>, vector<2x8x8xf32> -> vector<2x8x8xf32>
    "tpu.trace_stop"() : () -> ()
    %228 = arith.addf %227, %12 : vector<2x8x8xf32>
    %cst_65 = arith.constant dense<0xFF800000> : vector<2x8xf32>
    %229 = vector.multi_reduction <maximumf>, %228, %cst_65 [2] : vector<2x8x8xf32> to vector<2x8xf32>
    %230 = vector.shape_cast %229 : vector<2x8xf32> to vector<2x8x1xf32>
    %231 = vector.broadcast %230 : vector<2x8x1xf32> to vector<2x8x8xf32>
    %232 = arith.subf %228, %231 : vector<2x8x8xf32>
    %233 = math.exp %232 : vector<2x8x8xf32>
    %cst_66 = arith.constant dense<0.000000e+00> : vector<2x8xf32>
    %234 = vector.multi_reduction <add>, %233, %cst_66 [2] : vector<2x8x8xf32> to vector<2x8xf32>
    %235 = vector.shape_cast %234 : vector<2x8xf32> to vector<2x8x1xf32>
    %236 = tpu.reciprocal %235 {approx = true} : vector<2x8x1xf32> -> vector<2x8x1xf32>
    %237 = vector.broadcast %236 : vector<2x8x1xf32> to vector<2x8x8xf32>
    %238 = arith.mulf %233, %237 : vector<2x8x8xf32>
    %239 = vector.shape_cast %27 : vector<1x32xf32> to vector<1x1x32xf32>
    %240 = vector.broadcast %239 : vector<1x1x32xf32> to vector<2x8x32xf32>
    %241 = arith.mulf %202, %240 : vector<2x8x32xf32>
    "tpu.trace_start"() <{level = 10 : i32, message = "bqk,bkd->bqd"}> : () -> ()
    %cst_67 = arith.constant dense<0.000000e+00> : vector<2x8x32xf32>
    %242 = tpu.matmul %238, %241, %cst_67 {dimension_numbers = #tpu.dot_dimension_numbers<[2], [1], [1], [2], [0, 0, 0, 1, 1, 2], [0], [0]>} : vector<2x8x8xf32>, vector<2x8x32xf32>, vector<2x8x32xf32> -> vector<2x8x32xf32>
    "tpu.trace_stop"() : () -> ()
    %243 = arith.addf %223, %242 : vector<2x8x32xf32>
    %244 = vector.shape_cast %34 : vector<1x32xf32> to vector<1x1x32xf32>
    %245 = vector.broadcast %244 : vector<1x1x32xf32> to vector<2x8x32xf32>
    %246 = arith.mulf %201, %245 : vector<2x8x32xf32>
    "tpu.trace_start"() <{level = 10 : i32, message = "bqd,bkd->bqk"}> : () -> ()
    %cst_68 = arith.constant dense<0.000000e+00> : vector<2x8x8xf32>
    %247 = tpu.matmul %200, %246, %cst_68 {dimension_numbers = #tpu.dot_dimension_numbers<[2], [2], [1], [1], [0, 0, 0, 1, 1, 1], [0], [0]>} : vector<2x8x32xf32>, vector<2x8x32xf32>, vector<2x8x8xf32> -> vector<2x8x8xf32>
    "tpu.trace_stop"() : () -> ()
    %248 = arith.addf %247, %12 : vector<2x8x8xf32>
    %cst_69 = arith.constant dense<0xFF800000> : vector<2x8xf32>
    %249 = vector.multi_reduction <maximumf>, %248, %cst_69 [2] : vector<2x8x8xf32> to vector<2x8xf32>
    %250 = vector.shape_cast %249 : vector<2x8xf32> to vector<2x8x1xf32>
    %251 = vector.broadcast %250 : vector<2x8x1xf32> to vector<2x8x8xf32>
    %252 = arith.subf %248, %251 : vector<2x8x8xf32>
    %253 = math.exp %252 : vector<2x8x8xf32>
    %cst_70 = arith.constant dense<0.000000e+00> : vector<2x8xf32>
    %254 = vector.multi_reduction <add>, %253, %cst_70 [2] : vector<2x8x8xf32> to vector<2x8xf32>
    %255 = vector.shape_cast %254 : vector<2x8xf32> to vector<2x8x1xf32>
    %256 = tpu.reciprocal %255 {approx = true} : vector<2x8x1xf32> -> vector<2x8x1xf32>
    %257 = vector.broadcast %256 : vector<2x8x1xf32> to vector<2x8x8xf32>
    %258 = arith.mulf %253, %257 : vector<2x8x8xf32>
    %259 = vector.shape_cast %34 : vector<1x32xf32> to vector<1x1x32xf32>
    %260 = vector.broadcast %259 : vector<1x1x32xf32> to vector<2x8x32xf32>
    %261 = arith.mulf %202, %260 : vector<2x8x32xf32>
    "tpu.trace_start"() <{level = 10 : i32, message = "bqk,bkd->bqd"}> : () -> ()
    %cst_71 = arith.constant dense<0.000000e+00> : vector<2x8x32xf32>
    %262 = tpu.matmul %258, %261, %cst_71 {dimension_numbers = #tpu.dot_dimension_numbers<[2], [1], [1], [2], [0, 0, 0, 1, 1, 2], [0], [0]>} : vector<2x8x8xf32>, vector<2x8x32xf32>, vector<2x8x32xf32> -> vector<2x8x32xf32>
    "tpu.trace_stop"() : () -> ()
    %263 = arith.addf %243, %262 : vector<2x8x32xf32>
    %264 = vector.shape_cast %41 : vector<1x32xf32> to vector<1x1x32xf32>
    %265 = vector.broadcast %264 : vector<1x1x32xf32> to vector<2x8x32xf32>
    %266 = arith.mulf %201, %265 : vector<2x8x32xf32>
    "tpu.trace_start"() <{level = 10 : i32, message = "bqd,bkd->bqk"}> : () -> ()
    %cst_72 = arith.constant dense<0.000000e+00> : vector<2x8x8xf32>
    %267 = tpu.matmul %200, %266, %cst_72 {dimension_numbers = #tpu.dot_dimension_numbers<[2], [2], [1], [1], [0, 0, 0, 1, 1, 1], [0], [0]>} : vector<2x8x32xf32>, vector<2x8x32xf32>, vector<2x8x8xf32> -> vector<2x8x8xf32>
    "tpu.trace_stop"() : () -> ()
    %268 = arith.addf %267, %12 : vector<2x8x8xf32>
    %cst_73 = arith.constant dense<0xFF800000> : vector<2x8xf32>
    %269 = vector.multi_reduction <maximumf>, %268, %cst_73 [2] : vector<2x8x8xf32> to vector<2x8xf32>
    %270 = vector.shape_cast %269 : vector<2x8xf32> to vector<2x8x1xf32>
    %271 = vector.broadcast %270 : vector<2x8x1xf32> to vector<2x8x8xf32>
    %272 = arith.subf %268, %271 : vector<2x8x8xf32>
    %273 = math.exp %272 : vector<2x8x8xf32>
    %cst_74 = arith.constant dense<0.000000e+00> : vector<2x8xf32>
    %274 = vector.multi_reduction <add>, %273, %cst_74 [2] : vector<2x8x8xf32> to vector<2x8xf32>
    %275 = vector.shape_cast %274 : vector<2x8xf32> to vector<2x8x1xf32>
    %276 = tpu.reciprocal %275 {approx = true} : vector<2x8x1xf32> -> vector<2x8x1xf32>
    %277 = vector.broadcast %276 : vector<2x8x1xf32> to vector<2x8x8xf32>
    %278 = arith.mulf %273, %277 : vector<2x8x8xf32>
    %279 = vector.shape_cast %41 : vector<1x32xf32> to vector<1x1x32xf32>
    %280 = vector.broadcast %279 : vector<1x1x32xf32> to vector<2x8x32xf32>
    %281 = arith.mulf %202, %280 : vector<2x8x32xf32>
    "tpu.trace_start"() <{level = 10 : i32, message = "bqk,bkd->bqd"}> : () -> ()
    %cst_75 = arith.constant dense<0.000000e+00> : vector<2x8x32xf32>
    %282 = tpu.matmul %278, %281, %cst_75 {dimension_numbers = #tpu.dot_dimension_numbers<[2], [1], [1], [2], [0, 0, 0, 1, 1, 2], [0], [0]>} : vector<2x8x8xf32>, vector<2x8x32xf32>, vector<2x8x32xf32> -> vector<2x8x32xf32>
    "tpu.trace_stop"() : () -> ()
    %283 = arith.addf %263, %282 : vector<2x8x32xf32>
    %284 = vector.shape_cast %283 : vector<2x8x32xf32> to vector<16x32xf32>
    %cst_76 = arith.constant dense<0.000000e+00> : vector<16x32xf32>
    %285 = tpu.matmul %284, %199, %cst_76 {dimension_numbers = #tpu.dot_dimension_numbers<[1], [0], [0], [1], [0, 0, 1, 1], [], []>} : vector<16x32xf32>, vector<32x32xf32>, vector<16x32xf32> -> vector<16x32xf32>
    %286 = vector.broadcast %53 : vector<1x32xf32> to vector<16x32xf32>
    %287 = arith.addf %285, %286 : vector<16x32xf32>
    %288 = arith.addf %186, %287 : vector<16x32xf32>
    %cst_77 = arith.constant dense<0.000000e+00> : vector<16xf32>
    %289 = vector.multi_reduction <add>, %288, %cst_77 [1] : vector<16x32xf32> to vector<16xf32>
    %290 = vector.shape_cast %289 : vector<16xf32> to vector<16x1xf32>
    %cst_78 = arith.constant 3.200000e+01 : f32
    %291 = vector.broadcast %cst_78 : f32 to vector<16x1xf32>
    %292 = arith.divf %290, %291 : vector<16x1xf32>
    %293 = vector.broadcast %292 : vector<16x1xf32> to vector<16x32xf32>
    %294 = arith.subf %288, %293 : vector<16x32xf32>
    %295 = arith.mulf %294, %294 : vector<16x32xf32>
    %cst_79 = arith.constant dense<0.000000e+00> : vector<16xf32>
    %296 = vector.multi_reduction <add>, %295, %cst_79 [1] : vector<16x32xf32> to vector<16xf32>
    %297 = vector.shape_cast %296 : vector<16xf32> to vector<16x1xf32>
    %cst_80 = arith.constant 3.200000e+01 : f32
    %298 = vector.broadcast %cst_80 : f32 to vector<16x1xf32>
    %299 = arith.divf %297, %298 : vector<16x1xf32>
    %300 = vector.broadcast %292 : vector<16x1xf32> to vector<16x32xf32>
    %301 = arith.subf %288, %300 : vector<16x32xf32>
    %cst_81 = arith.constant 9.99999974E-6 : f32
    %302 = vector.broadcast %cst_81 : f32 to vector<16x1xf32>
    %303 = arith.addf %299, %302 : vector<16x1xf32>
    %304 = math.rsqrt %303 : vector<16x1xf32>
    %305 = vector.broadcast %304 : vector<16x1xf32> to vector<16x32xf32>
    %306 = arith.mulf %301, %305 : vector<16x32xf32>
    %307 = vector.broadcast %58 : vector<1x32xf32> to vector<16x32xf32>
    %308 = arith.mulf %306, %307 : vector<16x32xf32>
    %309 = vector.broadcast %59 : vector<1x32xf32> to vector<16x32xf32>
    %310 = arith.addf %308, %309 : vector<16x32xf32>
    %c0_82 = arith.constant 0 : index
    %c0_83 = arith.constant 0 : index
    %c0_84 = arith.constant 0 : index
    %311 = vector.load %arg12[%c0_82, %c0_83, %c0_84] : memref<2x32x64xf32, #tpu.memory_space<vmem>>, vector<1x32x64xf32>
    %312 = vector.shape_cast %311 : vector<1x32x64xf32> to vector<32x64xf32>
    %cst_85 = arith.constant dense<0.000000e+00> : vector<16x64xf32>
    %313 = tpu.matmul %310, %312, %cst_85 {dimension_numbers = #tpu.dot_dimension_numbers<[1], [0], [0], [1], [0, 0, 1, 1], [], []>} : vector<16x32xf32>, vector<32x64xf32>, vector<16x64xf32> -> vector<16x64xf32>
    %314 = vector.broadcast %54 : vector<1x64xf32> to vector<16x64xf32>
    %315 = arith.addf %313, %314 : vector<16x64xf32>
    %cst_86 = arith.constant 0.000000e+00 : f32
    %316 = vector.broadcast %cst_86 : f32 to vector<16x64xf32>
    %317 = arith.maximumf %315, %316 : vector<16x64xf32>
    %c0_87 = arith.constant 0 : index
    %c0_88 = arith.constant 0 : index
    %c0_89 = arith.constant 0 : index
    %318 = vector.load %arg13[%c0_87, %c0_88, %c0_89] : memref<2x64x32xf32, #tpu.memory_space<vmem>>, vector<1x64x32xf32>
    %319 = vector.shape_cast %318 : vector<1x64x32xf32> to vector<64x32xf32>
    %cst_90 = arith.constant dense<0.000000e+00> : vector<16x32xf32>
    %320 = tpu.matmul %317, %319, %cst_90 {dimension_numbers = #tpu.dot_dimension_numbers<[1], [0], [0], [1], [0, 0, 1, 1], [], []>} : vector<16x64xf32>, vector<64x32xf32>, vector<16x32xf32> -> vector<16x32xf32>
    %321 = vector.broadcast %55 : vector<1x32xf32> to vector<16x32xf32>
    %322 = arith.addf %320, %321 : vector<16x32xf32>
    %323 = arith.addf %310, %322 : vector<16x32xf32>
    %cst_91 = arith.constant dense<0.000000e+00> : vector<16xf32>
    %324 = vector.multi_reduction <add>, %323, %cst_91 [1] : vector<16x32xf32> to vector<16xf32>
    %325 = vector.shape_cast %324 : vector<16xf32> to vector<16x1xf32>
    %cst_92 = arith.constant 3.200000e+01 : f32
    %326 = vector.broadcast %cst_92 : f32 to vector<16x1xf32>
    %327 = arith.divf %325, %326 : vector<16x1xf32>
    %328 = vector.broadcast %327 : vector<16x1xf32> to vector<16x32xf32>
    %329 = arith.subf %323, %328 : vector<16x32xf32>
    %330 = arith.mulf %329, %329 : vector<16x32xf32>
    %cst_93 = arith.constant dense<0.000000e+00> : vector<16xf32>
    %331 = vector.multi_reduction <add>, %330, %cst_93 [1] : vector<16x32xf32> to vector<16xf32>
    %332 = vector.shape_cast %331 : vector<16xf32> to vector<16x1xf32>
    %cst_94 = arith.constant 3.200000e+01 : f32
    %333 = vector.broadcast %cst_94 : f32 to vector<16x1xf32>
    %334 = arith.divf %332, %333 : vector<16x1xf32>
    %335 = vector.broadcast %327 : vector<16x1xf32> to vector<16x32xf32>
    %336 = arith.subf %323, %335 : vector<16x32xf32>
    %cst_95 = arith.constant 9.99999974E-6 : f32
    %337 = vector.broadcast %cst_95 : f32 to vector<16x1xf32>
    %338 = arith.addf %334, %337 : vector<16x1xf32>
    %339 = math.rsqrt %338 : vector<16x1xf32>
    %340 = vector.broadcast %339 : vector<16x1xf32> to vector<16x32xf32>
    %341 = arith.mulf %336, %340 : vector<16x32xf32>
    %342 = vector.broadcast %60 : vector<1x32xf32> to vector<16x32xf32>
    %343 = arith.mulf %341, %342 : vector<16x32xf32>
    %344 = vector.broadcast %61 : vector<1x32xf32> to vector<16x32xf32>
    %345 = arith.addf %343, %344 : vector<16x32xf32>
    %c1 = arith.constant 1 : index
    %c0_96 = arith.constant 0 : index
    %c0_97 = arith.constant 0 : index
    %346 = vector.load %arg14[%c1, %c0_96, %c0_97] : memref<2x16x128xf32, #tpu.memory_space<vmem>>, vector<1x16x128xf32>
    %347 = vector.shape_cast %346 : vector<1x16x128xf32> to vector<16x128xf32>
    %348 = vector.extract_strided_slice %347 {offsets = [0, 0], sizes = [1, 32], strides = [1, 1]} : vector<16x128xf32> to vector<1x32xf32>
    %349 = vector.extract_strided_slice %347 {offsets = [1, 0], sizes = [1, 32], strides = [1, 1]} : vector<16x128xf32> to vector<1x32xf32>
    %350 = vector.extract_strided_slice %347 {offsets = [2, 0], sizes = [1, 32], strides = [1, 1]} : vector<16x128xf32> to vector<1x32xf32>
    %351 = vector.extract_strided_slice %347 {offsets = [3, 0], sizes = [1, 32], strides = [1, 1]} : vector<16x128xf32> to vector<1x32xf32>
    %352 = vector.extract_strided_slice %347 {offsets = [4, 0], sizes = [1, 32], strides = [1, 1]} : vector<16x128xf32> to vector<1x32xf32>
    %353 = vector.extract_strided_slice %347 {offsets = [5, 0], sizes = [1, 32], strides = [1, 1]} : vector<16x128xf32> to vector<1x32xf32>
    %354 = vector.extract_strided_slice %347 {offsets = [6, 0], sizes = [1, 32], strides = [1, 1]} : vector<16x128xf32> to vector<1x32xf32>
    %355 = vector.extract_strided_slice %347 {offsets = [7, 0], sizes = [1, 32], strides = [1, 1]} : vector<16x128xf32> to vector<1x32xf32>
    %356 = vector.extract_strided_slice %347 {offsets = [8, 0], sizes = [1, 64], strides = [1, 1]} : vector<16x128xf32> to vector<1x64xf32>
    %357 = vector.extract_strided_slice %347 {offsets = [9, 0], sizes = [1, 32], strides = [1, 1]} : vector<16x128xf32> to vector<1x32xf32>
    %358 = vector.extract_strided_slice %347 {offsets = [10, 0], sizes = [1, 32], strides = [1, 1]} : vector<16x128xf32> to vector<1x32xf32>
    %359 = vector.extract_strided_slice %347 {offsets = [11, 0], sizes = [1, 32], strides = [1, 1]} : vector<16x128xf32> to vector<1x32xf32>
    %360 = vector.extract_strided_slice %347 {offsets = [12, 0], sizes = [1, 32], strides = [1, 1]} : vector<16x128xf32> to vector<1x32xf32>
    %361 = vector.extract_strided_slice %347 {offsets = [13, 0], sizes = [1, 32], strides = [1, 1]} : vector<16x128xf32> to vector<1x32xf32>
    %362 = vector.extract_strided_slice %347 {offsets = [14, 0], sizes = [1, 32], strides = [1, 1]} : vector<16x128xf32> to vector<1x32xf32>
    %363 = vector.extract_strided_slice %347 {offsets = [15, 0], sizes = [1, 32], strides = [1, 1]} : vector<16x128xf32> to vector<1x32xf32>
    %c1_98 = arith.constant 1 : index
    %c0_99 = arith.constant 0 : index
    %c0_100 = arith.constant 0 : index
    %364 = vector.load %arg7[%c1_98, %c0_99, %c0_100] : memref<2x32x384xf32, #tpu.memory_space<vmem>>, vector<1x32x384xf32>
    %365 = vector.shape_cast %364 : vector<1x32x384xf32> to vector<32x384xf32>
    %cst_101 = arith.constant dense<0.000000e+00> : vector<16x384xf32>
    %366 = tpu.matmul %345, %365, %cst_101 {dimension_numbers = #tpu.dot_dimension_numbers<[1], [0], [0], [1], [0, 0, 1, 1], [], []>} : vector<16x32xf32>, vector<32x384xf32>, vector<16x384xf32> -> vector<16x384xf32>
    %367 = vector.extract_strided_slice %366 {offsets = [0, 0], sizes = [16, 32], strides = [1, 1]} : vector<16x384xf32> to vector<16x32xf32>
    %368 = vector.broadcast %348 : vector<1x32xf32> to vector<16x32xf32>
    %369 = arith.addf %367, %368 : vector<16x32xf32>
    %370 = vector.extract_strided_slice %366 {offsets = [0, 128], sizes = [16, 32], strides = [1, 1]} : vector<16x384xf32> to vector<16x32xf32>
    %371 = vector.broadcast %349 : vector<1x32xf32> to vector<16x32xf32>
    %372 = arith.addf %370, %371 : vector<16x32xf32>
    %373 = vector.extract_strided_slice %366 {offsets = [0, 256], sizes = [16, 32], strides = [1, 1]} : vector<16x384xf32> to vector<16x32xf32>
    %374 = vector.broadcast %350 : vector<1x32xf32> to vector<16x32xf32>
    %375 = arith.addf %373, %374 : vector<16x32xf32>
    %c1_102 = arith.constant 1 : index
    %c0_103 = arith.constant 0 : index
    %c0_104 = arith.constant 0 : index
    %376 = vector.load %arg8[%c1_102, %c0_103, %c0_104] : memref<2x32x32xf32, #tpu.memory_space<vmem>>, vector<1x32x32xf32>
    %377 = vector.shape_cast %376 : vector<1x32x32xf32> to vector<32x32xf32>
    %378 = vector.shape_cast %369 : vector<16x32xf32> to vector<2x8x32xf32>
    %379 = vector.shape_cast %372 : vector<16x32xf32> to vector<2x8x32xf32>
    %380 = vector.shape_cast %375 : vector<16x32xf32> to vector<2x8x32xf32>
    %cst_105 = arith.constant 0.000000e+00 : f32
    %381 = vector.broadcast %cst_105 : f32 to vector<2x8x32xf32>
    %382 = vector.shape_cast %20 : vector<1x32xf32> to vector<1x1x32xf32>
    %383 = vector.broadcast %382 : vector<1x1x32xf32> to vector<2x8x32xf32>
    %384 = arith.mulf %379, %383 : vector<2x8x32xf32>
    "tpu.trace_start"() <{level = 10 : i32, message = "bqd,bkd->bqk"}> : () -> ()
    %cst_106 = arith.constant dense<0.000000e+00> : vector<2x8x8xf32>
    %385 = tpu.matmul %378, %384, %cst_106 {dimension_numbers = #tpu.dot_dimension_numbers<[2], [2], [1], [1], [0, 0, 0, 1, 1, 1], [0], [0]>} : vector<2x8x32xf32>, vector<2x8x32xf32>, vector<2x8x8xf32> -> vector<2x8x8xf32>
    "tpu.trace_stop"() : () -> ()
    %386 = arith.addf %385, %11 : vector<2x8x8xf32>
    %cst_107 = arith.constant dense<0xFF800000> : vector<2x8xf32>
    %387 = vector.multi_reduction <maximumf>, %386, %cst_107 [2] : vector<2x8x8xf32> to vector<2x8xf32>
    %388 = vector.shape_cast %387 : vector<2x8xf32> to vector<2x8x1xf32>
    %389 = vector.broadcast %388 : vector<2x8x1xf32> to vector<2x8x8xf32>
    %390 = arith.subf %386, %389 : vector<2x8x8xf32>
    %391 = math.exp %390 : vector<2x8x8xf32>
    %cst_108 = arith.constant dense<0.000000e+00> : vector<2x8xf32>
    %392 = vector.multi_reduction <add>, %391, %cst_108 [2] : vector<2x8x8xf32> to vector<2x8xf32>
    %393 = vector.shape_cast %392 : vector<2x8xf32> to vector<2x8x1xf32>
    %394 = tpu.reciprocal %393 {approx = true} : vector<2x8x1xf32> -> vector<2x8x1xf32>
    %395 = vector.broadcast %394 : vector<2x8x1xf32> to vector<2x8x8xf32>
    %396 = arith.mulf %391, %395 : vector<2x8x8xf32>
    %397 = vector.shape_cast %20 : vector<1x32xf32> to vector<1x1x32xf32>
    %398 = vector.broadcast %397 : vector<1x1x32xf32> to vector<2x8x32xf32>
    %399 = arith.mulf %380, %398 : vector<2x8x32xf32>
    "tpu.trace_start"() <{level = 10 : i32, message = "bqk,bkd->bqd"}> : () -> ()
    %cst_109 = arith.constant dense<0.000000e+00> : vector<2x8x32xf32>
    %400 = tpu.matmul %396, %399, %cst_109 {dimension_numbers = #tpu.dot_dimension_numbers<[2], [1], [1], [2], [0, 0, 0, 1, 1, 2], [0], [0]>} : vector<2x8x8xf32>, vector<2x8x32xf32>, vector<2x8x32xf32> -> vector<2x8x32xf32>
    "tpu.trace_stop"() : () -> ()
    %401 = arith.addf %381, %400 : vector<2x8x32xf32>
    %402 = vector.shape_cast %27 : vector<1x32xf32> to vector<1x1x32xf32>
    %403 = vector.broadcast %402 : vector<1x1x32xf32> to vector<2x8x32xf32>
    %404 = arith.mulf %379, %403 : vector<2x8x32xf32>
    "tpu.trace_start"() <{level = 10 : i32, message = "bqd,bkd->bqk"}> : () -> ()
    %cst_110 = arith.constant dense<0.000000e+00> : vector<2x8x8xf32>
    %405 = tpu.matmul %378, %404, %cst_110 {dimension_numbers = #tpu.dot_dimension_numbers<[2], [2], [1], [1], [0, 0, 0, 1, 1, 1], [0], [0]>} : vector<2x8x32xf32>, vector<2x8x32xf32>, vector<2x8x8xf32> -> vector<2x8x8xf32>
    "tpu.trace_stop"() : () -> ()
    %406 = arith.addf %405, %11 : vector<2x8x8xf32>
    %cst_111 = arith.constant dense<0xFF800000> : vector<2x8xf32>
    %407 = vector.multi_reduction <maximumf>, %406, %cst_111 [2] : vector<2x8x8xf32> to vector<2x8xf32>
    %408 = vector.shape_cast %407 : vector<2x8xf32> to vector<2x8x1xf32>
    %409 = vector.broadcast %408 : vector<2x8x1xf32> to vector<2x8x8xf32>
    %410 = arith.subf %406, %409 : vector<2x8x8xf32>
    %411 = math.exp %410 : vector<2x8x8xf32>
    %cst_112 = arith.constant dense<0.000000e+00> : vector<2x8xf32>
    %412 = vector.multi_reduction <add>, %411, %cst_112 [2] : vector<2x8x8xf32> to vector<2x8xf32>
    %413 = vector.shape_cast %412 : vector<2x8xf32> to vector<2x8x1xf32>
    %414 = tpu.reciprocal %413 {approx = true} : vector<2x8x1xf32> -> vector<2x8x1xf32>
    %415 = vector.broadcast %414 : vector<2x8x1xf32> to vector<2x8x8xf32>
    %416 = arith.mulf %411, %415 : vector<2x8x8xf32>
    %417 = vector.shape_cast %27 : vector<1x32xf32> to vector<1x1x32xf32>
    %418 = vector.broadcast %417 : vector<1x1x32xf32> to vector<2x8x32xf32>
    %419 = arith.mulf %380, %418 : vector<2x8x32xf32>
    "tpu.trace_start"() <{level = 10 : i32, message = "bqk,bkd->bqd"}> : () -> ()
    %cst_113 = arith.constant dense<0.000000e+00> : vector<2x8x32xf32>
    %420 = tpu.matmul %416, %419, %cst_113 {dimension_numbers = #tpu.dot_dimension_numbers<[2], [1], [1], [2], [0, 0, 0, 1, 1, 2], [0], [0]>} : vector<2x8x8xf32>, vector<2x8x32xf32>, vector<2x8x32xf32> -> vector<2x8x32xf32>
    "tpu.trace_stop"() : () -> ()
    %421 = arith.addf %401, %420 : vector<2x8x32xf32>
    %422 = vector.shape_cast %34 : vector<1x32xf32> to vector<1x1x32xf32>
    %423 = vector.broadcast %422 : vector<1x1x32xf32> to vector<2x8x32xf32>
    %424 = arith.mulf %379, %423 : vector<2x8x32xf32>
    "tpu.trace_start"() <{level = 10 : i32, message = "bqd,bkd->bqk"}> : () -> ()
    %cst_114 = arith.constant dense<0.000000e+00> : vector<2x8x8xf32>
    %425 = tpu.matmul %378, %424, %cst_114 {dimension_numbers = #tpu.dot_dimension_numbers<[2], [2], [1], [1], [0, 0, 0, 1, 1, 1], [0], [0]>} : vector<2x8x32xf32>, vector<2x8x32xf32>, vector<2x8x8xf32> -> vector<2x8x8xf32>
    "tpu.trace_stop"() : () -> ()
    %426 = arith.addf %425, %11 : vector<2x8x8xf32>
    %cst_115 = arith.constant dense<0xFF800000> : vector<2x8xf32>
    %427 = vector.multi_reduction <maximumf>, %426, %cst_115 [2] : vector<2x8x8xf32> to vector<2x8xf32>
    %428 = vector.shape_cast %427 : vector<2x8xf32> to vector<2x8x1xf32>
    %429 = vector.broadcast %428 : vector<2x8x1xf32> to vector<2x8x8xf32>
    %430 = arith.subf %426, %429 : vector<2x8x8xf32>
    %431 = math.exp %430 : vector<2x8x8xf32>
    %cst_116 = arith.constant dense<0.000000e+00> : vector<2x8xf32>
    %432 = vector.multi_reduction <add>, %431, %cst_116 [2] : vector<2x8x8xf32> to vector<2x8xf32>
    %433 = vector.shape_cast %432 : vector<2x8xf32> to vector<2x8x1xf32>
    %434 = tpu.reciprocal %433 {approx = true} : vector<2x8x1xf32> -> vector<2x8x1xf32>
    %435 = vector.broadcast %434 : vector<2x8x1xf32> to vector<2x8x8xf32>
    %436 = arith.mulf %431, %435 : vector<2x8x8xf32>
    %437 = vector.shape_cast %34 : vector<1x32xf32> to vector<1x1x32xf32>
    %438 = vector.broadcast %437 : vector<1x1x32xf32> to vector<2x8x32xf32>
    %439 = arith.mulf %380, %438 : vector<2x8x32xf32>
    "tpu.trace_start"() <{level = 10 : i32, message = "bqk,bkd->bqd"}> : () -> ()
    %cst_117 = arith.constant dense<0.000000e+00> : vector<2x8x32xf32>
    %440 = tpu.matmul %436, %439, %cst_117 {dimension_numbers = #tpu.dot_dimension_numbers<[2], [1], [1], [2], [0, 0, 0, 1, 1, 2], [0], [0]>} : vector<2x8x8xf32>, vector<2x8x32xf32>, vector<2x8x32xf32> -> vector<2x8x32xf32>
    "tpu.trace_stop"() : () -> ()
    %441 = arith.addf %421, %440 : vector<2x8x32xf32>
    %442 = vector.shape_cast %41 : vector<1x32xf32> to vector<1x1x32xf32>
    %443 = vector.broadcast %442 : vector<1x1x32xf32> to vector<2x8x32xf32>
    %444 = arith.mulf %379, %443 : vector<2x8x32xf32>
    "tpu.trace_start"() <{level = 10 : i32, message = "bqd,bkd->bqk"}> : () -> ()
    %cst_118 = arith.constant dense<0.000000e+00> : vector<2x8x8xf32>
    %445 = tpu.matmul %378, %444, %cst_118 {dimension_numbers = #tpu.dot_dimension_numbers<[2], [2], [1], [1], [0, 0, 0, 1, 1, 1], [0], [0]>} : vector<2x8x32xf32>, vector<2x8x32xf32>, vector<2x8x8xf32> -> vector<2x8x8xf32>
    "tpu.trace_stop"() : () -> ()
    %446 = arith.addf %445, %11 : vector<2x8x8xf32>
    %cst_119 = arith.constant dense<0xFF800000> : vector<2x8xf32>
    %447 = vector.multi_reduction <maximumf>, %446, %cst_119 [2] : vector<2x8x8xf32> to vector<2x8xf32>
    %448 = vector.shape_cast %447 : vector<2x8xf32> to vector<2x8x1xf32>
    %449 = vector.broadcast %448 : vector<2x8x1xf32> to vector<2x8x8xf32>
    %450 = arith.subf %446, %449 : vector<2x8x8xf32>
    %451 = math.exp %450 : vector<2x8x8xf32>
    %cst_120 = arith.constant dense<0.000000e+00> : vector<2x8xf32>
    %452 = vector.multi_reduction <add>, %451, %cst_120 [2] : vector<2x8x8xf32> to vector<2x8xf32>
    %453 = vector.shape_cast %452 : vector<2x8xf32> to vector<2x8x1xf32>
    %454 = tpu.reciprocal %453 {approx = true} : vector<2x8x1xf32> -> vector<2x8x1xf32>
    %455 = vector.broadcast %454 : vector<2x8x1xf32> to vector<2x8x8xf32>
    %456 = arith.mulf %451, %455 : vector<2x8x8xf32>
    %457 = vector.shape_cast %41 : vector<1x32xf32> to vector<1x1x32xf32>
    %458 = vector.broadcast %457 : vector<1x1x32xf32> to vector<2x8x32xf32>
    %459 = arith.mulf %380, %458 : vector<2x8x32xf32>
    "tpu.trace_start"() <{level = 10 : i32, message = "bqk,bkd->bqd"}> : () -> ()
    %cst_121 = arith.constant dense<0.000000e+00> : vector<2x8x32xf32>
    %460 = tpu.matmul %456, %459, %cst_121 {dimension_numbers = #tpu.dot_dimension_numbers<[2], [1], [1], [2], [0, 0, 0, 1, 1, 2], [0], [0]>} : vector<2x8x8xf32>, vector<2x8x32xf32>, vector<2x8x32xf32> -> vector<2x8x32xf32>
    "tpu.trace_stop"() : () -> ()
    %461 = arith.addf %441, %460 : vector<2x8x32xf32>
    %462 = vector.shape_cast %461 : vector<2x8x32xf32> to vector<16x32xf32>
    %cst_122 = arith.constant dense<0.000000e+00> : vector<16x32xf32>
    %463 = tpu.matmul %462, %377, %cst_122 {dimension_numbers = #tpu.dot_dimension_numbers<[1], [0], [0], [1], [0, 0, 1, 1], [], []>} : vector<16x32xf32>, vector<32x32xf32>, vector<16x32xf32> -> vector<16x32xf32>
    %464 = vector.broadcast %351 : vector<1x32xf32> to vector<16x32xf32>
    %465 = arith.addf %463, %464 : vector<16x32xf32>
    %466 = arith.addf %345, %465 : vector<16x32xf32>
    %cst_123 = arith.constant dense<0.000000e+00> : vector<16xf32>
    %467 = vector.multi_reduction <add>, %466, %cst_123 [1] : vector<16x32xf32> to vector<16xf32>
    %468 = vector.shape_cast %467 : vector<16xf32> to vector<16x1xf32>
    %cst_124 = arith.constant 3.200000e+01 : f32
    %469 = vector.broadcast %cst_124 : f32 to vector<16x1xf32>
    %470 = arith.divf %468, %469 : vector<16x1xf32>
    %471 = vector.broadcast %470 : vector<16x1xf32> to vector<16x32xf32>
    %472 = arith.subf %466, %471 : vector<16x32xf32>
    %473 = arith.mulf %472, %472 : vector<16x32xf32>
    %cst_125 = arith.constant dense<0.000000e+00> : vector<16xf32>
    %474 = vector.multi_reduction <add>, %473, %cst_125 [1] : vector<16x32xf32> to vector<16xf32>
    %475 = vector.shape_cast %474 : vector<16xf32> to vector<16x1xf32>
    %cst_126 = arith.constant 3.200000e+01 : f32
    %476 = vector.broadcast %cst_126 : f32 to vector<16x1xf32>
    %477 = arith.divf %475, %476 : vector<16x1xf32>
    %478 = vector.broadcast %470 : vector<16x1xf32> to vector<16x32xf32>
    %479 = arith.subf %466, %478 : vector<16x32xf32>
    %cst_127 = arith.constant 9.99999974E-6 : f32
    %480 = vector.broadcast %cst_127 : f32 to vector<16x1xf32>
    %481 = arith.addf %477, %480 : vector<16x1xf32>
    %482 = math.rsqrt %481 : vector<16x1xf32>
    %483 = vector.broadcast %482 : vector<16x1xf32> to vector<16x32xf32>
    %484 = arith.mulf %479, %483 : vector<16x32xf32>
    %485 = vector.broadcast %358 : vector<1x32xf32> to vector<16x32xf32>
    %486 = arith.mulf %484, %485 : vector<16x32xf32>
    %487 = vector.broadcast %359 : vector<1x32xf32> to vector<16x32xf32>
    %488 = arith.addf %486, %487 : vector<16x32xf32>
    %c1_128 = arith.constant 1 : index
    %c0_129 = arith.constant 0 : index
    %c0_130 = arith.constant 0 : index
    %489 = vector.load %arg9[%c1_128, %c0_129, %c0_130] : memref<2x32x32xf32, #tpu.memory_space<vmem>>, vector<1x32x32xf32>
    %490 = vector.shape_cast %489 : vector<1x32x32xf32> to vector<32x32xf32>
    %cst_131 = arith.constant dense<0.000000e+00> : vector<16x32xf32>
    %491 = tpu.matmul %488, %490, %cst_131 {dimension_numbers = #tpu.dot_dimension_numbers<[1], [0], [0], [1], [0, 0, 1, 1], [], []>} : vector<16x32xf32>, vector<32x32xf32>, vector<16x32xf32> -> vector<16x32xf32>
    %492 = vector.broadcast %352 : vector<1x32xf32> to vector<16x32xf32>
    %493 = arith.addf %491, %492 : vector<16x32xf32>
    %494 = vector.extract_strided_slice %43 {offsets = [0, 256], sizes = [16, 32], strides = [1, 1]} : vector<16x512xf32> to vector<16x32xf32>
    %495 = vector.broadcast %353 : vector<1x32xf32> to vector<16x32xf32>
    %496 = arith.addf %494, %495 : vector<16x32xf32>
    %497 = vector.extract_strided_slice %43 {offsets = [0, 384], sizes = [16, 32], strides = [1, 1]} : vector<16x512xf32> to vector<16x32xf32>
    %498 = vector.broadcast %354 : vector<1x32xf32> to vector<16x32xf32>
    %499 = arith.addf %497, %498 : vector<16x32xf32>
    %c1_132 = arith.constant 1 : index
    %c0_133 = arith.constant 0 : index
    %c0_134 = arith.constant 0 : index
    %500 = vector.load %arg11[%c1_132, %c0_133, %c0_134] : memref<2x32x32xf32, #tpu.memory_space<vmem>>, vector<1x32x32xf32>
    %501 = vector.shape_cast %500 : vector<1x32x32xf32> to vector<32x32xf32>
    %502 = vector.shape_cast %493 : vector<16x32xf32> to vector<2x8x32xf32>
    %503 = vector.shape_cast %496 : vector<16x32xf32> to vector<2x8x32xf32>
    %504 = vector.shape_cast %499 : vector<16x32xf32> to vector<2x8x32xf32>
    %cst_135 = arith.constant 0.000000e+00 : f32
    %505 = vector.broadcast %cst_135 : f32 to vector<2x8x32xf32>
    %506 = vector.shape_cast %20 : vector<1x32xf32> to vector<1x1x32xf32>
    %507 = vector.broadcast %506 : vector<1x1x32xf32> to vector<2x8x32xf32>
    %508 = arith.mulf %503, %507 : vector<2x8x32xf32>
    "tpu.trace_start"() <{level = 10 : i32, message = "bqd,bkd->bqk"}> : () -> ()
    %cst_136 = arith.constant dense<0.000000e+00> : vector<2x8x8xf32>
    %509 = tpu.matmul %502, %508, %cst_136 {dimension_numbers = #tpu.dot_dimension_numbers<[2], [2], [1], [1], [0, 0, 0, 1, 1, 1], [0], [0]>} : vector<2x8x32xf32>, vector<2x8x32xf32>, vector<2x8x8xf32> -> vector<2x8x8xf32>
    "tpu.trace_stop"() : () -> ()
    %510 = arith.addf %509, %12 : vector<2x8x8xf32>
    %cst_137 = arith.constant dense<0xFF800000> : vector<2x8xf32>
    %511 = vector.multi_reduction <maximumf>, %510, %cst_137 [2] : vector<2x8x8xf32> to vector<2x8xf32>
    %512 = vector.shape_cast %511 : vector<2x8xf32> to vector<2x8x1xf32>
    %513 = vector.broadcast %512 : vector<2x8x1xf32> to vector<2x8x8xf32>
    %514 = arith.subf %510, %513 : vector<2x8x8xf32>
    %515 = math.exp %514 : vector<2x8x8xf32>
    %cst_138 = arith.constant dense<0.000000e+00> : vector<2x8xf32>
    %516 = vector.multi_reduction <add>, %515, %cst_138 [2] : vector<2x8x8xf32> to vector<2x8xf32>
    %517 = vector.shape_cast %516 : vector<2x8xf32> to vector<2x8x1xf32>
    %518 = tpu.reciprocal %517 {approx = true} : vector<2x8x1xf32> -> vector<2x8x1xf32>
    %519 = vector.broadcast %518 : vector<2x8x1xf32> to vector<2x8x8xf32>
    %520 = arith.mulf %515, %519 : vector<2x8x8xf32>
    %521 = vector.shape_cast %20 : vector<1x32xf32> to vector<1x1x32xf32>
    %522 = vector.broadcast %521 : vector<1x1x32xf32> to vector<2x8x32xf32>
    %523 = arith.mulf %504, %522 : vector<2x8x32xf32>
    "tpu.trace_start"() <{level = 10 : i32, message = "bqk,bkd->bqd"}> : () -> ()
    %cst_139 = arith.constant dense<0.000000e+00> : vector<2x8x32xf32>
    %524 = tpu.matmul %520, %523, %cst_139 {dimension_numbers = #tpu.dot_dimension_numbers<[2], [1], [1], [2], [0, 0, 0, 1, 1, 2], [0], [0]>} : vector<2x8x8xf32>, vector<2x8x32xf32>, vector<2x8x32xf32> -> vector<2x8x32xf32>
    "tpu.trace_stop"() : () -> ()
    %525 = arith.addf %505, %524 : vector<2x8x32xf32>
    %526 = vector.shape_cast %27 : vector<1x32xf32> to vector<1x1x32xf32>
    %527 = vector.broadcast %526 : vector<1x1x32xf32> to vector<2x8x32xf32>
    %528 = arith.mulf %503, %527 : vector<2x8x32xf32>
    "tpu.trace_start"() <{level = 10 : i32, message = "bqd,bkd->bqk"}> : () -> ()
    %cst_140 = arith.constant dense<0.000000e+00> : vector<2x8x8xf32>
    %529 = tpu.matmul %502, %528, %cst_140 {dimension_numbers = #tpu.dot_dimension_numbers<[2], [2], [1], [1], [0, 0, 0, 1, 1, 1], [0], [0]>} : vector<2x8x32xf32>, vector<2x8x32xf32>, vector<2x8x8xf32> -> vector<2x8x8xf32>
    "tpu.trace_stop"() : () -> ()
    %530 = arith.addf %529, %12 : vector<2x8x8xf32>
    %cst_141 = arith.constant dense<0xFF800000> : vector<2x8xf32>
    %531 = vector.multi_reduction <maximumf>, %530, %cst_141 [2] : vector<2x8x8xf32> to vector<2x8xf32>
    %532 = vector.shape_cast %531 : vector<2x8xf32> to vector<2x8x1xf32>
    %533 = vector.broadcast %532 : vector<2x8x1xf32> to vector<2x8x8xf32>
    %534 = arith.subf %530, %533 : vector<2x8x8xf32>
    %535 = math.exp %534 : vector<2x8x8xf32>
    %cst_142 = arith.constant dense<0.000000e+00> : vector<2x8xf32>
    %536 = vector.multi_reduction <add>, %535, %cst_142 [2] : vector<2x8x8xf32> to vector<2x8xf32>
    %537 = vector.shape_cast %536 : vector<2x8xf32> to vector<2x8x1xf32>
    %538 = tpu.reciprocal %537 {approx = true} : vector<2x8x1xf32> -> vector<2x8x1xf32>
    %539 = vector.broadcast %538 : vector<2x8x1xf32> to vector<2x8x8xf32>
    %540 = arith.mulf %535, %539 : vector<2x8x8xf32>
    %541 = vector.shape_cast %27 : vector<1x32xf32> to vector<1x1x32xf32>
    %542 = vector.broadcast %541 : vector<1x1x32xf32> to vector<2x8x32xf32>
    %543 = arith.mulf %504, %542 : vector<2x8x32xf32>
    "tpu.trace_start"() <{level = 10 : i32, message = "bqk,bkd->bqd"}> : () -> ()
    %cst_143 = arith.constant dense<0.000000e+00> : vector<2x8x32xf32>
    %544 = tpu.matmul %540, %543, %cst_143 {dimension_numbers = #tpu.dot_dimension_numbers<[2], [1], [1], [2], [0, 0, 0, 1, 1, 2], [0], [0]>} : vector<2x8x8xf32>, vector<2x8x32xf32>, vector<2x8x32xf32> -> vector<2x8x32xf32>
    "tpu.trace_stop"() : () -> ()
    %545 = arith.addf %525, %544 : vector<2x8x32xf32>
    %546 = vector.shape_cast %34 : vector<1x32xf32> to vector<1x1x32xf32>
    %547 = vector.broadcast %546 : vector<1x1x32xf32> to vector<2x8x32xf32>
    %548 = arith.mulf %503, %547 : vector<2x8x32xf32>
    "tpu.trace_start"() <{level = 10 : i32, message = "bqd,bkd->bqk"}> : () -> ()
    %cst_144 = arith.constant dense<0.000000e+00> : vector<2x8x8xf32>
    %549 = tpu.matmul %502, %548, %cst_144 {dimension_numbers = #tpu.dot_dimension_numbers<[2], [2], [1], [1], [0, 0, 0, 1, 1, 1], [0], [0]>} : vector<2x8x32xf32>, vector<2x8x32xf32>, vector<2x8x8xf32> -> vector<2x8x8xf32>
    "tpu.trace_stop"() : () -> ()
    %550 = arith.addf %549, %12 : vector<2x8x8xf32>
    %cst_145 = arith.constant dense<0xFF800000> : vector<2x8xf32>
    %551 = vector.multi_reduction <maximumf>, %550, %cst_145 [2] : vector<2x8x8xf32> to vector<2x8xf32>
    %552 = vector.shape_cast %551 : vector<2x8xf32> to vector<2x8x1xf32>
    %553 = vector.broadcast %552 : vector<2x8x1xf32> to vector<2x8x8xf32>
    %554 = arith.subf %550, %553 : vector<2x8x8xf32>
    %555 = math.exp %554 : vector<2x8x8xf32>
    %cst_146 = arith.constant dense<0.000000e+00> : vector<2x8xf32>
    %556 = vector.multi_reduction <add>, %555, %cst_146 [2] : vector<2x8x8xf32> to vector<2x8xf32>
    %557 = vector.shape_cast %556 : vector<2x8xf32> to vector<2x8x1xf32>
    %558 = tpu.reciprocal %557 {approx = true} : vector<2x8x1xf32> -> vector<2x8x1xf32>
    %559 = vector.broadcast %558 : vector<2x8x1xf32> to vector<2x8x8xf32>
    %560 = arith.mulf %555, %559 : vector<2x8x8xf32>
    %561 = vector.shape_cast %34 : vector<1x32xf32> to vector<1x1x32xf32>
    %562 = vector.broadcast %561 : vector<1x1x32xf32> to vector<2x8x32xf32>
    %563 = arith.mulf %504, %562 : vector<2x8x32xf32>
    "tpu.trace_start"() <{level = 10 : i32, message = "bqk,bkd->bqd"}> : () -> ()
    %cst_147 = arith.constant dense<0.000000e+00> : vector<2x8x32xf32>
    %564 = tpu.matmul %560, %563, %cst_147 {dimension_numbers = #tpu.dot_dimension_numbers<[2], [1], [1], [2], [0, 0, 0, 1, 1, 2], [0], [0]>} : vector<2x8x8xf32>, vector<2x8x32xf32>, vector<2x8x32xf32> -> vector<2x8x32xf32>
    "tpu.trace_stop"() : () -> ()
    %565 = arith.addf %545, %564 : vector<2x8x32xf32>
    %566 = vector.shape_cast %41 : vector<1x32xf32> to vector<1x1x32xf32>
    %567 = vector.broadcast %566 : vector<1x1x32xf32> to vector<2x8x32xf32>
    %568 = arith.mulf %503, %567 : vector<2x8x32xf32>
    "tpu.trace_start"() <{level = 10 : i32, message = "bqd,bkd->bqk"}> : () -> ()
    %cst_148 = arith.constant dense<0.000000e+00> : vector<2x8x8xf32>
    %569 = tpu.matmul %502, %568, %cst_148 {dimension_numbers = #tpu.dot_dimension_numbers<[2], [2], [1], [1], [0, 0, 0, 1, 1, 1], [0], [0]>} : vector<2x8x32xf32>, vector<2x8x32xf32>, vector<2x8x8xf32> -> vector<2x8x8xf32>
    "tpu.trace_stop"() : () -> ()
    %570 = arith.addf %569, %12 : vector<2x8x8xf32>
    %cst_149 = arith.constant dense<0xFF800000> : vector<2x8xf32>
    %571 = vector.multi_reduction <maximumf>, %570, %cst_149 [2] : vector<2x8x8xf32> to vector<2x8xf32>
    %572 = vector.shape_cast %571 : vector<2x8xf32> to vector<2x8x1xf32>
    %573 = vector.broadcast %572 : vector<2x8x1xf32> to vector<2x8x8xf32>
    %574 = arith.subf %570, %573 : vector<2x8x8xf32>
    %575 = math.exp %574 : vector<2x8x8xf32>
    %cst_150 = arith.constant dense<0.000000e+00> : vector<2x8xf32>
    %576 = vector.multi_reduction <add>, %575, %cst_150 [2] : vector<2x8x8xf32> to vector<2x8xf32>
    %577 = vector.shape_cast %576 : vector<2x8xf32> to vector<2x8x1xf32>
    %578 = tpu.reciprocal %577 {approx = true} : vector<2x8x1xf32> -> vector<2x8x1xf32>
    %579 = vector.broadcast %578 : vector<2x8x1xf32> to vector<2x8x8xf32>
    %580 = arith.mulf %575, %579 : vector<2x8x8xf32>
    %581 = vector.shape_cast %41 : vector<1x32xf32> to vector<1x1x32xf32>
    %582 = vector.broadcast %581 : vector<1x1x32xf32> to vector<2x8x32xf32>
    %583 = arith.mulf %504, %582 : vector<2x8x32xf32>
    "tpu.trace_start"() <{level = 10 : i32, message = "bqk,bkd->bqd"}> : () -> ()
    %cst_151 = arith.constant dense<0.000000e+00> : vector<2x8x32xf32>
    %584 = tpu.matmul %580, %583, %cst_151 {dimension_numbers = #tpu.dot_dimension_numbers<[2], [1], [1], [2], [0, 0, 0, 1, 1, 2], [0], [0]>} : vector<2x8x8xf32>, vector<2x8x32xf32>, vector<2x8x32xf32> -> vector<2x8x32xf32>
    "tpu.trace_stop"() : () -> ()
    %585 = arith.addf %565, %584 : vector<2x8x32xf32>
    %586 = vector.shape_cast %585 : vector<2x8x32xf32> to vector<16x32xf32>
    %cst_152 = arith.constant dense<0.000000e+00> : vector<16x32xf32>
    %587 = tpu.matmul %586, %501, %cst_152 {dimension_numbers = #tpu.dot_dimension_numbers<[1], [0], [0], [1], [0, 0, 1, 1], [], []>} : vector<16x32xf32>, vector<32x32xf32>, vector<16x32xf32> -> vector<16x32xf32>
    %588 = vector.broadcast %355 : vector<1x32xf32> to vector<16x32xf32>
    %589 = arith.addf %587, %588 : vector<16x32xf32>
    %590 = arith.addf %488, %589 : vector<16x32xf32>
    %cst_153 = arith.constant dense<0.000000e+00> : vector<16xf32>
    %591 = vector.multi_reduction <add>, %590, %cst_153 [1] : vector<16x32xf32> to vector<16xf32>
    %592 = vector.shape_cast %591 : vector<16xf32> to vector<16x1xf32>
    %cst_154 = arith.constant 3.200000e+01 : f32
    %593 = vector.broadcast %cst_154 : f32 to vector<16x1xf32>
    %594 = arith.divf %592, %593 : vector<16x1xf32>
    %595 = vector.broadcast %594 : vector<16x1xf32> to vector<16x32xf32>
    %596 = arith.subf %590, %595 : vector<16x32xf32>
    %597 = arith.mulf %596, %596 : vector<16x32xf32>
    %cst_155 = arith.constant dense<0.000000e+00> : vector<16xf32>
    %598 = vector.multi_reduction <add>, %597, %cst_155 [1] : vector<16x32xf32> to vector<16xf32>
    %599 = vector.shape_cast %598 : vector<16xf32> to vector<16x1xf32>
    %cst_156 = arith.constant 3.200000e+01 : f32
    %600 = vector.broadcast %cst_156 : f32 to vector<16x1xf32>
    %601 = arith.divf %599, %600 : vector<16x1xf32>
    %602 = vector.broadcast %594 : vector<16x1xf32> to vector<16x32xf32>
    %603 = arith.subf %590, %602 : vector<16x32xf32>
    %cst_157 = arith.constant 9.99999974E-6 : f32
    %604 = vector.broadcast %cst_157 : f32 to vector<16x1xf32>
    %605 = arith.addf %601, %604 : vector<16x1xf32>
    %606 = math.rsqrt %605 : vector<16x1xf32>
    %607 = vector.broadcast %606 : vector<16x1xf32> to vector<16x32xf32>
    %608 = arith.mulf %603, %607 : vector<16x32xf32>
    %609 = vector.broadcast %360 : vector<1x32xf32> to vector<16x32xf32>
    %610 = arith.mulf %608, %609 : vector<16x32xf32>
    %611 = vector.broadcast %361 : vector<1x32xf32> to vector<16x32xf32>
    %612 = arith.addf %610, %611 : vector<16x32xf32>
    %c1_158 = arith.constant 1 : index
    %c0_159 = arith.constant 0 : index
    %c0_160 = arith.constant 0 : index
    %613 = vector.load %arg12[%c1_158, %c0_159, %c0_160] : memref<2x32x64xf32, #tpu.memory_space<vmem>>, vector<1x32x64xf32>
    %614 = vector.shape_cast %613 : vector<1x32x64xf32> to vector<32x64xf32>
    %cst_161 = arith.constant dense<0.000000e+00> : vector<16x64xf32>
    %615 = tpu.matmul %612, %614, %cst_161 {dimension_numbers = #tpu.dot_dimension_numbers<[1], [0], [0], [1], [0, 0, 1, 1], [], []>} : vector<16x32xf32>, vector<32x64xf32>, vector<16x64xf32> -> vector<16x64xf32>
    %616 = vector.broadcast %356 : vector<1x64xf32> to vector<16x64xf32>
    %617 = arith.addf %615, %616 : vector<16x64xf32>
    %cst_162 = arith.constant 0.000000e+00 : f32
    %618 = vector.broadcast %cst_162 : f32 to vector<16x64xf32>
    %619 = arith.maximumf %617, %618 : vector<16x64xf32>
    %c1_163 = arith.constant 1 : index
    %c0_164 = arith.constant 0 : index
    %c0_165 = arith.constant 0 : index
    %620 = vector.load %arg13[%c1_163, %c0_164, %c0_165] : memref<2x64x32xf32, #tpu.memory_space<vmem>>, vector<1x64x32xf32>
    %621 = vector.shape_cast %620 : vector<1x64x32xf32> to vector<64x32xf32>
    %cst_166 = arith.constant dense<0.000000e+00> : vector<16x32xf32>
    %622 = tpu.matmul %619, %621, %cst_166 {dimension_numbers = #tpu.dot_dimension_numbers<[1], [0], [0], [1], [0, 0, 1, 1], [], []>} : vector<16x64xf32>, vector<64x32xf32>, vector<16x32xf32> -> vector<16x32xf32>
    %623 = vector.broadcast %357 : vector<1x32xf32> to vector<16x32xf32>
    %624 = arith.addf %622, %623 : vector<16x32xf32>
    %625 = arith.addf %612, %624 : vector<16x32xf32>
    %cst_167 = arith.constant dense<0.000000e+00> : vector<16xf32>
    %626 = vector.multi_reduction <add>, %625, %cst_167 [1] : vector<16x32xf32> to vector<16xf32>
    %627 = vector.shape_cast %626 : vector<16xf32> to vector<16x1xf32>
    %cst_168 = arith.constant 3.200000e+01 : f32
    %628 = vector.broadcast %cst_168 : f32 to vector<16x1xf32>
    %629 = arith.divf %627, %628 : vector<16x1xf32>
    %630 = vector.broadcast %629 : vector<16x1xf32> to vector<16x32xf32>
    %631 = arith.subf %625, %630 : vector<16x32xf32>
    %632 = arith.mulf %631, %631 : vector<16x32xf32>
    %cst_169 = arith.constant dense<0.000000e+00> : vector<16xf32>
    %633 = vector.multi_reduction <add>, %632, %cst_169 [1] : vector<16x32xf32> to vector<16xf32>
    %634 = vector.shape_cast %633 : vector<16xf32> to vector<16x1xf32>
    %cst_170 = arith.constant 3.200000e+01 : f32
    %635 = vector.broadcast %cst_170 : f32 to vector<16x1xf32>
    %636 = arith.divf %634, %635 : vector<16x1xf32>
    %637 = vector.broadcast %629 : vector<16x1xf32> to vector<16x32xf32>
    %638 = arith.subf %625, %637 : vector<16x32xf32>
    %cst_171 = arith.constant 9.99999974E-6 : f32
    %639 = vector.broadcast %cst_171 : f32 to vector<16x1xf32>
    %640 = arith.addf %636, %639 : vector<16x1xf32>
    %641 = math.rsqrt %640 : vector<16x1xf32>
    %642 = vector.broadcast %641 : vector<16x1xf32> to vector<16x32xf32>
    %643 = arith.mulf %638, %642 : vector<16x32xf32>
    %644 = vector.broadcast %362 : vector<1x32xf32> to vector<16x32xf32>
    %645 = arith.mulf %643, %644 : vector<16x32xf32>
    %646 = vector.broadcast %363 : vector<1x32xf32> to vector<16x32xf32>
    %647 = arith.addf %645, %646 : vector<16x32xf32>
    %c0_172 = arith.constant 0 : index
    %c0_173 = arith.constant 0 : index
    %648 = vector.load %arg15[%c0_172, %c0_173] : memref<16x32xf32, #tpu.memory_space<vmem>>, vector<16x32xf32>
    tpu.vector_store %arg15[%c0_172, %c0_173], %647 {strides = array<i32>} : memref<16x32xf32, #tpu.memory_space<vmem>>, vector<16x32xf32>,
    return
  }
  func.func @transform_0(%arg0: i32) -> (i32, i32) {
    %c0_i32 = arith.constant 0 : i32
    %c0_i32_0 = arith.constant 0 : i32
    %c0_i32_1 = arith.constant 0 : i32
    return %c0_i32, %c0_i32_0 : i32, i32
  }
  func.func @transform_1(%arg0: i32) -> (i32, i32) {
    %c0_i32 = arith.constant 0 : i32
    %c0_i32_0 = arith.constant 0 : i32
    %c0_i32_1 = arith.constant 0 : i32
    return %c0_i32, %c0_i32_0 : i32, i32
  }
  func.func @transform_2(%arg0: i32) -> (i32, i32) {
    %c0_i32 = arith.constant 0 : i32
    %c0_i32_0 = arith.constant 0 : i32
    %c0_i32_1 = arith.constant 0 : i32
    return %c0_i32, %c0_i32_0 : i32, i32
  }
  func.func @transform_3(%arg0: i32) -> (i32, i32) {
    %c0_i32 = arith.constant 0 : i32
    %c0_i32_0 = arith.constant 0 : i32
    %c0_i32_1 = arith.constant 0 : i32
    return %c0_i32, %c0_i32_0 : i32, i32
  }
  func.func @transform_4(%arg0: i32) -> (i32, i32, i32) {
    %c0_i32 = arith.constant 0 : i32
    %c0_i32_0 = arith.constant 0 : i32
    %c0_i32_1 = arith.constant 0 : i32
    %c0_i32_2 = arith.constant 0 : i32
    return %c0_i32, %c0_i32_0, %c0_i32_1 : i32, i32, i32
  }
  func.func @transform_5(%arg0: i32) -> (i32, i32, i32) {
    %c0_i32 = arith.constant 0 : i32
    %c0_i32_0 = arith.constant 0 : i32
    %c0_i32_1 = arith.constant 0 : i32
    %c0_i32_2 = arith.constant 0 : i32
    return %c0_i32, %c0_i32_0, %c0_i32_1 : i32, i32, i32
  }
  func.func @transform_6(%arg0: i32) -> (i32, i32, i32) {
    %c0_i32 = arith.constant 0 : i32
    %c0_i32_0 = arith.constant 0 : i32
    %c0_i32_1 = arith.constant 0 : i32
    %c0_i32_2 = arith.constant 0 : i32
    return %c0_i32, %c0_i32_0, %c0_i32_1 : i32, i32, i32
  }
  func.func @transform_7(%arg0: i32) -> (i32, i32, i32) {
    %c0_i32 = arith.constant 0 : i32
    %c0_i32_0 = arith.constant 0 : i32
    %c0_i32_1 = arith.constant 0 : i32
    %c0_i32_2 = arith.constant 0 : i32
    return %c0_i32, %c0_i32_0, %c0_i32_1 : i32, i32, i32
  }
  func.func @transform_8(%arg0: i32) -> (i32, i32, i32) {
    %c0_i32 = arith.constant 0 : i32
    %c0_i32_0 = arith.constant 0 : i32
    %c0_i32_1 = arith.constant 0 : i32
    %c0_i32_2 = arith.constant 0 : i32
    return %c0_i32, %c0_i32_0, %c0_i32_1 : i32, i32, i32
  }
  func.func @transform_9(%arg0: i32) -> (i32, i32) {
    %c0_i32 = arith.constant 0 : i32
    %c0_i32_0 = arith.constant 0 : i32
    %c0_i32_1 = arith.constant 0 : i32
    return %c0_i32, %c0_i32_0 : i32, i32
  }
  func.func @transform_10(%arg0: i32) -> (i32, i32, i32) {
    %c0_i32 = arith.constant 0 : i32
    %c0_i32_0 = arith.constant 0 : i32
    %c0_i32_1 = arith.constant 0 : i32
    %c0_i32_2 = arith.constant 0 : i32
    return %c0_i32, %c0_i32_0, %c0_i32_1 : i32, i32, i32
  }
  func.func @transform_11(%arg0: i32) -> (i32, i32, i32) {
    %c0_i32 = arith.constant 0 : i32
    %c0_i32_0 = arith.constant 0 : i32
    %c0_i32_1 = arith.constant 0 : i32
    %c0_i32_2 = arith.constant 0 : i32
    return %c0_i32, %c0_i32_0, %c0_i32_1 : i32, i32, i32
  }
  func.func @transform_12(%arg0: i32) -> (i32, i32, i32) {
    %c0_i32 = arith.constant 0 : i32
    %c0_i32_0 = arith.constant 0 : i32
    %c0_i32_1 = arith.constant 0 : i32
    %c0_i32_2 = arith.constant 0 : i32
    return %c0_i32, %c0_i32_0, %c0_i32_1 : i32, i32, i32
  }
  func.func @transform_13(%arg0: i32) -> (i32, i32, i32) {
    %c0_i32 = arith.constant 0 : i32
    %c0_i32_0 = arith.constant 0 : i32
    %c0_i32_1 = arith.constant 0 : i32
    %c0_i32_2 = arith.constant 0 : i32
    return %c0_i32, %c0_i32_0, %c0_i32_1 : i32, i32, i32
  }
  func.func @transform_14(%arg0: i32) -> (i32, i32) {
    %c0_i32 = arith.constant 0 : i32
    %c0_i32_0 = arith.constant 0 : i32
    %c0_i32_1 = arith.constant 0 : i32
    return %c0_i32, %c0_i32_0 : i32, i32
  }
}

</mosaic_0001>

<bundles_post_ra>
// kernel: decoder_forward.1
= control target key start
LH: loop header
LB: loop body
LE: loop exit
PB: predicated region body
PF: predicated region fallthrough
CT: control target
= control target key end

     0   :  { %19 = vsyncpa [#allocation3], 0  ;;  %s9614_s0 = inlined_call_operand.vmem [shape: s32[16,1], index: 0, kind: input, shape index: {}]   ;;  %s9615_s1 = inlined_call_operand.vmem [shape: f32[128,32], index: 1, kind: input, shape index: {}]   ;;  %s9616_s2 = inlined_call_operand.hbm [shape: f32[16,32], index: 2, kind: input, shape index: {}]   ;;  %s9617_s3 = inlined_call_operand.hbm [shape: f32[16,32], index: 3, kind: input, shape index: {}]   ;;  %s9618_s4 = inlined_call_operand.vmem [shape: f32[2,8,8], index: 4, kind: input, shape index: {}]   ;;  %s9619_s5 = inlined_call_operand.vmem [shape: f32[2,8,8], index: 5, kind: input, shape index: {}]   ;;  %s9620_s6 = inlined_call_operand.vmem [shape: f32[2,32,384], index: 6, kind: input, shape index: {}]   ;;  %s9621_s7 = inlined_call_operand.vmem [shape: f32[2,32,32], index: 7, kind: input, shape index: {}]   ;;  %s9622_s8 = inlined_call_operand.hbm [shape: f32[2,32,32], index: 8, kind: input, shape index: {}]   ;;  %s9623_s9 = inlined_call_operand.vmem [shape: f32[32,512], index: 9, kind: input, shape index: {}]   ;;  %s9624_s10 = inlined_call_operand.hbm [shape: f32[2,32,32], index: 10, kind: input, shape index: {}]   ;;  %s9625_s11 = inlined_call_operand.hbm [shape: f32[2,32,64], index: 11, kind: input, shape index: {}]   ;;  %s9626_s12 = inlined_call_operand.vmem [shape: f32[2,64,32], index: 12, kind: input, shape index: {}]   ;;  %s9627_s13 = inlined_call_operand.hbm [shape: f32[2,16,128], index: 13, kind: input, shape index: {}]   ;;  %s9628_s14 = inlined_call_operand.hbm [shape: f32[16,32], index: 14, kind: output, shape index: {}]  }
   0x1   :  { %20 = vsyncpa [#allocation6], 0 }
   0x2   :  { %21 = vsyncpa [#allocation9], 0 }
   0x3   :  { %22 = vsyncpa [#allocation12], 0 }
   0x4   :  { %23 = vsyncpa [#allocation4], 0  ;;  %s8360_s29 = smov [#allocation5]   ;;  %s8361_s15 = smov [#allocation8]  }
   0x5   :  { %s45_s30 = sshll.u32 %s8360_s29, 4  ;;  %s79_s16 = sshll.u32 %s8361_s15, 4  ;;  %s46_s30 = int_to_ptr.vmem [resolvable:$true] %s45_s30  ;;  %s80_s16 = int_to_ptr.vmem [resolvable:$true] %s79_s16 }
   0x6   :  { %s8218_s17 = scalar_lea.vmem %s46_s30, 256  ;;  %p8223_p1 = scmp.lt.s32.totalorder %s46_s30, %s46_s30 }
   0x7   :  { %p8219_p0 = scmp.ne.s32.totalorder %s46_s30, %s8218_s17  ;;  %p8224_p2 = scmp.lt.s32.totalorder %s8218_s17, %s8218_s17 }
   0x9   :  { %p8225_p3 = por %p8224_p2, %p8223_p1 }
   0xb   :  { %p8226_p4 = pnand %p8225_p3, %p8219_p0 }
   0xd   :  { %8229 = shalt.err (!%p8226_p4)
}
   0xe   :  { %s8362_s18 = smov 128   ;;  %s8363_s19 = smov 8  }
   0xf   :  { %51 = dma.hbm_to_vmem [thread:$0]  %s9617_s3, 256, %s46_s30, [#allocation6], %s8362_s18, %s8362_s18, %s8363_s19  }
  0x10   :  { %s8238_s22 = scalar_lea.vmem %s80_s16, 1024  ;;  %p8243_p6 = scmp.lt.s32.totalorder %s80_s16, %s80_s16 }
  0x11   :  { %p8239_p5 = scmp.ne.s32.totalorder %s80_s16, %s8238_s22  ;;  %p8244_p7 = scmp.lt.s32.totalorder %s8238_s22, %s8238_s22 }
  0x13   :  { %p8245_p8 = por %p8244_p7, %p8243_p6 }
  0x15   :  { %p8246_p9 = pnand %p8245_p8, %p8239_p5 }
  0x17   :  { %8249 = shalt.err (!%p8246_p9)
}
  0x18   :  { %85 = dma.hbm_to_vmem [thread:$0]  %s9624_s10, 1024, %s80_s16, [#allocation9], %s8362_s18, %s8362_s18, %s8363_s19  }
  0x19   :  { %s8364_s25 = smov [#allocation2]   ;;  %s8365_s27 = smov [#allocation7]  }
  0x1a   :  { %s33_s26 = sshll.u32 %s8364_s25, 4  ;;  %s65_s28 = sshll.u32 %s8365_s27, 4  ;;  %s34_s26 = int_to_ptr.vmem [resolvable:$true] %s33_s26  ;;  %s66_s28 = int_to_ptr.vmem [resolvable:$true] %s65_s28 }
  0x1b   :  { %s8258_s3 = scalar_lea.vmem %s34_s26, 256  ;;  %p8263_p11 = scmp.lt.s32.totalorder %s34_s26, %s34_s26 }
  0x1c   :  { %p8259_p10 = scmp.ne.s32.totalorder %s34_s26, %s8258_s3  ;;  %p8264_p12 = scmp.lt.s32.totalorder %s8258_s3, %s8258_s3 }
  0x1e   :  { %p8265_p13 = por %p8264_p12, %p8263_p11 }
  0x20   :  { %p8266_p0 = pnand %p8265_p13, %p8259_p10 }
  0x22   :  { %8269 = shalt.err (!%p8266_p0)
}
  0x23   :  { %39 = dma.hbm_to_vmem [thread:$0]  %s9616_s2, 256, %s34_s26, [#allocation3], %s8362_s18, %s8362_s18, %s8363_s19  }
  0x24   :  { %s8278_s10 = scalar_lea.vmem %s66_s28, 1024  ;;  %p8283_p2 = scmp.lt.s32.totalorder %s66_s28, %s66_s28 }
  0x25   :  { %p8279_p1 = scmp.ne.s32.totalorder %s66_s28, %s8278_s10  ;;  %p8284_p3 = scmp.lt.s32.totalorder %s8278_s10, %s8278_s10 }
  0x27   :  { %p8285_p4 = por %p8284_p3, %p8283_p2 }
  0x29   :  { %p8286_p5 = pnand %p8285_p4, %p8279_p1 }
  0x2b   :  { %8289 = shalt.err (!%p8286_p5)
}
  0x2c   :  { %71 = dma.hbm_to_vmem [thread:$0]  %s9622_s8, 1024, %s66_s28, [#allocation6], %s8362_s18, %s8362_s18, %s8363_s19  }
  0x2d   :  { %s8366_s17 = smov [#allocation10]   ;;  %s8367_s21 = smov [#allocation11]  }
  0x2e   :  { %s91_s20 = sshll.u32 %s8366_s17, 4  ;;  %s105_s22 = sshll.u32 %s8367_s21, 4  ;;  %s92_s20 = int_to_ptr.vmem [resolvable:$true] %s91_s20  ;;  %s106_s22 = int_to_ptr.vmem [resolvable:$true] %s105_s22 }
  0x2f   :  { %s8298_s2 = scalar_lea.vmem %s92_s20, 1024  ;;  %p8303_p7 = scmp.lt.s32.totalorder %s92_s20, %s92_s20 }
  0x30   :  { %p8299_p6 = scmp.ne.s32.totalorder %s92_s20, %s8298_s2  ;;  %p8304_p8 = scmp.lt.s32.totalorder %s8298_s2, %s8298_s2 }
  0x32   :  { %p8305_p9 = por %p8304_p8, %p8303_p7 }
  0x34   :  { %p8306_p10 = pnand %p8305_p9, %p8299_p6 }
  0x36   :  { %8309 = shalt.err (!%p8306_p10)
}
  0x37   :  { %97 = dma.hbm_to_vmem [thread:$0]  %s9625_s11, 1024, %s92_s20, [#allocation9], %s8362_s18, %s8362_s18, %s8363_s19  }
  0x38   :  { %s8318_s8 = scalar_lea.vmem %s106_s22, 512  ;;  %p8323_p12 = scmp.lt.s32.totalorder %s106_s22, %s106_s22 }
  0x39   :  { %p8319_p11 = scmp.ne.s32.totalorder %s106_s22, %s8318_s8  ;;  %p8324_p13 = scmp.lt.s32.totalorder %s8318_s8, %s8318_s8 }
  0x3b   :  { %p8325_p0 = por %p8324_p13, %p8323_p12 }
  0x3d   :  { %p8326_p1 = pnand %p8325_p0, %p8319_p11 }
  0x3f   :  { %8329 = shalt.err (!%p8326_p1)
}
  0x40   :  { %111 = dma.hbm_to_vmem [thread:$0]  %s9627_s13, 512, %s106_s22, [#allocation12], %s8362_s18, %s8362_s18, %s8363_s19  }
  0x41   :  { %8350 = dma.done.wait [#allocation3], 256  }
  0x42   :  { %8351 = vsyncadd [#allocation3], 4294967040 }
  0x43   :  { %8352 = dma.done.wait [#allocation6], 1280  }
  0x44   :  { %8353 = vsyncadd [#allocation6], 4294966016 }
  0x45   :  { %8354 = dma.done.wait [#allocation9], 2048  }
  0x46   :  { %8355 = vsyncadd [#allocation9], 4294965248 }
  0x47   :  { %8356 = dma.done.wait [#allocation12], 512  }
  0x48   :  { %8357 = vsyncadd [#allocation12], 4294966784  ;;  %v8368_v0 = vmov 0   ;;  %v130_v1 = vld [vmem:[%s9614_s0] sm:$0xff]  ;;  %v161_v2 = vld [vmem:[%s9615_s1 + $0x78] sm:$0xff]  ;;  %v8369_v6 = vmov 0.0   ;;  %v132_v41 = vlaneseq }
  0x49   :  { %8050 = vset.pattern.permute.xlu0 %v8368_v0  ;;  %7534 = vmatprep.subr.mxu0 %v161_v2  ;;  %v160_v3 = vld [vmem:[%s9615_s1 + $0x70] sm:$0xff]  ;;  %v131_v4 = vld [vmem:[%s9614_s0 + $0x8] sm:$0xff]  ;;  %v158_v7 = vld [vmem:[%s9615_s1 + $0x60] sm:$0xff]  ;;  %vm281_vm0 = vcmask 261120   ;;  %v8370_v44 = vmov 1.0   ;;  %vm8371_vm3 = vmmov 0  }
  0x4a   :  { %135 = vperm.xlu0 %8050, %v130_v1   ;;  %7535 = vmatpush3.msra.mxu0 %v161_v2  ;;  %v159_v5 = vld [vmem:[%s9615_s1 + $0x68] sm:$0xff]  ;;  %v157_v8 = vld [vmem:[%s9615_s1 + $0x58] sm:$0xff]  ;;  %v277_v10 = vld [vmem:[%s9623_s9 + $0x60] sm:$0xff]  ;;  %v8605_v42 = vand.u32 127, %v132_v41  ;;  %v8629_v53 = vshrl.u32 %v132_v41, 7  ;;  %vm790_vm8 = vcmask 64512  }
  0x4b   :  { %7536 = vmatprep.subr.mxu0 %v160_v3  ;;  %352 = vmatprep.mubr.f32.mxu1 %v8369_v6  ;;  %v278_v9 = vld [vmem:[%s9623_s9 + $0x68] sm:$0xff]  ;;  %v273_v12 = vld [vmem:[%s9623_s9 + $0x40] sm:$0xff]  ;;  %v156_v13 = vld [vmem:[%s9615_s1 + $0x50] sm:$0xff]  ;;  %vm3660_vm15 = vcmask 523264  }
  0x4c   :  { %7537 = vmatpush3.msra.mxu0 %v160_v3  ;;  %v274_v11 = vld [vmem:[%s9623_s9 + $0x48] sm:$0xff]  ;;  %312 = vmatprep.subr.mxu1 %v278_v9  ;;  %v269_v15 = vld [vmem:[%s9623_s9 + $0x20] sm:$0xff]  ;;  %v239_v20 = vld [vmem:[#allocation5] sm:$0xff]  ;;  %v8636_v56 = vsub.s32 5, %v8629_v53  ;;  %vm246_vm4 = vcmp.lt.s32.totalorder %v8605_v42, 8  ;;  %vm250_vm5 = vcmp.ge.s32.totalorder %v8605_v42, 8 }
  0x4d   :  { %7538 = vmatprep.subr.mxu0 %v159_v5  ;;  %313 = vmatpush1.msra.mxu1 %v277_v10  ;;  %v270_v14 = vld [vmem:[%s9623_s9 + $0x28] sm:$0xff]  ;;  %v265_v18 = vld [vmem:[%s9623_s9] sm:$0xff]  ;;  %v280_v21 = vld [vmem:[%s9623_s9 + $0x78] sm:$0xff]  ;;  %vm251_vm6 = vcmp.lt.s32.totalorder %v8605_v42, 16  ;;  %vm255_vm9 = vcmp.ge.s32.totalorder %v8605_v42, 16  ;;  %vm256_vm10 = vcmp.lt.s32.totalorder %v8605_v42, 24 }
  0x4e   :  { %138 = vperm.xlu0 %8050, %v131_v4   ;;  %7539 = vmatpush3.msra.mxu0 %v159_v5  ;;  %v155_v16 = vld [vmem:[%s9615_s1 + $0x48] sm:$0xff]  ;;  %v154_v19 = vld [vmem:[%s9615_s1 + $0x40] sm:$0xff]  ;;  %v153_v22 = vld [vmem:[%s9615_s1 + $0x38] sm:$0xff]  ;;  %vm260_vm12 = vcmp.ge.s32.totalorder %v8605_v42, 24  ;;  %vm261_vm13 = vcmp.lt.s32.totalorder %v8605_v42, 32 }
  0x4f   :  { %7540 = vmatprep.subr.mxu0 %v158_v7  ;;  %314 = vmatprep.subr.mxu1 %v274_v11  ;;  %v266_v17 = vld [vmem:[%s9623_s9 + $0x8] sm:$0xff]  ;;  %v279_v23 = vld [vmem:[%s9623_s9 + $0x70] sm:$0xff]  ;;  %v276_v24 = vld [vmem:[%s9623_s9 + $0x58] sm:$0xff] }
  0x50   :  { %7541 = vmatpush3.msra.mxu0 %v158_v7  ;;  %315 = vmatpush1.msra.mxu1 %v273_v12  ;;  %v152_v25 = vld [vmem:[%s9615_s1 + $0x30] sm:$0xff]  ;;  %v151_v27 = vld [vmem:[%s9615_s1 + $0x28] sm:$0xff]  ;;  %v240_v28 = vld [vmem:[#allocation5 + $0x8] sm:$0xff] }
  0x51   :  { %7542 = vmatprep.subr.mxu0 %v157_v8  ;;  %316 = vmatprep.subr.mxu1 %v270_v14  ;;  %v275_v26 = vld [vmem:[%s9623_s9 + $0x50] sm:$0xff]  ;;  %v272_v29 = vld [vmem:[%s9623_s9 + $0x38] sm:$0xff]  ;;  %v150_v30 = vld [vmem:[%s9615_s1 + $0x20] sm:$0xff] }
  0x52   :  { %7543 = vmatpush3.msra.mxu0 %v157_v8  ;;  %317 = vmatpush1.msra.mxu1 %v269_v15  ;;  %v271_v31 = vld [vmem:[%s9623_s9 + $0x30] sm:$0xff]  ;;  %v268_v32 = vld [vmem:[%s9623_s9 + $0x18] sm:$0xff]  ;;  %v147_v37 = vld [vmem:[%s9615_s1 + $0x8] sm:$0xff] }
  0x53   :  { %7544 = vmatprep.subr.mxu0 %v156_v13  ;;  %318 = vmatprep.subr.mxu1 %v266_v17  ;;  %v149_v33 = vld [vmem:[%s9615_s1 + $0x18] sm:$0xff]  ;;  %v267_v34 = vld [vmem:[%s9623_s9 + $0x10] sm:$0xff]  ;;  %v453_v38 = vld [vmem:[%s9620_s6 + $0x48] sm:$0xff]  ;;  %v8692_v17 = vsub.s32 0, %v8629_v53 }
  0x54   :  { %7545 = vmatpush3.msra.mxu0 %v156_v13  ;;  %319 = vmatpush1.msra.mxu1 %v265_v18  ;;  %v148_v35 = vld [vmem:[%s9615_s1 + $0x10] sm:$0xff]  ;;  %v146_v39 = vld [vmem:[%s9615_s1] sm:$0xff]  ;;  %v451_v40 = vld [vmem:[%s9620_s6 + $0x38] sm:$0xff]  ;;  %v8685_v13 = vsub.s32 1, %v8629_v53 }
  0x55   :  { %7546 = vmatprep.subr.mxu0 %v155_v16  ;;  %7156 = vmatmul.mubr.msk.f32.vlgmr.msra.gmra.mxu1 %vm281_vm0, %v239_v20  ;;  %v454_v36 = vld [vmem:[%s9620_s6 + $0x50] sm:$0xff]  ;;  %v448_v47 = vld [vmem:[%s9620_s6 + $0x20] sm:$0xff]  ;;  %v447_v48 = vld [vmem:[%s9620_s6 + $0x18] sm:$0xff] }
  0x56   :  { %7547 = vmatpush3.msra.mxu0 %v155_v16  ;;  %389 = vmatprep.subr.mxu1 %v280_v21  ;;  %v450_v46 = vld [vmem:[%s9620_s6 + $0x30] sm:$0xff]  ;;  %v445_v49 = vld [vmem:[%s9620_s6 + $0x8] sm:$0xff]  ;;  %v444_v50 = vld [vmem:[%s9620_s6] sm:$0xff] }
  0x57   :  { %7548 = vmatprep.subr.mxu0 %v154_v19  ;;  %390 = vmatpush1.msra.mxu1 %v279_v23  ;;  %v455_v51 = vld [vmem:[%s9620_s6 + $0x58] sm:$0xff]  ;;  %v8633_v55 = vld [vmem:[#allocation11] sm:$0xff]  ;;  %v3783_v62 = vld [vmem:[#allocation11 + $0x10] sm:$0xff] }
  0x58   :  { %7549 = vmatpush3.msra.mxu0 %v154_v19  ;;  %391 = vmatprep.subr.mxu1 %v276_v24  ;;  %v8640_v57 = vrot.slane %v8633_v55, %v8636_v56  ;;  %v8652_v0 = vrot.slane %v3783_v62, %v8636_v56  ;;  %v162_v4 = vld [vmem:[#allocation2] sm:$0xff]  ;;  %v163_v8 = vld [vmem:[#allocation2 + $0x8] sm:$0xff]  ;;  %v446_v12 = vld [vmem:[%s9620_s6 + $0x10] sm:$0xff]  ;;  %v623_v15 = vrot.slane %v8633_v55, %v8685_v13  ;;  %v8707_v24 = vsub.s32 2, %v8629_v53 }
  0x59   :  { %7550 = vmatprep.subr.mxu0 %v153_v22  ;;  %358 = vmatprep.mubr.f32.mxu1 %v8369_v6  ;;  %v452_v9 = vld [vmem:[%s9620_s6 + $0x40] sm:$0xff]  ;;  %v449_v10 = vld [vmem:[%s9620_s6 + $0x28] sm:$0xff]  ;;  %v617_v21 = vrot.slane %v8633_v55, %v8692_v17  ;;  %vm252_vm7 = vmand %vm250_vm5, %vm251_vm6 }
  0x5a   :  { %7551 = vmatpush3.msra.mxu0 %v153_v22  ;;  %392 = vmatpush1.msra.mxu1 %v275_v26  ;;  %vm257_vm11 = vmand %vm255_vm9, %vm256_vm10 }
  0x5b   :  { %7552 = vmatprep.subr.mxu0 %v152_v25  ;;  %7157 = vmatmul.mubr.msk.f32.gmra.mxu1 %vm281_vm0, %v240_v28  ;;  %vm262_vm14 = vmand %vm260_vm12, %vm261_vm13 }
  0x5c   :  { %7553 = vmatpush3.msra.mxu0 %v152_v25  ;;  %393 = vmatprep.subr.mxu1 %v272_v29 }
  0x5d   :  { %7554 = vmatprep.subr.mxu0 %v151_v27  ;;  %394 = vmatpush1.msra.mxu1 %v271_v31 }
  0x5e   :  { %7555 = vmatpush3.msra.mxu0 %v151_v27  ;;  %395 = vmatprep.subr.mxu1 %v268_v32  ;;  %v8713_v27 = vsel %vm252_vm7, 1.0, %v8369_v6  ;;  %v629_v32 = vrot.slane %v8633_v55, %v8707_v24 }
  0x5f   :  { %7556 = vmatprep.subr.mxu0 %v150_v30  ;;  %396 = vmatpush1.msra.mxu1 %v267_v34 }
  0x60   :  { %7557 = vmatpush3.msra.mxu0 %v150_v30  ;;  %429 = vmatprep.mubr.f32.mxu1 %v8369_v6 }
  0x61   :  { %7558 = vmatprep.subr.mxu0 %v149_v33  ;;  %7158 = vmatmul.mubr.msk.f32.vlgmr.msra.gmra.mxu1 %vm281_vm0, %v239_v20  ;;  %v8700_v20 = vsel %vm246_vm4, 1.0, %v8369_v6 }
  0x62   :  { %7559 = vmatpush3.msra.mxu0 %v149_v33  ;;  %486 = vmatprep.subr.mxu1 %v454_v36 }
  0x63   :  { %7560 = vmatprep.subr.mxu0 %v148_v35  ;;  %435 = vmatprep.mubr.f32.mxu1 %v8369_v6 }
  0x64   :  { %7561 = vmatpush3.msra.mxu0 %v148_v35  ;;  %487 = vmatpush1.msra.mxu1 %v453_v38 }
  0x65   :  { %7562 = vmatprep.subr.mxu0 %v147_v37  ;;  %7159 = vmatmul.mubr.msk.f32.gmra.mxu1 %vm281_vm0, %v240_v28 }
  0x66   :  { %7563 = vmatpush3.msra.mxu0 %v147_v37  ;;  %488 = vmatprep.subr.mxu1 %v451_v40  ;;  %v8763_v40 = vld [vmem:[%s9618_s4] sm:$0xff] }
  0x67   :  { %7564 = vmatprep.subr.mxu0 %v146_v39  ;;  %526 = vmatprep.mubr.f32.mxu1 %v8369_v6 }
  0x68   :  { %7565 = vmatpush3.msra.mxu0 %v146_v39  ;;  %489 = vmatpush1.msra.mxu1 %v450_v46 }
  0x69   :  { %7580 = vmatprep.subr.mxu0 %v8369_v6  ;;  %490 = vmatprep.subr.mxu1 %v448_v47 }
  0x6a   :  { %491 = vmatpush1.msra.mxu1 %v447_v48 }
  0x6b   :  { %492 = vmatprep.subr.mxu1 %v445_v49 }
  0x6c   :  { %493 = vmatpush1.msra.mxu1 %v444_v50 }
  0x6d   :  { %7569 = vmatprep.subr.mxu1 %v455_v51 }
  0xc5   :  { %v136_v43 = vpop.permute.xlu0 %135 }
  0xc6   :  { %vm140_vm1 = vcmp.eq.s32.totalorder %v8605_v42, %v136_v43 }
  0xc7   :  { %7566 = vmatprep.mubr.msk.f32.mxu0 %vm140_vm1, %v8370_v44 }
  0xc9   :  { %v139_v45 = vpop.permute.xlu0 %138 }
  0xca   :  { %vm141_vm2 = vcmp.eq.s32.totalorder %v8605_v42, %v139_v45 }
  0xcb   :  { %7567 = vmatmul.mubr.msk.f32.vlgmr.msra.gmra.mxu0 %vm141_vm2, %v8370_v44 }
  0xcc   :  { %7582 = vmatprep.mubr.msk.f32.mxu0 %vm8371_vm3, %v8369_v6 }
 0x115   :  { %v8627_v52 = vpop.f32.mrf.mxu1 }
 0x117   :  { %v8631_v54 = vpop.f32.mrf.mxu1 }
 0x11b   :  { %v360_v58 = vpop.f32.mrf.mxu1 }
 0x11c   :  { %v8643_v59 = vadd.f32 %v8640_v57, %v360_v58  ;;  %v8772_v58 = vld [vmem:[%s9618_s4 + $0x8] sm:$0xff] }
 0x11d   :  { %v8645_v60 = vpop.f32.mrf.mxu1 }
 0x121   :  { %v8647_v61 = vpop.f32.mrf.mxu1 }
 0x123   :  { %v8649_v63 = vpop.f32.mrf.mxu1 }
 0x125   :  { %v437_v1 = vpop.f32.mrf.mxu1 }
 0x126   :  { %v8655_v2 = vadd.f32 %v8652_v0, %v437_v1 }
 0x127   :  { %v8687_v14 = vpop.f32.mrf.mxu1 }
 0x18b   :  { %v7568_v3 = vpop.f32.mrf.mxu0 }
 0x18c   :  { %v8668_v11 = vadd.f32 %v7568_v3, %v163_v8 }
 0x18d   :  { %v230_v5 = vpop.f32.mrf.mxu0 }
 0x18e   :  { %v8657_v7 = vadd.f32 %v230_v5, %v162_v4 }
 0x190   :  { %7160 = vmatmul.mubr.msk.f32.vlgmr.msra.gmra.mxu1 %vm281_vm0, %v8657_v7 }
 0x191   :  { %7570 = vmatpush3.msra.mxu1 %v455_v51  ;;  %532 = vmatprep.mubr.f32.mxu1 %v8369_v6 }
 0x192   :  { %7571 = vmatprep.subr.mxu1 %v452_v9 }
 0x193   :  { %7572 = vmatpush3.msra.mxu1 %v452_v9 }
 0x194   :  { %7161 = vmatmul.mubr.msk.f32.gmra.mxu1 %vm281_vm0, %v8668_v11  ;;  %7573 = vmatprep.subr.mxu1 %v449_v10 }
 0x195   :  { %7574 = vmatpush3.msra.mxu1 %v449_v10  ;;  %7577 = vmatprep.mubr.msk.f32.mxu1 %vm281_vm0, %v8657_v7 }
 0x196   :  { %7575 = vmatprep.subr.mxu1 %v446_v12 }
 0x197   :  { %7576 = vmatpush3.msra.mxu1 %v446_v12 }
 0x198   :  { %7578 = vmatmul.mubr.msk.f32.vlgmr.msra.gmra.mxu1 %vm281_vm0, %v8668_v11  ;;  %7585 = vmatprep.subr.mxu1 %v8369_v6 }
 0x199   :  { %7587 = vmatprep.mubr.msk.f32.mxu1 %vm8371_vm3, %v8369_v6 }
 0x250   :  { %v528_v16 = vpop.f32.mrf.mxu1 }
 0x251   :  { %v8715_v28 = vadd.f32 %v617_v21, %v528_v16 }
 0x252   :  { %v530_v18 = vpop.f32.mrf.mxu1 }
 0x253   :  { %v8697_v19 = vadd.f32 %v623_v15, %v530_v18 }
 0x254   :  { %v534_v22 = vpop.f32.mrf.mxu1 }
 0x255   :  { %v636_v23 = vmul.f32 %v8700_v20, %v8697_v19  ;;  %v815_v30 = vmul.f32 %v8713_v27, %v8697_v19  ;;  %v8730_v35 = vadd.f32 %v617_v21, %v534_v22 }
 0x256   :  { %v536_v25 = vpop.f32.mrf.mxu1 }
 0x257   :  { %v8709_v26 = vadd.f32 %v623_v15, %v536_v25  ;;  %7581 = vmatpush3.xpose.msk.msra.mxu0 %vm281_vm0, %v636_v23 }
 0x258   :  { %v7579_v29 = vpop.f32.mrf.mxu1  ;;  %7590 = vmatprep.subr.mxu0 %v8369_v6 }
 0x259   :  { %v637_v31 = vmul.f32 %v8700_v20, %v8709_v26  ;;  %v816_v36 = vmul.f32 %v8713_v27, %v8709_v26  ;;  %v8737_v37 = vadd.f32 %v7579_v29, %v629_v32 }
 0x25a   :  { %v605_v33 = vpop.f32.mrf.mxu1  ;;  %7583 = vmatmul.mubr.msk.f32.vlgmr.msra.gmra.mxu0 %vm281_vm0, %v8715_v28 }
 0x25b   :  { %v8726_v34 = vadd.f32 %v629_v32, %v605_v33  ;;  %7586 = vmatpush3.xpose.msk.msra.mxu1 %vm281_vm0, %v637_v31  ;;  %7591 = vmatpush3.xpose.msk.msra.mxu0 %vm281_vm0, %v815_v30  ;;  %v986_v39 = vmul.f32 %v8713_v27, %v8737_v37 }
 0x25c   :  { %7592 = vmatprep.mubr.msk.f32.mxu0 %vm8371_vm3, %v8369_v6  ;;  %7595 = vmatprep.subr.mxu1 %v8369_v6 }
 0x25d   :  { %7600 = vmatprep.subr.mxu0 %v8369_v6  ;;  %v985_v38 = vmul.f32 %v8713_v27, %v8726_v34 }
 0x25e   :  { %7588 = vmatmul.mubr.msk.f32.vlgmr.msra.gmra.mxu1 %vm281_vm0, %v8730_v35  ;;  %7593 = vmatmul.mubr.msk.f32.vlgmr.msra.gmra.mxu0 %vm281_vm0, %v8715_v28 }
 0x25f   :  { %7596 = vmatpush3.xpose.msk.msra.mxu1 %vm281_vm0, %v816_v36  ;;  %7601 = vmatpush3.msra.mxu0 %v985_v38 }
 0x260   :  { %7597 = vmatprep.mubr.msk.f32.mxu1 %vm8371_vm3, %v8369_v6  ;;  %7605 = vmatprep.subr.mxu1 %v8369_v6 }
 0x261   :  { %7602 = vmatprep.mubr.msk.f32.mxu0 %vm8371_vm3, %v8369_v6  ;;  %7610 = vmatprep.subr.mxu0 %v8369_v6 }
 0x262   :  { %7598 = vmatmul.mubr.msk.f32.vlgmr.msra.gmra.mxu1 %vm281_vm0, %v8730_v35 }
 0x263   :  { %7606 = vmatpush3.msra.mxu1 %v986_v39  ;;  %7607 = vmatprep.mubr.msk.f32.mxu1 %vm8371_vm3, %v8369_v6 }
 0x264   :  { %7615 = vmatprep.subr.mxu1 %v8369_v6 }
 0x31a   :  { %v710_v41 = vpop.f32.mrf.mxu0 }
 0x31b   :  { %v711_v43 = vadd.f32 %v710_v41, %v8763_v40 }
 0x31c   :  { %v7584_v44 = vpop.f32.mrf.mxu0 }
 0x31d   :  { %v791_v45 = vsel %vm790_vm8, %v711_v43, -inf }
 0x31e   :  { %792 = vmax.xlane.f32.xlu0 %v791_v45  ;;  %v786_v46 = vpop.f32.mrf.mxu1  ;;  %v886_v47 = vpop.f32.mrf.mxu0 }
 0x31f   :  { %v887_v48 = vadd.f32 %v886_v47, %v8763_v40  ;;  %v787_v4 = vadd.f32 %v786_v46, %v8772_v58 }
 0x320   :  { %v7589_v49 = vpop.f32.mrf.mxu1  ;;  %v7594_v50 = vpop.f32.mrf.mxu0 }
 0x321   :  { %v963_v51 = vsel %vm790_vm8, %v887_v48, -inf  ;;  %v794_v8 = vsel %vm790_vm8, %v787_v4, -inf }
 0x322   :  { %964 = vmax.xlane.f32.xlu1 %v963_v51  ;;  %v959_v62 = vpop.f32.mrf.mxu1  ;;  %v813_v51 = vmul.f32 %v8700_v20, %v8726_v34 }
 0x323   :  { %v960_v1 = vadd.f32 %v959_v62, %v8772_v58 }
 0x324   :  { %v7599_v3 = vpop.f32.mrf.mxu1 }
 0x325   :  { %v966_v5 = vsel %vm790_vm8, %v960_v1, -inf }
 0x326   :  { %967 = vmax.xlane.f32.xlu1 %v966_v5 }
 0x32a   :  { %795 = vmax.xlane.f32.xlu1 %v794_v8  ;;  %v814_v8 = vmul.f32 %v8700_v20, %v8737_v37 }
 0x3a7   :  { %v793_v9 = vpop.xlane.xlu0 %792 }
 0x3a8   :  { %v797_v10 = vsub.f32 %v711_v43, %v793_v9 }
 0x3aa   :  { %v799_v12 = vmul.f32 1.442695, %v797_v10 }
 0x3ab   :  { %v965_v15 = vpop.xlane.xlu1 %964 }
 0x3ac   :  { %8051 = vpow2.f32 %v799_v12  ;;  %v969_v16 = vsub.f32 %v887_v48, %v965_v15 }
 0x3ae   :  { %v971_v18 = vmul.f32 1.442695, %v969_v16 }
 0x3af   :  { %v968_v21 = vpop.xlane.xlu1 %967 }
 0x3b0   :  { %8053 = vpow2.f32 %v971_v18  ;;  %v970_v22 = vsub.f32 %v960_v1, %v968_v21  ;;  %v8790_v1 = vsel %vm257_vm11, 1.0, %v8369_v6 }
 0x3b1   :  { %v1279_v5 = vmul.f32 %v8790_v1, %v8697_v19  ;;  %v1280_v12 = vmul.f32 %v8790_v1, %v8709_v26  ;;  %v1449_v15 = vmul.f32 %v8790_v1, %v8726_v34  ;;  %v1450_v16 = vmul.f32 %v8790_v1, %v8737_v37 }
 0x3b2   :  { %v973_v23 = vmul.f32 1.442695, %v970_v22 }
 0x3b3   :  { %v796_v25 = vpop.xlane.xlu1 %795 }
 0x3b4   :  { %8055 = vpow2.f32 %v973_v23  ;;  %v798_v29 = vsub.f32 %v787_v4, %v796_v25 }
 0x3b6   :  { %v801_v30 = vmul.f32 1.442695, %v798_v29 }
 0x3b8   :  { %8057 = vpow2.f32 %v801_v30 }
 0x3b9   :  { %v8052_v31 = vpop.eup %8051 }
 0x3ba   :  { %v803_v32 = vsel %vm790_vm8, %v8052_v31, 0.0 }
 0x3bb   :  { %804 = vadd.xlane.f32.xlu1 %v803_v32 }
 0x3bd   :  { %v8054_v33 = vpop.eup %8053 }
 0x3be   :  { %v975_v36 = vsel %vm790_vm8, %v8054_v33, 0.0 }
 0x3bf   :  { %976 = vadd.xlane.f32.xlu1 %v975_v36 }
 0x3c1   :  { %v8056_v38 = vpop.eup %8055 }
 0x3c2   :  { %v978_v39 = vsel %vm790_vm8, %v8056_v38, 0.0 }
 0x3c3   :  { %979 = vadd.xlane.f32.xlu1 %v978_v39 }
 0x3c5   :  { %v8058_v41 = vpop.eup %8057 }
 0x3c6   :  { %v806_v43 = vsel %vm790_vm8, %v8058_v41, 0.0 }
 0x3c7   :  { %807 = vadd.xlane.f32.xlu1 %v806_v43 }
 0x444   :  { %v805_v44 = vpop.xlane.xlu1 %804 }
 0x448   :  { %v977_v45 = vpop.xlane.xlu1 %976 }
 0x449   :  { %8059 = vrcp.f32 %v977_v45 }
 0x44a   :  { %8061 = vrcp.f32 %v805_v44 }
 0x44c   :  { %v980_v46 = vpop.xlane.xlu1 %979 }
 0x44d   :  { %8063 = vrcp.f32 %v980_v46 }
 0x450   :  { %v808_v47 = vpop.xlane.xlu1 %807 }
 0x451   :  { %8065 = vrcp.f32 %v808_v47 }
 0x456   :  { %v8060_v48 = vpop.eup %8059 }
 0x457   :  { %v983_v49 = vmul.f32 %v8060_v48, %v8054_v33  ;;  %v8062_v50 = vpop.eup %8061 }
 0x458   :  { %v811_v4 = vmul.f32 %v8062_v50, %v8052_v31 }
 0x459   :  { %7603 = vmatmul.mubr.msk.f32.vlgmr.msra.gmra.mxu0 %vm790_vm8, %v983_v49 }
 0x45a   :  { %v8064_v62 = vpop.eup %8063  ;;  %7611 = vmatpush3.msra.mxu0 %v813_v51  ;;  %7612 = vmatprep.mubr.msk.f32.mxu0 %vm8371_vm3, %v8369_v6 }
 0x45b   :  { %7620 = vmatprep.subr.mxu0 %v8369_v6  ;;  %v984_v3 = vmul.f32 %v8064_v62, %v8056_v38 }
 0x45d   :  { %7608 = vmatmul.mubr.msk.f32.vlgmr.msra.gmra.mxu1 %vm790_vm8, %v984_v3  ;;  %7613 = vmatmul.mubr.msk.f32.vlgmr.msra.gmra.mxu0 %vm790_vm8, %v811_v4 }
 0x45e   :  { %v8066_v9 = vpop.eup %8065  ;;  %7616 = vmatpush3.msra.mxu1 %v814_v8  ;;  %7621 = vmatpush3.xpose.msk.msra.mxu0 %vm281_vm0, %v1279_v5 }
 0x45f   :  { %7617 = vmatprep.mubr.msk.f32.mxu1 %vm8371_vm3, %v8369_v6  ;;  %7622 = vmatprep.mubr.msk.f32.mxu0 %vm8371_vm3, %v8369_v6  ;;  %v812_v10 = vmul.f32 %v8066_v9, %v8058_v41 }
 0x460   :  { %7625 = vmatprep.subr.mxu1 %v8369_v6  ;;  %7630 = vmatprep.subr.mxu0 %v8369_v6 }
 0x461   :  { %7618 = vmatmul.mubr.msk.f32.vlgmr.msra.gmra.mxu1 %vm790_vm8, %v812_v10  ;;  %7623 = vmatmul.mubr.msk.f32.vlgmr.msra.gmra.mxu0 %vm281_vm0, %v8715_v28 }
 0x462   :  { %7626 = vmatpush3.xpose.msk.msra.mxu1 %vm281_vm0, %v1280_v12  ;;  %7631 = vmatpush3.msra.mxu0 %v1449_v15  ;;  %v8836_v15 = vsel %vm262_vm14, 1.0, %v8369_v6 }
 0x463   :  { %7627 = vmatprep.mubr.msk.f32.mxu1 %vm8371_vm3, %v8369_v6  ;;  %7635 = vmatprep.subr.mxu1 %v8369_v6 }
 0x464   :  { %7632 = vmatprep.mubr.msk.f32.mxu0 %vm8371_vm3, %v8369_v6  ;;  %7640 = vmatprep.subr.mxu0 %v8369_v6 }
 0x465   :  { %7628 = vmatmul.mubr.msk.f32.vlgmr.msra.gmra.mxu1 %vm281_vm0, %v8730_v35 }
 0x466   :  { %7636 = vmatpush3.msra.mxu1 %v1450_v16  ;;  %7637 = vmatprep.mubr.msk.f32.mxu1 %vm8371_vm3, %v8369_v6 }
 0x467   :  { %7645 = vmatprep.subr.mxu1 %v8369_v6 }
 0x519   :  { %v1056_v18 = vpop.f32.mrf.mxu0 }
 0x51b   :  { %v7604_v21 = vpop.f32.mrf.mxu0 }
 0x51d   :  { %v1129_v22 = vpop.f32.mrf.mxu1  ;;  %v1202_v23 = vpop.f32.mrf.mxu0 }
 0x51e   :  { %v1203_v25 = vadd.f32 %v1202_v23, %v1056_v18  ;;  %v1599_v18 = vmul.f32 %v8836_v15, %v8697_v19  ;;  %v1769_v23 = vmul.f32 %v8836_v15, %v8726_v34  ;;  %v1770_v19 = vmul.f32 %v8836_v15, %v8737_v37 }
 0x51f   :  { %v7609_v29 = vpop.f32.mrf.mxu1  ;;  %v7614_v30 = vpop.f32.mrf.mxu0 }
 0x521   :  { %v1275_v31 = vpop.f32.mrf.mxu1  ;;  %v1350_v32 = vpop.f32.mrf.mxu0 }
 0x522   :  { %v1276_v33 = vadd.f32 %v1275_v31, %v1129_v22  ;;  %v1351_v36 = vadd.f32 %v1350_v32, %v8763_v40  ;;  %v1600_v22 = vmul.f32 %v8836_v15, %v8709_v26 }
 0x523   :  { %v7619_v38 = vpop.f32.mrf.mxu1  ;;  %v7624_v39 = vpop.f32.mrf.mxu0 }
 0x524   :  { %v1427_v41 = vsel %vm790_vm8, %v1351_v36, -inf }
 0x525   :  { %v1423_v43 = vpop.f32.mrf.mxu1  ;;  %1428 = vmax.xlane.f32.xlu1 %v1427_v41 }
 0x526   :  { %v1424_v44 = vadd.f32 %v1423_v43, %v8772_v58 }
 0x527   :  { %v7629_v45 = vpop.f32.mrf.mxu1 }
 0x528   :  { %v1430_v46 = vsel %vm790_vm8, %v1424_v44, -inf }
 0x529   :  { %1431 = vmax.xlane.f32.xlu1 %v1430_v46 }
 0x5ae   :  { %v1429_v47 = vpop.xlane.xlu1 %1428 }
 0x5af   :  { %v1433_v48 = vsub.f32 %v1351_v36, %v1429_v47 }
 0x5b1   :  { %v1435_v49 = vmul.f32 1.442695, %v1433_v48 }
 0x5b2   :  { %v1432_v50 = vpop.xlane.xlu1 %1431 }
 0x5b3   :  { %8067 = vpow2.f32 %v1435_v49  ;;  %v1434_v51 = vsub.f32 %v1424_v44, %v1432_v50 }
 0x5b5   :  { %v1437_v62 = vmul.f32 1.442695, %v1434_v51 }
 0x5b7   :  { %8069 = vpow2.f32 %v1437_v62 }
 0x5c0   :  { %v8068_v3 = vpop.eup %8067 }
 0x5c1   :  { %v1439_v4 = vsel %vm790_vm8, %v8068_v3, 0.0 }
 0x5c2   :  { %1440 = vadd.xlane.f32.xlu1 %v1439_v4 }
 0x5c4   :  { %v8070_v5 = vpop.eup %8069 }
 0x5c5   :  { %v1442_v8 = vsel %vm790_vm8, %v8070_v5, 0.0 }
 0x5c6   :  { %1443 = vadd.xlane.f32.xlu0 %v1442_v8 }
 0x64b   :  { %v1441_v9 = vpop.xlane.xlu1 %1440 }
 0x64c   :  { %8071 = vrcp.f32 %v1441_v9 }
 0x64f   :  { %v1444_v10 = vpop.xlane.xlu0 %1443 }
 0x650   :  { %8073 = vrcp.f32 %v1444_v10 }
 0x659   :  { %v8072_v12 = vpop.eup %8071 }
 0x65a   :  { %v1447_v16 = vmul.f32 %v8072_v12, %v8068_v3  ;;  %v8876_v3 = vadd.f32 %v8640_v57, %v8627_v52  ;;  %v634_v52 = vld [vmem:[%s9621_s7 + $0x10] sm:$0xff]  ;;  %v633_v57 = vld [vmem:[%s9621_s7 + $0x8] sm:$0xff]  ;;  %v632_v12 = vld [vmem:[%s9621_s7] sm:$0xff] }
 0x65c   :  { %7633 = vmatmul.mubr.msk.f32.vlgmr.msra.gmra.mxu0 %vm790_vm8, %v1447_v16  ;;  %v2150_v8 = vmul.f32 %v8700_v20, %v8876_v3 }
 0x65d   :  { %v8074_v21 = vpop.eup %8073  ;;  %7641 = vmatpush3.xpose.msk.msra.mxu0 %vm281_vm0, %v1599_v18  ;;  %7642 = vmatprep.mubr.msk.f32.mxu0 %vm8371_vm3, %v8369_v6 }
 0x65e   :  { %7650 = vmatprep.subr.mxu0 %v8369_v6  ;;  %v1448_v42 = vmul.f32 %v8074_v21, %v8070_v5 }
 0x660   :  { %7638 = vmatmul.mubr.msk.f32.vlgmr.msra.gmra.mxu1 %vm790_vm8, %v1448_v42  ;;  %7643 = vmatmul.mubr.msk.f32.vlgmr.msra.gmra.mxu0 %vm281_vm0, %v8715_v28 }
 0x661   :  { %7646 = vmatpush3.xpose.msk.msra.mxu1 %vm281_vm0, %v1600_v22  ;;  %7651 = vmatpush3.msra.mxu0 %v1769_v23 }
 0x662   :  { %7647 = vmatprep.mubr.msk.f32.mxu1 %vm8371_vm3, %v8369_v6  ;;  %7655 = vmatprep.subr.mxu1 %v8369_v6 }
 0x663   :  { %7652 = vmatprep.mubr.msk.f32.mxu0 %vm8371_vm3, %v8369_v6  ;;  %7682 = vmatprep.subr.mxu0 %v8369_v6 }
 0x664   :  { %7648 = vmatmul.mubr.msk.f32.vlgmr.msra.gmra.mxu1 %vm281_vm0, %v8730_v35 }
 0x665   :  { %7656 = vmatpush3.msra.mxu1 %v1770_v19  ;;  %7657 = vmatprep.mubr.msk.f32.mxu1 %vm8371_vm3, %v8369_v6  ;;  %v8898_v19 = vsub.s32 3, %v8629_v53 }
 0x71c   :  { %v1520_v26 = vpop.f32.mrf.mxu0 }
 0x71d   :  { %v1597_v28 = vadd.f32 %v1520_v26, %v1203_v25  ;;  %v1922_v26 = vrot.slane %v8633_v55, %v8898_v19 }
 0x71e   :  { %v7634_v34 = vpop.f32.mrf.mxu0 }
 0x720   :  { %v1593_v29 = vpop.f32.mrf.mxu1  ;;  %v1670_v30 = vpop.f32.mrf.mxu0 }
 0x721   :  { %v1598_v31 = vadd.f32 %v1593_v29, %v1276_v33  ;;  %v1671_v37 = vadd.f32 %v1670_v30, %v8763_v40 }
 0x722   :  { %v7639_v32 = vpop.f32.mrf.mxu1  ;;  %v7644_v36 = vpop.f32.mrf.mxu0 }
 0x723   :  { %v1747_v38 = vsel %vm790_vm8, %v1671_v37, -inf }
 0x724   :  { %v1743_v39 = vpop.f32.mrf.mxu1  ;;  %1748 = vmax.xlane.f32.xlu1 %v1747_v38 }
 0x725   :  { %v1744_v35 = vadd.f32 %v1743_v39, %v8772_v58  ;;  %v635_v58 = vld [vmem:[%s9621_s7 + $0x18] sm:$0xff] }
 0x726   :  { %v7649_v41 = vpop.f32.mrf.mxu1  ;;  %7660 = vmatprep.subr.mxu1 %v635_v58 }
 0x727   :  { %v1750_v43 = vsel %vm790_vm8, %v1744_v35, -inf }
 0x728   :  { %1751 = vmax.xlane.f32.xlu0 %v1750_v43 }
 0x7ad   :  { %v1749_v44 = vpop.xlane.xlu1 %1748 }
 0x7ae   :  { %v1753_v25 = vsub.f32 %v1671_v37, %v1749_v44 }
 0x7b0   :  { %v1755_v45 = vmul.f32 1.442695, %v1753_v25 }
 0x7b1   :  { %v1752_v46 = vpop.xlane.xlu0 %1751 }
 0x7b2   :  { %8075 = vpow2.f32 %v1755_v45  ;;  %v1754_v33 = vsub.f32 %v1744_v35, %v1752_v46 }
 0x7b4   :  { %v1757_v47 = vmul.f32 1.442695, %v1754_v33  ;;  %v2048_v33 = vld [vmem:[#allocation7 + $0x18] sm:$0xff] }
 0x7b6   :  { %8077 = vpow2.f32 %v1757_v47  ;;  %v2046_v47 = vld [vmem:[#allocation7 + $0x8] sm:$0xff] }
 0x7bf   :  { %v8076_v40 = vpop.eup %8075 }
 0x7c0   :  { %v1759_v48 = vsel %vm790_vm8, %v8076_v40, 0.0 }
 0x7c1   :  { %1760 = vadd.xlane.f32.xlu1 %v1759_v48 }
 0x7c3   :  { %v8078_v49 = vpop.eup %8077 }
 0x7c4   :  { %v1762_v50 = vsel %vm790_vm8, %v8078_v49, 0.0 }
 0x7c5   :  { %1763 = vadd.xlane.f32.xlu0 %v1762_v50 }
 0x84a   :  { %v1761_v51 = vpop.xlane.xlu1 %1760 }
 0x84b   :  { %8079 = vrcp.f32 %v1761_v51 }
 0x84e   :  { %v1764_v62 = vpop.xlane.xlu0 %1763 }
 0x84f   :  { %8081 = vrcp.f32 %v1764_v62 }
 0x858   :  { %v8080_v4 = vpop.eup %8079 }
 0x859   :  { %v1767_v5 = vmul.f32 %v8080_v4, %v8076_v40  ;;  %v2045_v40 = vld [vmem:[#allocation7] sm:$0xff]  ;;  %v8909_v4 = vld [vmem:[#allocation11 + $0x8] sm:$0xff] }
 0x85b   :  { %7653 = vmatmul.mubr.msk.f32.vlgmr.msra.gmra.mxu0 %vm790_vm8, %v1767_v5 }
 0x85c   :  { %v8082_v9 = vpop.eup %8081  ;;  %7683 = vmatpush3.xpose.msk.msra.mxu0 %vm281_vm0, %v2150_v8  ;;  %7684 = vmatprep.mubr.msk.f32.mxu0 %vm8371_vm3, %v8369_v6  ;;  %v2036_v8 = vrot.slane %v8909_v4, %v8707_v24 }
 0x85d   :  { %v1768_v10 = vmul.f32 %v8082_v9, %v8078_v49  ;;  %7692 = vmatprep.subr.mxu0 %v8369_v6 }
 0x85f   :  { %7658 = vmatmul.mubr.msk.f32.vlgmr.msra.gmra.mxu1 %vm790_vm8, %v1768_v10 }
 0x860   :  { %7661 = vmatpush3.msra.mxu1 %v635_v58 }
 0x861   :  { %7662 = vmatprep.subr.mxu1 %v634_v52 }
 0x862   :  { %7663 = vmatpush3.msra.mxu1 %v634_v52 }
 0x863   :  { %7664 = vmatprep.subr.mxu1 %v633_v57 }
 0x864   :  { %7665 = vmatpush3.msra.mxu1 %v633_v57 }
 0x865   :  { %7666 = vmatprep.subr.mxu1 %v632_v12 }
 0x866   :  { %7667 = vmatpush3.msra.mxu1 %v632_v12  ;;  %v2042_v12 = vrot.slane %v8909_v4, %v8898_v19 }
 0x867   :  { %7671 = vmatprep.subr.mxu1 %v2048_v33 }
 0x91b   :  { %v1840_v16 = vpop.f32.mrf.mxu0 }
 0x91c   :  { %v1917_v18 = vadd.f32 %v1840_v16, %v1597_v28 }
 0x91d   :  { %v7654_v21 = vpop.f32.mrf.mxu0 }
 0x91e   :  { %7668 = vmatprep.mubr.msk.f32.mxu1 %vm281_vm0, %v1917_v18 }
 0x91f   :  { %v1913_v42 = vpop.f32.mrf.mxu1 }
 0x920   :  { %v1918_v22 = vadd.f32 %v1913_v42, %v1598_v31  ;;  %v2151_v42 = vmul.f32 %v8700_v20, %v8643_v59 }
 0x921   :  { %v7659_v23 = vpop.f32.mrf.mxu1 }
 0x922   :  { %7669 = vmatmul.mubr.msk.f32.vlgmr.msra.gmra.mxu1 %vm281_vm0, %v1918_v22  ;;  %v8930_v22 = vsub.s32 4, %v8629_v53  ;;  %v8933_v23 = vsub.s32 6, %v8629_v53 }
 0x923   :  { %7672 = vmatpush3.msra.mxu1 %v2048_v33 }
 0x9e2   :  { %v7670_v34 = vpop.f32.mrf.mxu1 }
 0x9e3   :  { %v2001_v29 = vadd.f32 %v7670_v34, %v1922_v26  ;;  %v2143_v34 = vrot.slane %v8633_v55, %v8933_v23 }
 0x9e4   :  { %v1995_v30 = vpop.f32.mrf.mxu1 }
 0x9e5   :  { %v1996_v37 = vadd.f32 %v1995_v30, %v1922_v26  ;;  %v2005_v28 = vadd.f32 %v2001_v29, %v8668_v11  ;;  %v2052_v26 = vrot.slane %v8633_v55, %v8930_v22  ;;  %v8953_v55 = vadd.f32 %v2143_v34, %v8631_v54 }
 0x9e7   :  { %v2009_v32 = vsel %vm281_vm0, %v2005_v28, 0.0  ;;  %v2004_v36 = vadd.f32 %v1996_v37, %v8657_v7  ;;  %v2047_v7 = vld [vmem:[#allocation7 + $0x10] sm:$0xff]  ;;  %v2329_v37 = vmul.f32 %v8713_v27, %v8643_v59  ;;  %v2498_v54 = vmul.f32 %v8713_v27, %v8953_v55 }
 0x9e8   :  { %2010 = vadd.xlane.f32.xlu0 %v2009_v32  ;;  %7673 = vmatprep.subr.mxu1 %v2047_v7 }
 0x9e9   :  { %v2006_v31 = vsel %vm281_vm0, %v2004_v36, 0.0  ;;  %7674 = vmatpush3.msra.mxu1 %v2047_v7 }
 0x9ea   :  { %2007 = vadd.xlane.f32.xlu1 %v2006_v31  ;;  %7675 = vmatprep.subr.mxu1 %v2046_v47  ;;  %v2328_v31 = vmul.f32 %v8713_v27, %v8876_v3 }
 0x9eb   :  { %7676 = vmatpush3.msra.mxu1 %v2046_v47 }
 0x9ec   :  { %7677 = vmatprep.subr.mxu1 %v2045_v40 }
 0x9ed   :  { %7678 = vmatpush3.msra.mxu1 %v2045_v40 }
 0x9ee   :  { %7687 = vmatprep.subr.mxu1 %v8369_v6 }
 0xa71   :  { %v2011_v38 = vpop.xlane.xlu0 %2010 }
 0xa72   :  { %v2014_v39 = vmul.f32 0.03125, %v2011_v38 }
 0xa73   :  { %v2008_v35 = vpop.xlane.xlu1 %2007 }
 0xa74   :  { %v2016_v41 = vsub.f32 %v2005_v28, %v2014_v39  ;;  %v2013_v43 = vmul.f32 0.03125, %v2008_v35  ;;  %v8944_v28 = vadd.f32 %v2143_v34, %v8645_v60 }
 0xa76   :  { %v2015_v44 = vsub.f32 %v2004_v36, %v2013_v43  ;;  %v2018_v25 = vmul.f32 %v2016_v41, %v2016_v41  ;;  %v2499_v60 = vmul.f32 %v8713_v27, %v8944_v28 }
 0xa78   :  { %v2022_v45 = vsel %vm281_vm0, %v2018_v25, 0.0  ;;  %v2017_v46 = vmul.f32 %v2015_v44, %v2015_v44 }
 0xa79   :  { %2023 = vadd.xlane.f32.xlu0 %v2022_v45  ;;  %v8988_v45 = vld [vmem:[%s9619_s5] sm:$0xff] }
 0xa7a   :  { %v2019_v11 = vsel %vm281_vm0, %v2017_v46, 0.0 }
 0xa7b   :  { %2020 = vadd.xlane.f32.xlu1 %v2019_v11 }
 0xb02   :  { %v2024_v48 = vpop.xlane.xlu0 %2023 }
 0xb03   :  { %v2026_v49 = vmul.f32 0.03125, %v2024_v48 }
 0xb04   :  { %v2021_v50 = vpop.xlane.xlu1 %2020 }
 0xb05   :  { %v2028_v58 = vadd.f32 1e-05, %v2026_v49  ;;  %v2025_v51 = vmul.f32 0.03125, %v2021_v50 }
 0xb07   :  { %8083 = vrsqrt.f32 %v2028_v58  ;;  %v2027_v62 = vadd.f32 1e-05, %v2025_v51 }
 0xb09   :  { %8085 = vrsqrt.f32 %v2027_v62 }
 0xb14   :  { %v8084_v5 = vpop.eup %8083 }
 0xb15   :  { %v2032_v9 = vmul.f32 %v8084_v5, %v2016_v41  ;;  %v8982_v41 = vld [vmem:[%s9619_s5 + $0x8] sm:$0xff] }
 0xb16   :  { %v8086_v10 = vpop.eup %8085 }
 0xb17   :  { %v2031_v52 = vmul.f32 %v8086_v10, %v2015_v44  ;;  %v2038_v57 = vmul.f32 %v2036_v8, %v2032_v9 }
 0xb19   :  { %v2037_v16 = vmul.f32 %v2036_v8, %v2031_v52  ;;  %v8917_v21 = vadd.f32 %v2042_v12, %v2038_v57 }
 0xb1b   :  { %v8915_v18 = vadd.f32 %v2042_v12, %v2037_v16 }
 0xb1d   :  { %7679 = vmatprep.mubr.msk.f32.mxu1 %vm281_vm0, %v8915_v18 }
 0xb1e   :  { %7680 = vmatmul.mubr.msk.f32.vlgmr.msra.gmra.mxu1 %vm281_vm0, %v8917_v21 }
 0xb1f   :  { %7688 = vmatpush3.xpose.msk.msra.mxu1 %vm281_vm0, %v2151_v42  ;;  %7689 = vmatprep.mubr.msk.f32.mxu1 %vm8371_vm3, %v8369_v6 }
 0xb20   :  { %7697 = vmatprep.subr.mxu1 %v8369_v6 }
 0xbde   :  { %v7681_v29 = vpop.f32.mrf.mxu1 }
 0xbdf   :  { %v8939_v30 = vadd.f32 %v7681_v29, %v2052_v26 }
 0xbe0   :  { %v2125_v32 = vpop.f32.mrf.mxu1 }
 0xbe1   :  { %v8946_v36 = vadd.f32 %v2125_v32, %v2052_v26  ;;  %7690 = vmatmul.mubr.msk.f32.vlgmr.msra.gmra.mxu1 %vm281_vm0, %v8939_v30 }
 0xbe2   :  { %7698 = vmatpush3.xpose.msk.msra.mxu1 %vm281_vm0, %v2329_v37  ;;  %7699 = vmatprep.mubr.msk.f32.mxu1 %vm8371_vm3, %v8369_v6 }
 0xbe3   :  { %7685 = vmatmul.mubr.msk.f32.vlgmr.msra.gmra.mxu0 %vm281_vm0, %v8946_v36  ;;  %7707 = vmatprep.subr.mxu1 %v8369_v6 }
 0xbe4   :  { %7693 = vmatpush3.xpose.msk.msra.mxu0 %vm281_vm0, %v2328_v31  ;;  %7694 = vmatprep.mubr.msk.f32.mxu0 %vm8371_vm3, %v8369_v6 }
 0xbe5   :  { %7700 = vmatmul.mubr.msk.f32.vlgmr.msra.gmra.mxu1 %vm281_vm0, %v8939_v30  ;;  %7702 = vmatprep.subr.mxu0 %v8369_v6 }
 0xbe6   :  { %7708 = vmatpush3.msra.mxu1 %v2499_v60  ;;  %7709 = vmatprep.mubr.msk.f32.mxu1 %vm8371_vm3, %v8369_v6 }
 0xbe7   :  { %7695 = vmatmul.mubr.msk.f32.vlgmr.msra.gmra.mxu0 %vm281_vm0, %v8946_v36  ;;  %7717 = vmatprep.subr.mxu1 %v8369_v6 }
 0xbe8   :  { %7703 = vmatpush3.msra.mxu0 %v2498_v54  ;;  %7704 = vmatprep.mubr.msk.f32.mxu0 %vm8371_vm3, %v8369_v6 }
 0xbe9   :  { %7712 = vmatprep.subr.mxu0 %v8369_v6 }
 0xca1   :  { %v2300_v38 = vpop.f32.mrf.mxu1 }
 0xca2   :  { %v2301_v33 = vadd.f32 %v2300_v38, %v8982_v41 }
 0xca3   :  { %v2224_v39 = vpop.f32.mrf.mxu0  ;;  %v7691_v35 = vpop.f32.mrf.mxu1 }
 0xca4   :  { %v2225_v48 = vadd.f32 %v2224_v39, %v8988_v45  ;;  %v2307_v50 = vsel %vm790_vm8, %v2301_v33, -inf }
 0xca5   :  { %v7686_v43 = vpop.f32.mrf.mxu0  ;;  %v2472_v44 = vpop.f32.mrf.mxu1 }
 0xca6   :  { %v2473_v25 = vadd.f32 %v2472_v44, %v8982_v41  ;;  %v2304_v58 = vsel %vm790_vm8, %v2225_v48, -inf }
 0xca7   :  { %v2399_v46 = vpop.f32.mrf.mxu0  ;;  %v7701_v11 = vpop.f32.mrf.mxu1 }
 0xca8   :  { %v2400_v7 = vadd.f32 %v2399_v46, %v8988_v45  ;;  %v2479_v47 = vsel %vm790_vm8, %v2473_v25, -inf }
 0xca9   :  { %2480 = vmax.xlane.f32.xlu0 %v2479_v47  ;;  %v7696_v40 = vpop.f32.mrf.mxu0 }
 0xcaa   :  { %v2476_v49 = vsel %vm790_vm8, %v2400_v7, -inf  ;;  %v2326_v40 = vmul.f32 %v8700_v20, %v8953_v55 }
 0xcab   :  { %2477 = vmax.xlane.f32.xlu1 %v2476_v49 }
 0xcad   :  { %2308 = vmax.xlane.f32.xlu0 %v2307_v50  ;;  %v2793_v50 = vmul.f32 %v8790_v1, %v8643_v59 }
 0xcaf   :  { %2305 = vmax.xlane.f32.xlu1 %v2304_v58 }
 0xd32   :  { %v2481_v51 = vpop.xlane.xlu0 %2480 }
 0xd33   :  { %v2483_v62 = vsub.f32 %v2473_v25, %v2481_v51  ;;  %v2792_v51 = vmul.f32 %v8790_v1, %v8876_v3 }
 0xd34   :  { %v2478_v5 = vpop.xlane.xlu1 %2477 }
 0xd35   :  { %v2486_v8 = vmul.f32 1.442695, %v2483_v62  ;;  %v2482_v9 = vsub.f32 %v2400_v7, %v2478_v5  ;;  %v2963_v62 = vmul.f32 %v8790_v1, %v8944_v28  ;;  %v2962_v5 = vmul.f32 %v8790_v1, %v8953_v55 }
 0xd36   :  { %v2309_v10 = vpop.xlane.xlu0 %2308 }
 0xd37   :  { %8087 = vpow2.f32 %v2486_v8  ;;  %v2484_v52 = vmul.f32 1.442695, %v2482_v9  ;;  %v2311_v57 = vsub.f32 %v2301_v33, %v2309_v10  ;;  %v2327_v33 = vmul.f32 %v8700_v20, %v8944_v28 }
 0xd38   :  { %v2306_v12 = vpop.xlane.xlu1 %2305 }
 0xd39   :  { %8089 = vpow2.f32 %v2484_v52  ;;  %v2314_v16 = vmul.f32 1.442695, %v2311_v57  ;;  %v2310_v42 = vsub.f32 %v2225_v48, %v2306_v12 }
 0xd3b   :  { %8091 = vpow2.f32 %v2314_v16  ;;  %v2312_v26 = vmul.f32 1.442695, %v2310_v42 }
 0xd3d   :  { %8093 = vpow2.f32 %v2312_v26 }
 0xd44   :  { %v8088_v34 = vpop.eup %8087 }
 0xd45   :  { %v2491_v29 = vsel %vm790_vm8, %v8088_v34, 0.0 }
 0xd46   :  { %v8090_v37 = vpop.eup %8089  ;;  %2492 = vadd.xlane.f32.xlu0 %v2491_v29 }
 0xd47   :  { %v2488_v32 = vsel %vm790_vm8, %v8090_v37, 0.0 }
 0xd48   :  { %v8092_v31 = vpop.eup %8091  ;;  %2489 = vadd.xlane.f32.xlu1 %v2488_v32 }
 0xd49   :  { %v2319_v60 = vsel %vm790_vm8, %v8092_v31, 0.0 }
 0xd4a   :  { %v8094_v54 = vpop.eup %8093  ;;  %2320 = vadd.xlane.f32.xlu0 %v2319_v60 }
 0xd4b   :  { %v2316_v38 = vsel %vm790_vm8, %v8094_v54, 0.0 }
 0xd4c   :  { %2317 = vadd.xlane.f32.xlu1 %v2316_v38 }
 0xdcf   :  { %v2493_v39 = vpop.xlane.xlu0 %2492 }
 0xdd0   :  { %8095 = vrcp.f32 %v2493_v39 }
 0xdd1   :  { %v2490_v35 = vpop.xlane.xlu1 %2489 }
 0xdd2   :  { %8097 = vrcp.f32 %v2490_v35 }
 0xdd3   :  { %v2321_v43 = vpop.xlane.xlu0 %2320 }
 0xdd4   :  { %8099 = vrcp.f32 %v2321_v43 }
 0xdd5   :  { %v2318_v44 = vpop.xlane.xlu1 %2317 }
 0xdd6   :  { %8101 = vrcp.f32 %v2318_v44 }
 0xddd   :  { %v8096_v25 = vpop.eup %8095 }
 0xdde   :  { %v2497_v46 = vmul.f32 %v8096_v25, %v8088_v34 }
 0xddf   :  { %v8098_v11 = vpop.eup %8097 }
 0xde0   :  { %7710 = vmatmul.mubr.msk.f32.vlgmr.msra.gmra.mxu1 %vm790_vm8, %v2497_v46  ;;  %v2496_v7 = vmul.f32 %v8098_v11, %v8090_v37 }
 0xde1   :  { %v8100_v47 = vpop.eup %8099  ;;  %7718 = vmatpush3.msra.mxu1 %v2327_v33  ;;  %7719 = vmatprep.mubr.msk.f32.mxu1 %vm8371_vm3, %v8369_v6 }
 0xde2   :  { %7705 = vmatmul.mubr.msk.f32.vlgmr.msra.gmra.mxu0 %vm790_vm8, %v2496_v7  ;;  %7727 = vmatprep.subr.mxu1 %v8369_v6  ;;  %v2325_v48 = vmul.f32 %v8100_v47, %v8092_v31 }
 0xde3   :  { %v8102_v49 = vpop.eup %8101  ;;  %7713 = vmatpush3.msra.mxu0 %v2326_v40  ;;  %7714 = vmatprep.mubr.msk.f32.mxu0 %vm8371_vm3, %v8369_v6 }
 0xde4   :  { %7720 = vmatmul.mubr.msk.f32.vlgmr.msra.gmra.mxu1 %vm790_vm8, %v2325_v48  ;;  %7722 = vmatprep.subr.mxu0 %v8369_v6  ;;  %v2324_v58 = vmul.f32 %v8102_v49, %v8094_v54 }
 0xde5   :  { %7728 = vmatpush3.xpose.msk.msra.mxu1 %vm281_vm0, %v2793_v50  ;;  %7729 = vmatprep.mubr.msk.f32.mxu1 %vm8371_vm3, %v8369_v6 }
 0xde6   :  { %7715 = vmatmul.mubr.msk.f32.vlgmr.msra.gmra.mxu0 %vm790_vm8, %v2324_v58  ;;  %7737 = vmatprep.subr.mxu1 %v8369_v6 }
 0xde7   :  { %7723 = vmatpush3.xpose.msk.msra.mxu0 %vm281_vm0, %v2792_v51  ;;  %7724 = vmatprep.mubr.msk.f32.mxu0 %vm8371_vm3, %v8369_v6 }
 0xde8   :  { %7730 = vmatmul.mubr.msk.f32.vlgmr.msra.gmra.mxu1 %vm281_vm0, %v8939_v30  ;;  %7732 = vmatprep.subr.mxu0 %v8369_v6 }
 0xde9   :  { %7738 = vmatpush3.msra.mxu1 %v2963_v62  ;;  %7739 = vmatprep.mubr.msk.f32.mxu1 %vm8371_vm3, %v8369_v6  ;;  %v3113_v62 = vmul.f32 %v8836_v15, %v8643_v59  ;;  %v3283_v59 = vmul.f32 %v8836_v15, %v8944_v28 }
 0xdea   :  { %7725 = vmatmul.mubr.msk.f32.vlgmr.msra.gmra.mxu0 %vm281_vm0, %v8946_v36  ;;  %7747 = vmatprep.subr.mxu1 %v8369_v6 }
 0xdeb   :  { %7733 = vmatpush3.msra.mxu0 %v2962_v5  ;;  %7734 = vmatprep.mubr.msk.f32.mxu0 %vm8371_vm3, %v8369_v6 }
 0xdec   :  { %7742 = vmatprep.subr.mxu0 %v8369_v6 }
 0xea0   :  { %v2642_v8 = vpop.f32.mrf.mxu1 }
 0xea2   :  { %v2569_v9 = vpop.f32.mrf.mxu0  ;;  %v7711_v10 = vpop.f32.mrf.mxu1 }
 0xea4   :  { %v7706_v52 = vpop.f32.mrf.mxu0  ;;  %v2788_v57 = vpop.f32.mrf.mxu1 }
 0xea5   :  { %v2789_v12 = vadd.f32 %v2788_v57, %v2642_v8  ;;  %v3112_v8 = vmul.f32 %v8836_v15, %v8876_v3  ;;  %v3282_v3 = vmul.f32 %v8836_v15, %v8953_v55 }
 0xea6   :  { %v2715_v16 = vpop.f32.mrf.mxu0  ;;  %v7721_v42 = vpop.f32.mrf.mxu1 }
 0xea7   :  { %v2716_v26 = vadd.f32 %v2715_v16, %v2569_v9 }
 0xea8   :  { %v7716_v34 = vpop.f32.mrf.mxu0  ;;  %v2936_v29 = vpop.f32.mrf.mxu1 }
 0xea9   :  { %v2937_v37 = vadd.f32 %v2936_v29, %v8982_v41 }
 0xeaa   :  { %v2863_v32 = vpop.f32.mrf.mxu0  ;;  %v7731_v31 = vpop.f32.mrf.mxu1 }
 0xeab   :  { %v2864_v60 = vadd.f32 %v2863_v32, %v8988_v45  ;;  %v2943_v54 = vsel %vm790_vm8, %v2937_v37, -inf }
 0xeac   :  { %2944 = vmax.xlane.f32.xlu0 %v2943_v54  ;;  %v7726_v38 = vpop.f32.mrf.mxu0 }
 0xead   :  { %v2940_v39 = vsel %vm790_vm8, %v2864_v60, -inf }
 0xeae   :  { %2941 = vmax.xlane.f32.xlu1 %v2940_v39 }
 0xf35   :  { %v2945_v35 = vpop.xlane.xlu0 %2944 }
 0xf36   :  { %v2947_v43 = vsub.f32 %v2937_v37, %v2945_v35 }
 0xf37   :  { %v2942_v44 = vpop.xlane.xlu1 %2941 }
 0xf38   :  { %v2950_v25 = vmul.f32 1.442695, %v2947_v43  ;;  %v2946_v46 = vsub.f32 %v2864_v60, %v2942_v44  ;;  %v2149_v43 = vld [vmem:[#allocation8 + $0x18] sm:$0xff] }
 0xf3a   :  { %8103 = vpow2.f32 %v2950_v25  ;;  %v2948_v11 = vmul.f32 1.442695, %v2946_v46 }
 0xf3c   :  { %8105 = vpow2.f32 %v2948_v11 }
 0xf47   :  { %v8104_v33 = vpop.eup %8103 }
 0xf48   :  { %v2955_v7 = vsel %vm790_vm8, %v8104_v33, 0.0 }
 0xf49   :  { %v8106_v47 = vpop.eup %8105  ;;  %2956 = vadd.xlane.f32.xlu0 %v2955_v7 }
 0xf4a   :  { %v2952_v40 = vsel %vm790_vm8, %v8106_v47, 0.0 }
 0xf4b   :  { %2953 = vadd.xlane.f32.xlu1 %v2952_v40  ;;  %v2147_v40 = vld [vmem:[#allocation8 + $0x8] sm:$0xff] }
 0xfd2   :  { %v2957_v48 = vpop.xlane.xlu0 %2956 }
 0xfd3   :  { %8107 = vrcp.f32 %v2957_v48  ;;  %v2146_v48 = vld [vmem:[#allocation8] sm:$0xff] }
 0xfd4   :  { %v2954_v49 = vpop.xlane.xlu1 %2953 }
 0xfd5   :  { %8109 = vrcp.f32 %v2954_v49 }
 0xfe0   :  { %v8108_v50 = vpop.eup %8107 }
 0xfe1   :  { %v2961_v58 = vmul.f32 %v8108_v50, %v8104_v33 }
 0xfe2   :  { %v8110_v51 = vpop.eup %8109 }
 0xfe3   :  { %7740 = vmatmul.mubr.msk.f32.vlgmr.msra.gmra.mxu1 %vm790_vm8, %v2961_v58  ;;  %v2960_v5 = vmul.f32 %v8110_v51, %v8106_v47  ;;  %v2148_v47 = vld [vmem:[#allocation8 + $0x10] sm:$0xff] }
 0xfe4   :  { %7748 = vmatpush3.xpose.msk.msra.mxu1 %vm281_vm0, %v3113_v62  ;;  %7749 = vmatprep.mubr.msk.f32.mxu1 %vm8371_vm3, %v8369_v6 }
 0xfe5   :  { %7735 = vmatmul.mubr.msk.f32.vlgmr.msra.gmra.mxu0 %vm790_vm8, %v2960_v5  ;;  %7757 = vmatprep.subr.mxu1 %v8369_v6 }
 0xfe6   :  { %7743 = vmatpush3.xpose.msk.msra.mxu0 %vm281_vm0, %v3112_v8  ;;  %7744 = vmatprep.mubr.msk.f32.mxu0 %vm8371_vm3, %v8369_v6  ;;  %v9084_v8 = vsub.s32 7, %v8629_v53 }
 0xfe7   :  { %7750 = vmatmul.mubr.msk.f32.vlgmr.msra.gmra.mxu1 %vm281_vm0, %v8939_v30  ;;  %7752 = vmatprep.subr.mxu0 %v8369_v6 }
 0xfe8   :  { %7758 = vmatpush3.msra.mxu1 %v3283_v59  ;;  %7759 = vmatprep.mubr.msk.f32.mxu1 %vm8371_vm3, %v8369_v6  ;;  %v8203_v59 = vld [vmem:[#allocation11] sm:$0xff] }
 0xfe9   :  { %7745 = vmatmul.mubr.msk.f32.vlgmr.msra.gmra.mxu0 %vm281_vm0, %v8946_v36 }
 0xfea   :  { %7753 = vmatpush3.msra.mxu0 %v3282_v3  ;;  %7754 = vmatprep.mubr.msk.f32.mxu0 %vm8371_vm3, %v8369_v6  ;;  %v3435_v3 = vrot.slane %v8203_v59, %v9084_v8  ;;  %v3650_v59 = vld [vmem:[%s9626_s12 + $0x10] sm:$0xff] }
 0xfeb   :  { %7762 = vmatprep.subr.mxu0 %v2149_v43 }
0x10a3   :  { %v3106_v28 = vpop.f32.mrf.mxu1 }
0x10a4   :  { %v3111_v9 = vadd.f32 %v3106_v28, %v2789_v12 }
0x10a5   :  { %v3033_v10 = vpop.f32.mrf.mxu0  ;;  %v7741_v30 = vpop.f32.mrf.mxu1 }
0x10a6   :  { %v3110_v52 = vadd.f32 %v3033_v10, %v2716_v26 }
0x10a7   :  { %v7736_v57 = vpop.f32.mrf.mxu0  ;;  %v3256_v16 = vpop.f32.mrf.mxu1 }
0x10a8   :  { %v3257_v42 = vadd.f32 %v3256_v16, %v8982_v41 }
0x10a9   :  { %v3183_v55 = vpop.f32.mrf.mxu0  ;;  %v7751_v34 = vpop.f32.mrf.mxu1 }
0x10aa   :  { %v3184_v29 = vadd.f32 %v3183_v55, %v8988_v45  ;;  %v3263_v37 = vsel %vm790_vm8, %v3257_v42, -inf }
0x10ab   :  { %3264 = vmax.xlane.f32.xlu0 %v3263_v37  ;;  %v7746_v36 = vpop.f32.mrf.mxu0 }
0x10ac   :  { %v3260_v32 = vsel %vm790_vm8, %v3184_v29, -inf }
0x10ad   :  { %3261 = vmax.xlane.f32.xlu1 %v3260_v32 }
0x1134   :  { %v3265_v31 = vpop.xlane.xlu0 %3264 }
0x1135   :  { %v3267_v12 = vsub.f32 %v3257_v42, %v3265_v31 }
0x1136   :  { %v3262_v60 = vpop.xlane.xlu1 %3261 }
0x1137   :  { %v3270_v54 = vmul.f32 1.442695, %v3267_v12  ;;  %v3266_v26 = vsub.f32 %v3184_v29, %v3262_v60  ;;  %v3560_v60 = vld [vmem:[#allocation10 + $0x18] sm:$0xff] }
0x1138   :  { %7773 = vmatprep.subr.mxu1 %v3560_v60 }
0x1139   :  { %8111 = vpow2.f32 %v3270_v54  ;;  %v3268_v38 = vmul.f32 1.442695, %v3266_v26  ;;  %v3558_v54 = vld [vmem:[#allocation10 + $0x8] sm:$0xff]  ;;  %v3557_v26 = vld [vmem:[#allocation10] sm:$0xff] }
0x113b   :  { %8113 = vpow2.f32 %v3268_v38  ;;  %v3655_v38 = vld [vmem:[%s9626_s12 + $0x38] sm:$0xff] }
0x1146   :  { %v8112_v41 = vpop.eup %8111 }
0x1147   :  { %v3275_v39 = vsel %vm790_vm8, %v8112_v41, 0.0 }
0x1148   :  { %v8114_v35 = vpop.eup %8113  ;;  %3276 = vadd.xlane.f32.xlu0 %v3275_v39  ;;  %v3653_v39 = vld [vmem:[%s9626_s12 + $0x28] sm:$0xff] }
0x1149   :  { %v3272_v45 = vsel %vm790_vm8, %v8114_v35, 0.0 }
0x114a   :  { %3273 = vadd.xlane.f32.xlu1 %v3272_v45 }
0x11d1   :  { %v3277_v44 = vpop.xlane.xlu0 %3276 }
0x11d2   :  { %8115 = vrcp.f32 %v3277_v44 }
0x11d3   :  { %v3274_v25 = vpop.xlane.xlu1 %3273 }
0x11d4   :  { %8117 = vrcp.f32 %v3274_v25 }
0x11df   :  { %v8116_v46 = vpop.eup %8115 }
0x11e0   :  { %v3281_v11 = vmul.f32 %v8116_v46, %v8112_v41  ;;  %v3654_v41 = vld [vmem:[%s9626_s12 + $0x30] sm:$0xff] }
0x11e1   :  { %v8118_v33 = vpop.eup %8117 }
0x11e2   :  { %7760 = vmatmul.mubr.msk.f32.vlgmr.msra.gmra.mxu1 %vm790_vm8, %v3281_v11  ;;  %v3280_v7 = vmul.f32 %v8118_v33, %v8114_v35  ;;  %v3652_v35 = vld [vmem:[%s9626_s12 + $0x20] sm:$0xff] }
0x11e3   :  { %7774 = vmatpush3.msra.mxu1 %v3560_v60 }
0x11e4   :  { %7755 = vmatmul.mubr.msk.f32.vlgmr.msra.gmra.mxu0 %vm790_vm8, %v3280_v7  ;;  %v3548_v7 = vrot.slane %v8909_v4, %v8930_v22 }
0x11e5   :  { %7763 = vmatpush3.msra.mxu0 %v2149_v43 }
0x11e6   :  { %7764 = vmatprep.subr.mxu0 %v2148_v47 }
0x11e7   :  { %7765 = vmatpush3.msra.mxu0 %v2148_v47 }
0x11e8   :  { %7766 = vmatprep.subr.mxu0 %v2147_v40 }
0x11e9   :  { %7767 = vmatpush3.msra.mxu0 %v2147_v40 }
0x11ea   :  { %7768 = vmatprep.subr.mxu0 %v2146_v48 }
0x11eb   :  { %7769 = vmatpush3.msra.mxu0 %v2146_v48 }
0x11ec   :  { %7784 = vmatprep.subr.mxu0 %v3655_v38 }
0x12a2   :  { %v3426_v49 = vpop.f32.mrf.mxu1 }
0x12a3   :  { %v3431_v62 = vadd.f32 %v3426_v49, %v3111_v9 }
0x12a4   :  { %v3353_v50 = vpop.f32.mrf.mxu0  ;;  %v7761_v58 = vpop.f32.mrf.mxu1 }
0x12a5   :  { %v3430_v51 = vadd.f32 %v3353_v50, %v3110_v52  ;;  %v3554_v50 = vrot.slane %v8909_v4, %v8636_v56 }
0x12a6   :  { %v7756_v5 = vpop.f32.mrf.mxu0 }
0x12a7   :  { %7770 = vmatprep.mubr.msk.f32.mxu0 %vm281_vm0, %v3430_v51  ;;  %v3651_v5 = vld [vmem:[%s9626_s12 + $0x18] sm:$0xff] }
0x12a8   :  { %7771 = vmatmul.mubr.msk.f32.vlgmr.msra.gmra.mxu0 %vm281_vm0, %v3431_v62 }
0x12a9   :  { %7785 = vmatpush3.msra.mxu0 %v3655_v38 }
0x12aa   :  { %7786 = vmatprep.subr.mxu0 %v3654_v41 }
0x12ab   :  { %7787 = vmatpush3.msra.mxu0 %v3654_v41 }
0x12ac   :  { %7788 = vmatprep.subr.mxu0 %v3653_v39 }
0x12ad   :  { %7789 = vmatpush3.msra.mxu0 %v3653_v39 }
0x12ae   :  { %7790 = vmatprep.subr.mxu0 %v3652_v35 }
0x12af   :  { %7791 = vmatpush3.msra.mxu0 %v3652_v35 }
0x12b0   :  { %7792 = vmatprep.subr.mxu0 %v3651_v5 }
0x12b1   :  { %7793 = vmatpush3.msra.mxu0 %v3651_v5 }
0x12b2   :  { %7794 = vmatprep.subr.mxu0 %v3650_v59 }
0x12b3   :  { %7795 = vmatpush3.msra.mxu0 %v3650_v59 }
0x1368   :  { %v7772_v28 = vpop.f32.mrf.mxu0 }
0x1369   :  { %v3514_v10 = vadd.f32 %v7772_v28, %v3435_v3  ;;  %v3648_v28 = vld [vmem:[%s9626_s12] sm:$0xff] }
0x136a   :  { %v3508_v30 = vpop.f32.mrf.mxu0 }
0x136b   :  { %v3509_v57 = vadd.f32 %v3508_v30, %v3435_v3  ;;  %v3518_v16 = vadd.f32 %v3514_v10, %v8917_v21  ;;  %v3649_v3 = vld [vmem:[%s9626_s12 + $0x8] sm:$0xff]  ;;  %v3564_v10 = vrot.slane %v8909_v4, %v8692_v17 }
0x136c   :  { %7796 = vmatprep.subr.mxu0 %v3649_v3 }
0x136d   :  { %v3522_v52 = vsel %vm281_vm0, %v3518_v16, 0.0  ;;  %v3517_v9 = vadd.f32 %v3509_v57, %v8915_v18  ;;  %v3559_v18 = vld [vmem:[#allocation10 + $0x10] sm:$0xff]  ;;  %7797 = vmatpush3.msra.mxu0 %v3649_v3 }
0x136e   :  { %3523 = vadd.xlane.f32.xlu0 %v3522_v52  ;;  %7775 = vmatprep.subr.mxu1 %v3559_v18 }
0x136f   :  { %v3519_v42 = vsel %vm281_vm0, %v3517_v9, 0.0  ;;  %7776 = vmatpush3.msra.mxu1 %v3559_v18  ;;  %7798 = vmatprep.subr.mxu0 %v3648_v28 }
0x1370   :  { %3520 = vadd.xlane.f32.xlu1 %v3519_v42  ;;  %7777 = vmatprep.subr.mxu1 %v3558_v54 }
0x1371   :  { %7778 = vmatpush3.msra.mxu1 %v3558_v54  ;;  %7799 = vmatpush3.msra.mxu0 %v3648_v28  ;;  %v3773_v28 = vrot.slane %v8909_v4, %v8933_v23 }
0x1372   :  { %7779 = vmatprep.subr.mxu1 %v3557_v26  ;;  %7814 = vmatprep.subr.mxu0 %v8369_v6 }
0x1373   :  { %7780 = vmatpush3.msra.mxu1 %v3557_v26 }
0x13f7   :  { %v3524_v55 = vpop.xlane.xlu0 %3523 }
0x13f8   :  { %v3526_v53 = vmul.f32 0.03125, %v3524_v55  ;;  %v3659_v55 = vrot.slane %v8909_v4, %v8685_v13 }
0x13f9   :  { %v3521_v34 = vpop.xlane.xlu1 %3520 }
0x13fa   :  { %v3528_v29 = vsub.f32 %v3518_v16, %v3526_v53  ;;  %v3525_v37 = vmul.f32 0.03125, %v3521_v34 }
0x13fc   :  { %v3527_v36 = vsub.f32 %v3517_v9, %v3525_v37  ;;  %v3530_v32 = vmul.f32 %v3528_v29, %v3528_v29 }
0x13fe   :  { %v3534_v31 = vsel %vm281_vm0, %v3530_v32, 0.0  ;;  %v3529_v12 = vmul.f32 %v3527_v36, %v3527_v36 }
0x13ff   :  { %3535 = vadd.xlane.f32.xlu0 %v3534_v31 }
0x1400   :  { %v3531_v21 = vsel %vm281_vm0, %v3529_v12, 0.0 }
0x1401   :  { %3532 = vadd.xlane.f32.xlu1 %v3531_v21 }
0x1488   :  { %v3536_v45 = vpop.xlane.xlu0 %3535 }
0x1489   :  { %v3538_v43 = vmul.f32 0.03125, %v3536_v45 }
0x148a   :  { %v3533_v44 = vpop.xlane.xlu1 %3532 }
0x148b   :  { %v3540_v25 = vadd.f32 1e-05, %v3538_v43  ;;  %v3537_v46 = vmul.f32 0.03125, %v3533_v44  ;;  %v7232_v43 = vld [vmem:[%s9620_s6 + $0xb0] sm:$0xff]  ;;  %v7231_v44 = vld [vmem:[%s9620_s6 + $0xa8] sm:$0xff] }
0x148c   :  { %3828 = vmatprep.subr.mxu1 %v7232_v43 }
0x148d   :  { %8119 = vrsqrt.f32 %v3540_v25  ;;  %v3539_v11 = vadd.f32 1e-05, %v3537_v46  ;;  %v7229_v25 = vld [vmem:[%s9620_s6 + $0x98] sm:$0xff]  ;;  %v7228_v46 = vld [vmem:[%s9620_s6 + $0x90] sm:$0xff] }
0x148f   :  { %8121 = vrsqrt.f32 %v3539_v11  ;;  %v7226_v11 = vld [vmem:[%s9620_s6 + $0x80] sm:$0xff] }
0x149a   :  { %v8120_v33 = vpop.eup %8119 }
0x149b   :  { %v3544_v47 = vmul.f32 %v8120_v33, %v3528_v29  ;;  %v7225_v33 = vld [vmem:[%s9620_s6 + $0x78] sm:$0xff] }
0x149c   :  { %v8122_v40 = vpop.eup %8121 }
0x149d   :  { %v3543_v48 = vmul.f32 %v8122_v40, %v3527_v36  ;;  %v3550_v49 = vmul.f32 %v3548_v7, %v3544_v47  ;;  %v7222_v47 = vld [vmem:[%s9620_s6 + $0x60] sm:$0xff]  ;;  %v7233_v40 = vld [vmem:[%s9620_s6 + $0xb8] sm:$0xff] }
0x149f   :  { %v3549_v58 = vmul.f32 %v3548_v7, %v3543_v48  ;;  %v3556_v62 = vadd.f32 %v3554_v50, %v3550_v49  ;;  %v7223_v7 = vld [vmem:[%s9620_s6 + $0x68] sm:$0xff] }
0x14a1   :  { %v3555_v51 = vadd.f32 %v3554_v50, %v3549_v58 }
0x14a3   :  { %7781 = vmatprep.mubr.msk.f32.mxu1 %vm281_vm0, %v3555_v51 }
0x14a4   :  { %7782 = vmatmul.mubr.msk.f32.vlgmr.msra.gmra.mxu1 %vm281_vm0, %v3556_v62 }
0x14a5   :  { %3868 = vmatprep.mubr.f32.mxu1 %v8369_v6  ;;  %3829 = vmatpush1.msra.mxu1 %v7231_v44 }
0x14a6   :  { %3830 = vmatprep.subr.mxu1 %v7229_v25 }
0x14a7   :  { %3831 = vmatpush1.msra.mxu1 %v7228_v46 }
0x14a8   :  { %3832 = vmatprep.subr.mxu1 %v7226_v11 }
0x14a9   :  { %3833 = vmatpush1.msra.mxu1 %v7225_v33 }
0x14aa   :  { %3834 = vmatprep.subr.mxu1 %v7223_v7 }
0x14ab   :  { %3835 = vmatpush1.msra.mxu1 %v7222_v47 }
0x14ac   :  { %7803 = vmatprep.subr.mxu1 %v7233_v40 }
0x1564   :  { %v7783_v30 = vpop.f32.mrf.mxu1 }
0x1565   :  { %v3643_v57 = vadd.f32 %v7783_v30, %v3564_v10 }
0x1566   :  { %v3637_v16 = vpop.f32.mrf.mxu1 }
0x1567   :  { %v3638_v52 = vadd.f32 %v3637_v16, %v3564_v10  ;;  %v3647_v42 = vmax.f32 %v3643_v57, 0.0  ;;  %v3779_v57 = vrot.slane %v8909_v4, %v9084_v8  ;;  %v7224_v4 = vld [vmem:[%s9620_s6 + $0x70] sm:$0xff] }
0x1569   :  { %v3646_v9 = vmax.f32 %v3638_v52, 0.0 }
0x156b   :  { %7800 = vmatprep.mubr.msk.f32.mxu0 %vm3660_vm15, %v3646_v9  ;;  %v7230_v9 = vld [vmem:[%s9620_s6 + $0xa0] sm:$0xff] }
0x156c   :  { %7801 = vmatmul.mubr.msk.f32.vlgmr.msra.gmra.mxu0 %vm3660_vm15, %v3647_v42  ;;  %v7227_v42 = vld [vmem:[%s9620_s6 + $0x88] sm:$0xff] }
0x156d   :  { %7816 = vmatprep.mubr.msk.f32.mxu0 %vm8371_vm3, %v8369_v6 }
0x162c   :  { %v7802_v53 = vpop.f32.mrf.mxu0 }
0x162d   :  { %v3739_v34 = vadd.f32 %v7802_v53, %v3659_v55  ;;  %v9193_v53 = vld [vmem:[#allocation11 + $0x10] sm:$0xff] }
0x162e   :  { %v3733_v29 = vpop.f32.mrf.mxu0 }
0x162f   :  { %v3734_v37 = vadd.f32 %v3733_v29, %v3659_v55  ;;  %v3743_v36 = vadd.f32 %v3739_v34, %v3556_v62  ;;  %v3965_v34 = vrot.slane %v9193_v53, %v8685_v13 }
0x1631   :  { %v3747_v32 = vsel %vm281_vm0, %v3743_v36, 0.0  ;;  %v3742_v31 = vadd.f32 %v3734_v37, %v3555_v51 }
0x1632   :  { %3748 = vadd.xlane.f32.xlu0 %v3747_v32  ;;  %v3959_v32 = vrot.slane %v9193_v53, %v8692_v17 }
0x1633   :  { %v3744_v12 = vsel %vm281_vm0, %v3742_v31, 0.0 }
0x1634   :  { %3745 = vadd.xlane.f32.xlu1 %v3744_v12 }
0x16bb   :  { %v3749_v21 = vpop.xlane.xlu0 %3748 }
0x16bc   :  { %v3751_v60 = vmul.f32 0.03125, %v3749_v21 }
0x16bd   :  { %v3746_v18 = vpop.xlane.xlu1 %3745 }
0x16be   :  { %v3753_v54 = vsub.f32 %v3743_v36, %v3751_v60  ;;  %v3750_v26 = vmul.f32 0.03125, %v3746_v18 }
0x16c0   :  { %v3752_v38 = vsub.f32 %v3742_v31, %v3750_v26  ;;  %v3755_v41 = vmul.f32 %v3753_v54, %v3753_v54 }
0x16c2   :  { %v3759_v39 = vsel %vm281_vm0, %v3755_v41, 0.0  ;;  %v3754_v35 = vmul.f32 %v3752_v38, %v3752_v38  ;;  %v3971_v41 = vrot.slane %v9193_v53, %v8707_v24 }
0x16c3   :  { %3760 = vadd.xlane.f32.xlu0 %v3759_v39 }
0x16c4   :  { %v3756_v45 = vsel %vm281_vm0, %v3754_v35, 0.0 }
0x16c5   :  { %3757 = vadd.xlane.f32.xlu1 %v3756_v45 }
0x174c   :  { %v3761_v48 = vpop.xlane.xlu0 %3760 }
0x174d   :  { %v3763_v49 = vmul.f32 0.03125, %v3761_v48 }
0x174e   :  { %v3758_v50 = vpop.xlane.xlu1 %3757 }
0x174f   :  { %v3765_v58 = vadd.f32 1e-05, %v3763_v49  ;;  %v3762_v51 = vmul.f32 0.03125, %v3758_v50 }
0x1751   :  { %8123 = vrsqrt.f32 %v3765_v58  ;;  %v3764_v62 = vadd.f32 1e-05, %v3762_v51 }
0x1753   :  { %8125 = vrsqrt.f32 %v3764_v62 }
0x175e   :  { %v8124_v5 = vpop.eup %8123 }
0x175f   :  { %v3769_v10 = vmul.f32 %v8124_v5, %v3753_v54  ;;  %v9262_v5 = vld [vmem:[%s9618_s4 + $0x8] sm:$0xff] }
0x1760   :  { %v8126_v59 = vpop.eup %8125 }
0x1761   :  { %v3768_v3 = vmul.f32 %v8126_v59, %v3752_v38  ;;  %v3775_v52 = vmul.f32 %v3773_v28, %v3769_v10 }
0x1763   :  { %v3774_v30 = vmul.f32 %v3773_v28, %v3768_v3  ;;  %v9179_v55 = vadd.f32 %v3779_v57, %v3775_v52 }
0x1765   :  { %v9168_v16 = vadd.f32 %v3779_v57, %v3774_v30 }
0x1767   :  { %7234 = vmatmul.mubr.msk.f32.vlgmr.msra.gmra.mxu1 %vm281_vm0, %v9168_v16 }
0x1768   :  { %7804 = vmatpush3.msra.mxu1 %v7233_v40  ;;  %3874 = vmatprep.mubr.f32.mxu1 %v8369_v6  ;;  %v9254_v40 = vld [vmem:[%s9618_s4] sm:$0xff] }
0x1769   :  { %7805 = vmatprep.subr.mxu1 %v7230_v9 }
0x176a   :  { %7806 = vmatpush3.msra.mxu1 %v7230_v9 }
0x176b   :  { %7235 = vmatmul.mubr.msk.f32.gmra.mxu1 %vm281_vm0, %v9179_v55  ;;  %7807 = vmatprep.subr.mxu1 %v7227_v42 }
0x176c   :  { %7808 = vmatpush3.msra.mxu1 %v7227_v42  ;;  %7811 = vmatprep.mubr.msk.f32.mxu1 %vm281_vm0, %v9168_v16 }
0x176d   :  { %7809 = vmatprep.subr.mxu1 %v7224_v4 }
0x176e   :  { %7810 = vmatpush3.msra.mxu1 %v7224_v4 }
0x176f   :  { %7812 = vmatmul.mubr.msk.f32.vlgmr.msra.gmra.mxu1 %vm281_vm0, %v9179_v55  ;;  %7819 = vmatprep.subr.mxu1 %v8369_v6 }
0x1770   :  { %7821 = vmatprep.mubr.msk.f32.mxu1 %vm8371_vm3, %v8369_v6 }
0x1827   :  { %v3870_v29 = vpop.f32.mrf.mxu1 }
0x1828   :  { %v9206_v18 = vadd.f32 %v3959_v32, %v3870_v29 }
0x1829   :  { %v3872_v37 = vpop.f32.mrf.mxu1 }
0x182a   :  { %v9197_v36 = vadd.f32 %v3965_v34, %v3872_v37 }
0x182b   :  { %v3876_v31 = vpop.f32.mrf.mxu1 }
0x182c   :  { %v3979_v12 = vmul.f32 %v8700_v20, %v9197_v36  ;;  %v4157_v26 = vmul.f32 %v8713_v27, %v9197_v36  ;;  %v9221_v45 = vadd.f32 %v3959_v32, %v3876_v31 }
0x182d   :  { %v3878_v21 = vpop.f32.mrf.mxu1 }
0x182e   :  { %v9203_v60 = vadd.f32 %v3965_v34, %v3878_v21  ;;  %7815 = vmatpush3.xpose.msk.msra.mxu0 %vm281_vm0, %v3979_v12 }
0x182f   :  { %v7813_v54 = vpop.f32.mrf.mxu1  ;;  %7824 = vmatprep.subr.mxu0 %v8369_v6 }
0x1830   :  { %v3980_v38 = vmul.f32 %v8700_v20, %v9203_v60  ;;  %v4158_v43 = vmul.f32 %v8713_v27, %v9203_v60  ;;  %v9228_v44 = vadd.f32 %v7813_v54, %v3971_v41 }
0x1831   :  { %v3947_v39 = vpop.f32.mrf.mxu1  ;;  %7817 = vmatmul.mubr.msk.f32.vlgmr.msra.gmra.mxu0 %vm281_vm0, %v9206_v18 }
0x1832   :  { %v9217_v35 = vadd.f32 %v3971_v41, %v3947_v39  ;;  %7820 = vmatpush3.xpose.msk.msra.mxu1 %vm281_vm0, %v3980_v38  ;;  %7825 = vmatpush3.xpose.msk.msra.mxu0 %vm281_vm0, %v4157_v26  ;;  %v4328_v46 = vmul.f32 %v8713_v27, %v9228_v44 }
0x1833   :  { %7826 = vmatprep.mubr.msk.f32.mxu0 %vm8371_vm3, %v8369_v6  ;;  %7829 = vmatprep.subr.mxu1 %v8369_v6 }
0x1834   :  { %7834 = vmatprep.subr.mxu0 %v8369_v6  ;;  %v4327_v25 = vmul.f32 %v8713_v27, %v9217_v35 }
0x1835   :  { %7822 = vmatmul.mubr.msk.f32.vlgmr.msra.gmra.mxu1 %vm281_vm0, %v9221_v45  ;;  %7827 = vmatmul.mubr.msk.f32.vlgmr.msra.gmra.mxu0 %vm281_vm0, %v9206_v18 }
0x1836   :  { %7830 = vmatpush3.xpose.msk.msra.mxu1 %vm281_vm0, %v4158_v43  ;;  %7835 = vmatpush3.msra.mxu0 %v4327_v25 }
0x1837   :  { %7831 = vmatprep.mubr.msk.f32.mxu1 %vm8371_vm3, %v8369_v6  ;;  %7839 = vmatprep.subr.mxu1 %v8369_v6 }
0x1838   :  { %7836 = vmatprep.mubr.msk.f32.mxu0 %vm8371_vm3, %v8369_v6  ;;  %7844 = vmatprep.subr.mxu0 %v8369_v6 }
0x1839   :  { %7832 = vmatmul.mubr.msk.f32.vlgmr.msra.gmra.mxu1 %vm281_vm0, %v9221_v45 }
0x183a   :  { %7840 = vmatpush3.msra.mxu1 %v4328_v46  ;;  %7841 = vmatprep.mubr.msk.f32.mxu1 %vm8371_vm3, %v8369_v6 }
0x183b   :  { %7849 = vmatprep.subr.mxu1 %v8369_v6 }
0x18f1   :  { %v4053_v11 = vpop.f32.mrf.mxu0 }
0x18f2   :  { %v4054_v58 = vadd.f32 %v9254_v40, %v4053_v11 }
0x18f3   :  { %v7818_v33 = vpop.f32.mrf.mxu0 }
0x18f4   :  { %v4133_v10 = vsel %vm790_vm8, %v4054_v58, -inf }
0x18f5   :  { %v4129_v7 = vpop.f32.mrf.mxu1  ;;  %v4228_v47 = vpop.f32.mrf.mxu0 }
0x18f6   :  { %v4229_v48 = vadd.f32 %v9254_v40, %v4228_v47  ;;  %v4130_v28 = vadd.f32 %v9262_v5, %v4129_v7 }
0x18f7   :  { %v7823_v49 = vpop.f32.mrf.mxu1  ;;  %v7828_v50 = vpop.f32.mrf.mxu0 }
0x18f8   :  { %v4305_v51 = vsel %vm790_vm8, %v4229_v48, -inf  ;;  %v4136_v57 = vsel %vm790_vm8, %v4130_v28, -inf }
0x18f9   :  { %4306 = vmax.xlane.f32.xlu1 %v4305_v51  ;;  %v4301_v62 = vpop.f32.mrf.mxu1 }
0x18fa   :  { %v4302_v59 = vadd.f32 %v9262_v5, %v4301_v62 }
0x18fb   :  { %v7833_v3 = vpop.f32.mrf.mxu1 }
0x18fc   :  { %v4308_v30 = vsel %vm790_vm8, %v4302_v59, -inf  ;;  %v4621_v3 = vmul.f32 %v8790_v1, %v9197_v36 }
0x18fd   :  { %4134 = vmax.xlane.f32.xlu1 %v4133_v10  ;;  %4309 = vmax.xlane.f32.xlu0 %v4308_v30  ;;  %v4156_v10 = vmul.f32 %v8700_v20, %v9228_v44 }
0x1901   :  { %4137 = vmax.xlane.f32.xlu0 %v4136_v57 }
0x1982   :  { %v4307_v52 = vpop.xlane.xlu1 %4306 }
0x1983   :  { %v4311_v9 = vsub.f32 %v4229_v48, %v4307_v52  ;;  %v4791_v52 = vmul.f32 %v8790_v1, %v9217_v35 }
0x1985   :  { %v4313_v42 = vmul.f32 1.442695, %v4311_v9  ;;  %v4622_v9 = vmul.f32 %v8790_v1, %v9203_v60 }
0x1986   :  { %v4135_v4 = vpop.xlane.xlu1 %4134  ;;  %v4310_v34 = vpop.xlane.xlu0 %4309 }
0x1987   :  { %8127 = vpow2.f32 %v4313_v42  ;;  %v4139_v29 = vsub.f32 %v4054_v58, %v4135_v4  ;;  %v4312_v37 = vsub.f32 %v4302_v59, %v4310_v34  ;;  %v4155_v58 = vmul.f32 %v8700_v20, %v9217_v35 }
0x1988   :  { %v4792_v42 = vmul.f32 %v8790_v1, %v9228_v44 }
0x1989   :  { %v4141_v32 = vmul.f32 1.442695, %v4139_v29  ;;  %v4315_v31 = vmul.f32 1.442695, %v4312_v37 }
0x198a   :  { %v4138_v12 = vpop.xlane.xlu0 %4137 }
0x198b   :  { %8129 = vpow2.f32 %v4141_v32  ;;  %v4140_v21 = vsub.f32 %v4130_v28, %v4138_v12 }
0x198c   :  { %8131 = vpow2.f32 %v4315_v31 }
0x198d   :  { %v4143_v54 = vmul.f32 1.442695, %v4140_v21 }
0x198f   :  { %8133 = vpow2.f32 %v4143_v54 }
0x1994   :  { %v8128_v26 = vpop.eup %8127 }
0x1995   :  { %v4317_v38 = vsel %vm790_vm8, %v8128_v26, 0.0 }
0x1996   :  { %4318 = vadd.xlane.f32.xlu1 %v4317_v38 }
0x1998   :  { %v8130_v41 = vpop.eup %8129 }
0x1999   :  { %v8132_v39 = vpop.eup %8131  ;;  %v4145_v43 = vsel %vm790_vm8, %v8130_v41, 0.0 }
0x199a   :  { %4146 = vadd.xlane.f32.xlu1 %v4145_v43  ;;  %v4320_v25 = vsel %vm790_vm8, %v8132_v39, 0.0 }
0x199b   :  { %4321 = vadd.xlane.f32.xlu0 %v4320_v25 }
0x199c   :  { %v8134_v46 = vpop.eup %8133 }
0x199d   :  { %v4148_v11 = vsel %vm790_vm8, %v8134_v46, 0.0 }
0x199f   :  { %4149 = vadd.xlane.f32.xlu0 %v4148_v11 }
0x1a1f   :  { %v4319_v33 = vpop.xlane.xlu1 %4318 }
0x1a20   :  { %8135 = vrcp.f32 %v4319_v33 }
0x1a23   :  { %v4147_v7 = vpop.xlane.xlu1 %4146 }
0x1a24   :  { %8137 = vrcp.f32 %v4147_v7  ;;  %v4322_v47 = vpop.xlane.xlu0 %4321 }
0x1a25   :  { %8139 = vrcp.f32 %v4322_v47 }
0x1a28   :  { %v4150_v48 = vpop.xlane.xlu0 %4149 }
0x1a29   :  { %8141 = vrcp.f32 %v4150_v48 }
0x1a2d   :  { %v8136_v49 = vpop.eup %8135 }
0x1a2e   :  { %v4325_v50 = vmul.f32 %v8136_v49, %v8128_v26 }
0x1a30   :  { %7837 = vmatmul.mubr.msk.f32.vlgmr.msra.gmra.mxu0 %vm790_vm8, %v4325_v50 }
0x1a31   :  { %v8138_v51 = vpop.eup %8137  ;;  %7845 = vmatpush3.msra.mxu0 %v4155_v58  ;;  %7846 = vmatprep.mubr.msk.f32.mxu0 %vm8371_vm3, %v8369_v6 }
0x1a32   :  { %v8140_v62 = vpop.eup %8139  ;;  %7854 = vmatprep.subr.mxu0 %v8369_v6  ;;  %v4153_v59 = vmul.f32 %v8138_v51, %v8130_v41 }
0x1a33   :  { %v4326_v28 = vmul.f32 %v8140_v62, %v8132_v39 }
0x1a34   :  { %7847 = vmatmul.mubr.msk.f32.vlgmr.msra.gmra.mxu0 %vm790_vm8, %v4153_v59 }
0x1a35   :  { %7842 = vmatmul.mubr.msk.f32.vlgmr.msra.gmra.mxu1 %vm790_vm8, %v4326_v28  ;;  %7855 = vmatpush3.xpose.msk.msra.mxu0 %vm281_vm0, %v4621_v3 }
0x1a36   :  { %v8142_v30 = vpop.eup %8141  ;;  %7850 = vmatpush3.msra.mxu1 %v4156_v10  ;;  %7851 = vmatprep.mubr.msk.f32.mxu1 %vm8371_vm3, %v8369_v6 }
0x1a37   :  { %7856 = vmatprep.mubr.msk.f32.mxu0 %vm8371_vm3, %v8369_v6  ;;  %7859 = vmatprep.subr.mxu1 %v8369_v6  ;;  %v4154_v57 = vmul.f32 %v8142_v30, %v8134_v46 }
0x1a38   :  { %7864 = vmatprep.subr.mxu0 %v8369_v6  ;;  %7857 = vmatmul.mubr.msk.f32.vlgmr.msra.gmra.mxu0 %vm281_vm0, %v9206_v18 }
0x1a39   :  { %7852 = vmatmul.mubr.msk.f32.vlgmr.msra.gmra.mxu1 %vm790_vm8, %v4154_v57  ;;  %7865 = vmatpush3.msra.mxu0 %v4791_v52  ;;  %v4941_v52 = vmul.f32 %v8836_v15, %v9197_v36  ;;  %v5112_v36 = vmul.f32 %v8836_v15, %v9228_v44 }
0x1a3a   :  { %7860 = vmatpush3.xpose.msk.msra.mxu1 %vm281_vm0, %v4622_v9  ;;  %7861 = vmatprep.mubr.msk.f32.mxu1 %vm8371_vm3, %v8369_v6 }
0x1a3b   :  { %7869 = vmatprep.subr.mxu1 %v8369_v6  ;;  %7866 = vmatprep.mubr.msk.f32.mxu0 %vm8371_vm3, %v8369_v6 }
0x1a3c   :  { %7874 = vmatprep.subr.mxu0 %v8369_v6 }
0x1a3d   :  { %7862 = vmatmul.mubr.msk.f32.vlgmr.msra.gmra.mxu1 %vm281_vm0, %v9221_v45 }
0x1a3e   :  { %7870 = vmatpush3.msra.mxu1 %v4792_v42  ;;  %7871 = vmatprep.mubr.msk.f32.mxu1 %vm8371_vm3, %v8369_v6 }
0x1a3f   :  { %7879 = vmatprep.subr.mxu1 %v8369_v6 }
0x1af0   :  { %v4398_v4 = vpop.f32.mrf.mxu0 }
0x1af2   :  { %v7838_v34 = vpop.f32.mrf.mxu0 }
0x1af3   :  { %v4942_v34 = vmul.f32 %v8836_v15, %v9203_v60 }
0x1af4   :  { %v4544_v29 = vpop.f32.mrf.mxu0 }
0x1af5   :  { %v4471_v37 = vpop.f32.mrf.mxu1  ;;  %v4545_v32 = vadd.f32 %v4544_v29, %v4398_v4  ;;  %v5111_v4 = vmul.f32 %v8836_v15, %v9217_v35 }
0x1af6   :  { %v7848_v31 = vpop.f32.mrf.mxu0 }
0x1af7   :  { %v7843_v12 = vpop.f32.mrf.mxu1 }
0x1af8   :  { %v4692_v21 = vpop.f32.mrf.mxu0 }
0x1af9   :  { %v4617_v54 = vpop.f32.mrf.mxu1  ;;  %v4693_v26 = vadd.f32 %v9254_v40, %v4692_v21 }
0x1afa   :  { %v4618_v38 = vadd.f32 %v4617_v54, %v4471_v37  ;;  %v7858_v41 = vpop.f32.mrf.mxu0 }
0x1afb   :  { %v7853_v39 = vpop.f32.mrf.mxu1  ;;  %v4769_v43 = vsel %vm790_vm8, %v4693_v26, -inf }
0x1afc   :  { %4770 = vmax.xlane.f32.xlu1 %v4769_v43 }
0x1afd   :  { %v4765_v25 = vpop.f32.mrf.mxu1 }
0x1afe   :  { %v4766_v46 = vadd.f32 %v9262_v5, %v4765_v25 }
0x1aff   :  { %v7863_v11 = vpop.f32.mrf.mxu1 }
0x1b00   :  { %v4772_v33 = vsel %vm790_vm8, %v4766_v46, -inf }
0x1b01   :  { %4773 = vmax.xlane.f32.xlu0 %v4772_v33 }
0x1b85   :  { %v4771_v7 = vpop.xlane.xlu1 %4770 }
0x1b86   :  { %v4775_v47 = vsub.f32 %v4693_v26, %v4771_v7 }
0x1b88   :  { %v4777_v48 = vmul.f32 1.442695, %v4775_v47 }
0x1b8a   :  { %8143 = vpow2.f32 %v4777_v48  ;;  %v4774_v49 = vpop.xlane.xlu0 %4773 }
0x1b8b   :  { %v4776_v50 = vsub.f32 %v4766_v46, %v4774_v49 }
0x1b8d   :  { %v4779_v58 = vmul.f32 1.442695, %v4776_v50 }
0x1b8f   :  { %8145 = vpow2.f32 %v4779_v58 }
0x1b97   :  { %v8144_v51 = vpop.eup %8143 }
0x1b98   :  { %v4781_v62 = vsel %vm790_vm8, %v8144_v51, 0.0 }
0x1b99   :  { %4782 = vadd.xlane.f32.xlu1 %v4781_v62 }
0x1b9c   :  { %v8146_v59 = vpop.eup %8145 }
0x1b9d   :  { %v4784_v3 = vsel %vm790_vm8, %v8146_v59, 0.0 }
0x1b9e   :  { %4785 = vadd.xlane.f32.xlu0 %v4784_v3  ;;  %v7239_v3 = vld [vmem:[%s9621_s7 + $0x28] sm:$0xff] }
0x1c22   :  { %v4783_v28 = vpop.xlane.xlu1 %4782 }
0x1c23   :  { %8147 = vrcp.f32 %v4783_v28  ;;  %v7238_v28 = vld [vmem:[%s9621_s7 + $0x20] sm:$0xff] }
0x1c27   :  { %v4786_v10 = vpop.xlane.xlu0 %4785 }
0x1c28   :  { %8149 = vrcp.f32 %v4786_v10 }
0x1c30   :  { %v8148_v30 = vpop.eup %8147 }
0x1c31   :  { %v4789_v57 = vmul.f32 %v8148_v30, %v8144_v51 }
0x1c33   :  { %7867 = vmatmul.mubr.msk.f32.vlgmr.msra.gmra.mxu0 %vm790_vm8, %v4789_v57 }
0x1c34   :  { %7875 = vmatpush3.xpose.msk.msra.mxu0 %vm281_vm0, %v4941_v52  ;;  %7876 = vmatprep.mubr.msk.f32.mxu0 %vm8371_vm3, %v8369_v6  ;;  %v9368_v52 = vadd.f32 %v8652_v0, %v8647_v61  ;;  %v5264_v61 = vrot.slane %v9193_v53, %v8898_v19 }
0x1c35   :  { %v8150_v9 = vpop.eup %8149  ;;  %7884 = vmatprep.subr.mxu0 %v8369_v6 }
0x1c36   :  { %v4790_v42 = vmul.f32 %v8150_v9, %v8146_v59  ;;  %v7240_v59 = vld [vmem:[%s9621_s7 + $0x30] sm:$0xff] }
0x1c37   :  { %7877 = vmatmul.mubr.msk.f32.vlgmr.msra.gmra.mxu0 %vm281_vm0, %v9206_v18 }
0x1c38   :  { %7872 = vmatmul.mubr.msk.f32.vlgmr.msra.gmra.mxu1 %vm790_vm8, %v4790_v42  ;;  %7885 = vmatpush3.msra.mxu0 %v5111_v4  ;;  %v5493_v4 = vmul.f32 %v8700_v20, %v9368_v52 }
0x1c39   :  { %7880 = vmatpush3.xpose.msk.msra.mxu1 %vm281_vm0, %v4942_v34  ;;  %7881 = vmatprep.mubr.msk.f32.mxu1 %vm8371_vm3, %v8369_v6 }
0x1c3a   :  { %7889 = vmatprep.subr.mxu1 %v8369_v6  ;;  %7886 = vmatprep.mubr.msk.f32.mxu0 %vm8371_vm3, %v8369_v6 }
0x1c3c   :  { %7882 = vmatmul.mubr.msk.f32.vlgmr.msra.gmra.mxu1 %vm281_vm0, %v9221_v45 }
0x1c3d   :  { %7890 = vmatpush3.msra.mxu1 %v5112_v36  ;;  %7891 = vmatprep.mubr.msk.f32.mxu1 %vm8371_vm3, %v8369_v6 }
0x1cf3   :  { %v4862_v60 = vpop.f32.mrf.mxu0 }
0x1cf4   :  { %v4939_v18 = vadd.f32 %v4862_v60, %v4545_v32 }
0x1cf5   :  { %v7868_v35 = vpop.f32.mrf.mxu0 }
0x1cf7   :  { %v5012_v29 = vpop.f32.mrf.mxu0 }
0x1cf8   :  { %v4935_v37 = vpop.f32.mrf.mxu1  ;;  %v5013_v31 = vadd.f32 %v9254_v40, %v5012_v29 }
0x1cf9   :  { %v4940_v12 = vadd.f32 %v4935_v37, %v4618_v38  ;;  %v7878_v21 = vpop.f32.mrf.mxu0 }
0x1cfa   :  { %v7873_v54 = vpop.f32.mrf.mxu1  ;;  %v5089_v26 = vsel %vm790_vm8, %v5013_v31, -inf }
0x1cfb   :  { %5090 = vmax.xlane.f32.xlu1 %v5089_v26 }
0x1cfc   :  { %v5085_v44 = vpop.f32.mrf.mxu1 }
0x1cfd   :  { %v5086_v45 = vadd.f32 %v9262_v5, %v5085_v44  ;;  %v7241_v5 = vld [vmem:[%s9621_s7 + $0x38] sm:$0xff] }
0x1cfe   :  { %v7883_v41 = vpop.f32.mrf.mxu1  ;;  %7894 = vmatprep.subr.mxu0 %v7241_v5 }
0x1cff   :  { %v5092_v39 = vsel %vm790_vm8, %v5086_v45, -inf }
0x1d00   :  { %5093 = vmax.xlane.f32.xlu0 %v5092_v39 }
0x1d84   :  { %v5091_v43 = vpop.xlane.xlu1 %5090 }
0x1d85   :  { %v5095_v32 = vsub.f32 %v5013_v31, %v5091_v43 }
0x1d87   :  { %v5097_v25 = vmul.f32 1.442695, %v5095_v32  ;;  %v5390_v32 = vld [vmem:[#allocation7 + $0x38] sm:$0xff] }
0x1d88   :  { %7905 = vmatprep.subr.mxu1 %v5390_v32 }
0x1d89   :  { %8151 = vpow2.f32 %v5097_v25  ;;  %v5094_v46 = vpop.xlane.xlu0 %5093  ;;  %v5388_v25 = vld [vmem:[#allocation7 + $0x28] sm:$0xff] }
0x1d8a   :  { %v5096_v11 = vsub.f32 %v5086_v45, %v5094_v46  ;;  %v5387_v46 = vld [vmem:[#allocation7 + $0x20] sm:$0xff] }
0x1d8c   :  { %v5099_v40 = vmul.f32 1.442695, %v5096_v11 }
0x1d8e   :  { %8153 = vpow2.f32 %v5099_v40 }
0x1d96   :  { %v8152_v38 = vpop.eup %8151 }
0x1d97   :  { %v5101_v33 = vsel %vm790_vm8, %v8152_v38, 0.0 }
0x1d98   :  { %5102 = vadd.xlane.f32.xlu1 %v5101_v33 }
0x1d9b   :  { %v8154_v7 = vpop.eup %8153 }
0x1d9c   :  { %v5104_v47 = vsel %vm790_vm8, %v8154_v7, 0.0 }
0x1d9d   :  { %5105 = vadd.xlane.f32.xlu0 %v5104_v47 }
0x1e21   :  { %v5103_v48 = vpop.xlane.xlu1 %5102 }
0x1e22   :  { %8155 = vrcp.f32 %v5103_v48 }
0x1e26   :  { %v5106_v49 = vpop.xlane.xlu0 %5105 }
0x1e27   :  { %8157 = vrcp.f32 %v5106_v49 }
0x1e2f   :  { %v8156_v50 = vpop.eup %8155 }
0x1e30   :  { %v5109_v58 = vmul.f32 %v8156_v50, %v8152_v38 }
0x1e32   :  { %7887 = vmatmul.mubr.msk.f32.vlgmr.msra.gmra.mxu0 %vm790_vm8, %v5109_v58 }
0x1e33   :  { %7895 = vmatpush3.msra.mxu0 %v7241_v5  ;;  %v9387_v5 = vld [vmem:[#allocation11 + $0x18] sm:$0xff] }
0x1e34   :  { %v8158_v51 = vpop.eup %8157  ;;  %7896 = vmatprep.subr.mxu0 %v7240_v59  ;;  %v5377_v49 = vrot.slane %v9387_v5, %v8707_v24  ;;  %v5394_v24 = vrot.slane %v9193_v53, %v8930_v22 }
0x1e35   :  { %v5110_v62 = vmul.f32 %v8158_v51, %v8154_v7  ;;  %7897 = vmatpush3.msra.mxu0 %v7240_v59  ;;  %v5383_v59 = vrot.slane %v9387_v5, %v8898_v19  ;;  %v5485_v19 = vrot.slane %v9193_v53, %v8933_v23 }
0x1e36   :  { %7898 = vmatprep.subr.mxu0 %v7239_v3 }
0x1e37   :  { %7892 = vmatmul.mubr.msk.f32.vlgmr.msra.gmra.mxu1 %vm790_vm8, %v5110_v62  ;;  %7899 = vmatpush3.msra.mxu0 %v7239_v3  ;;  %v9425_v53 = vadd.f32 %v5485_v19, %v8649_v63 }
0x1e38   :  { %7900 = vmatprep.subr.mxu0 %v7238_v28  ;;  %7906 = vmatpush3.msra.mxu1 %v5390_v32 }
0x1e39   :  { %7901 = vmatpush3.msra.mxu0 %v7238_v28  ;;  %v5841_v63 = vmul.f32 %v8713_v27, %v9425_v53 }
0x1e3a   :  { %7916 = vmatprep.subr.mxu0 %v8369_v6 }
0x1ef2   :  { %v5182_v10 = vpop.f32.mrf.mxu0 }
0x1ef3   :  { %v5259_v30 = vadd.f32 %v5182_v10, %v4939_v18 }
0x1ef4   :  { %v7888_v57 = vpop.f32.mrf.mxu0 }
0x1ef5   :  { %7902 = vmatprep.mubr.msk.f32.mxu0 %vm281_vm0, %v5259_v30  ;;  %v5494_v30 = vmul.f32 %v8700_v20, %v8655_v2 }
0x1ef7   :  { %v5255_v9 = vpop.f32.mrf.mxu1 }
0x1ef8   :  { %v5260_v42 = vadd.f32 %v5255_v9, %v4940_v12 }
0x1ef9   :  { %v7893_v34 = vpop.f32.mrf.mxu1 }
0x1efa   :  { %7903 = vmatmul.mubr.msk.f32.vlgmr.msra.gmra.mxu0 %vm281_vm0, %v5260_v42  ;;  %v5672_v42 = vmul.f32 %v8713_v27, %v8655_v2 }
0x1efb   :  { %7917 = vmatpush3.xpose.msk.msra.mxu0 %vm281_vm0, %v5493_v4  ;;  %7918 = vmatprep.mubr.msk.f32.mxu0 %vm8371_vm3, %v8369_v6  ;;  %v9416_v4 = vadd.f32 %v5485_v19, %v8687_v14 }
0x1efc   :  { %7926 = vmatprep.subr.mxu0 %v8369_v6 }
0x1efd   :  { %v5842_v14 = vmul.f32 %v8713_v27, %v9416_v4 }
0x1fba   :  { %v7904_v0 = vpop.f32.mrf.mxu0 }
0x1fbb   :  { %v5343_v36 = vadd.f32 %v7904_v0, %v5264_v61  ;;  %v5671_v0 = vmul.f32 %v8713_v27, %v9368_v52  ;;  %v9454_v27 = vld [vmem:[%s9619_s5 + $0x8] sm:$0xff] }
0x1fbc   :  { %v5337_v60 = vpop.f32.mrf.mxu0 }
0x1fbd   :  { %v5338_v18 = vadd.f32 %v5337_v60, %v5264_v61  ;;  %v5347_v35 = vadd.f32 %v5343_v36, %v9179_v55 }
0x1fbf   :  { %v5351_v29 = vsel %vm281_vm0, %v5347_v35, 0.0  ;;  %v5346_v37 = vadd.f32 %v5338_v18, %v9168_v16  ;;  %v5389_v16 = vld [vmem:[#allocation7 + $0x30] sm:$0xff] }
0x1fc0   :  { %5352 = vadd.xlane.f32.xlu0 %v5351_v29  ;;  %7907 = vmatprep.subr.mxu1 %v5389_v16 }
0x1fc1   :  { %v5348_v31 = vsel %vm281_vm0, %v5346_v37, 0.0  ;;  %7908 = vmatpush3.msra.mxu1 %v5389_v16 }
0x1fc2   :  { %5349 = vadd.xlane.f32.xlu1 %v5348_v31  ;;  %7909 = vmatprep.subr.mxu1 %v5388_v25 }
0x1fc3   :  { %7910 = vmatpush3.msra.mxu1 %v5388_v25 }
0x1fc4   :  { %7911 = vmatprep.subr.mxu1 %v5387_v46 }
0x1fc5   :  { %7912 = vmatpush3.msra.mxu1 %v5387_v46 }
0x1fc6   :  { %7921 = vmatprep.subr.mxu1 %v8369_v6 }
0x2049   :  { %v5353_v12 = vpop.xlane.xlu0 %5352 }
0x204a   :  { %v5355_v21 = vmul.f32 0.03125, %v5353_v12 }
0x204b   :  { %v5350_v54 = vpop.xlane.xlu1 %5349 }
0x204c   :  { %v5357_v26 = vsub.f32 %v5347_v35, %v5355_v21  ;;  %v5354_v44 = vmul.f32 0.03125, %v5350_v54  ;;  %v9461_v54 = vld [vmem:[%s9619_s5] sm:$0xff] }
0x204e   :  { %v5356_v45 = vsub.f32 %v5346_v37, %v5354_v44  ;;  %v5359_v41 = vmul.f32 %v5357_v26, %v5357_v26 }
0x2050   :  { %v5363_v39 = vsel %vm281_vm0, %v5359_v41, 0.0  ;;  %v5358_v43 = vmul.f32 %v5356_v45, %v5356_v45 }
0x2051   :  { %5364 = vadd.xlane.f32.xlu0 %v5363_v39 }
0x2052   :  { %v5360_v55 = vsel %vm281_vm0, %v5358_v43, 0.0 }
0x2053   :  { %5361 = vadd.xlane.f32.xlu1 %v5360_v55 }
0x20da   :  { %v5365_v11 = vpop.xlane.xlu0 %5364 }
0x20db   :  { %v5367_v40 = vmul.f32 0.03125, %v5365_v11 }
0x20dc   :  { %v5362_v38 = vpop.xlane.xlu1 %5361 }
0x20dd   :  { %v5369_v33 = vadd.f32 1e-05, %v5367_v40  ;;  %v5366_v7 = vmul.f32 0.03125, %v5362_v38 }
0x20df   :  { %8159 = vrsqrt.f32 %v5369_v33  ;;  %v5368_v47 = vadd.f32 1e-05, %v5366_v7 }
0x20e1   :  { %8161 = vrsqrt.f32 %v5368_v47 }
0x20ec   :  { %v8160_v48 = vpop.eup %8159 }
0x20ed   :  { %v5373_v50 = vmul.f32 %v8160_v48, %v5357_v26 }
0x20ee   :  { %v8162_v58 = vpop.eup %8161 }
0x20ef   :  { %v5372_v51 = vmul.f32 %v8162_v58, %v5356_v45  ;;  %v5379_v62 = vmul.f32 %v5377_v49, %v5373_v50 }
0x20f1   :  { %v5378_v3 = vmul.f32 %v5377_v49, %v5372_v51  ;;  %v9395_v10 = vadd.f32 %v5383_v59, %v5379_v62 }
0x20f3   :  { %v9393_v28 = vadd.f32 %v5383_v59, %v5378_v3 }
0x20f5   :  { %7913 = vmatprep.mubr.msk.f32.mxu1 %vm281_vm0, %v9393_v28 }
0x20f6   :  { %7914 = vmatmul.mubr.msk.f32.vlgmr.msra.gmra.mxu1 %vm281_vm0, %v9395_v10 }
0x20f7   :  { %7922 = vmatpush3.xpose.msk.msra.mxu1 %vm281_vm0, %v5494_v30  ;;  %7923 = vmatprep.mubr.msk.f32.mxu1 %vm8371_vm3, %v8369_v6 }
0x20f8   :  { %7931 = vmatprep.subr.mxu1 %v8369_v6 }
0x21b6   :  { %v7915_v57 = vpop.f32.mrf.mxu1 }
0x21b7   :  { %v9411_v9 = vadd.f32 %v7915_v57, %v5394_v24 }
0x21b8   :  { %v5467_v34 = vpop.f32.mrf.mxu1 }
0x21b9   :  { %v9418_v61 = vadd.f32 %v5467_v34, %v5394_v24  ;;  %7924 = vmatmul.mubr.msk.f32.vlgmr.msra.gmra.mxu1 %vm281_vm0, %v9411_v9 }
0x21ba   :  { %7932 = vmatpush3.xpose.msk.msra.mxu1 %vm281_vm0, %v5672_v42  ;;  %7933 = vmatprep.mubr.msk.f32.mxu1 %vm8371_vm3, %v8369_v6 }
0x21bb   :  { %7919 = vmatmul.mubr.msk.f32.vlgmr.msra.gmra.mxu0 %vm281_vm0, %v9418_v61  ;;  %7941 = vmatprep.subr.mxu1 %v8369_v6 }
0x21bc   :  { %7927 = vmatpush3.xpose.msk.msra.mxu0 %vm281_vm0, %v5671_v0  ;;  %7928 = vmatprep.mubr.msk.f32.mxu0 %vm8371_vm3, %v8369_v6 }
0x21bd   :  { %7934 = vmatmul.mubr.msk.f32.vlgmr.msra.gmra.mxu1 %vm281_vm0, %v9411_v9  ;;  %7936 = vmatprep.subr.mxu0 %v8369_v6 }
0x21be   :  { %7942 = vmatpush3.msra.mxu1 %v5842_v14  ;;  %7943 = vmatprep.mubr.msk.f32.mxu1 %vm8371_vm3, %v8369_v6 }
0x21bf   :  { %7929 = vmatmul.mubr.msk.f32.vlgmr.msra.gmra.mxu0 %vm281_vm0, %v9418_v61  ;;  %7951 = vmatprep.subr.mxu1 %v8369_v6 }
0x21c0   :  { %7937 = vmatpush3.msra.mxu0 %v5841_v63  ;;  %7938 = vmatprep.mubr.msk.f32.mxu0 %vm8371_vm3, %v8369_v6 }
0x21c1   :  { %7946 = vmatprep.subr.mxu0 %v8369_v6 }
0x2279   :  { %v5643_v36 = vpop.f32.mrf.mxu1 }
0x227a   :  { %v5644_v21 = vadd.f32 %v9454_v27, %v5643_v36  ;;  %v5670_v36 = vmul.f32 %v8700_v20, %v9416_v4 }
0x227b   :  { %v5567_v60 = vpop.f32.mrf.mxu0  ;;  %v7925_v18 = vpop.f32.mrf.mxu1 }
0x227c   :  { %v5568_v41 = vadd.f32 %v9461_v54, %v5567_v60  ;;  %v5650_v43 = vsel %vm790_vm8, %v5644_v21, -inf }
0x227d   :  { %v7920_v35 = vpop.f32.mrf.mxu0  ;;  %v5815_v29 = vpop.f32.mrf.mxu1 }
0x227e   :  { %v5816_v37 = vadd.f32 %v9454_v27, %v5815_v29  ;;  %v5647_v55 = vsel %vm790_vm8, %v5568_v41, -inf  ;;  %v5669_v35 = vmul.f32 %v8700_v20, %v9425_v53 }
0x227f   :  { %v5742_v31 = vpop.f32.mrf.mxu0  ;;  %v7935_v12 = vpop.f32.mrf.mxu1 }
0x2280   :  { %v5743_v26 = vadd.f32 %v9461_v54, %v5742_v31  ;;  %v5822_v44 = vsel %vm790_vm8, %v5816_v37, -inf  ;;  %v6136_v31 = vmul.f32 %v8790_v1, %v8655_v2  ;;  %v6135_v12 = vmul.f32 %v8790_v1, %v9368_v52 }
0x2281   :  { %5823 = vmax.xlane.f32.xlu0 %v5822_v44  ;;  %v7930_v45 = vpop.f32.mrf.mxu0 }
0x2282   :  { %v5819_v39 = vsel %vm790_vm8, %v5743_v26, -inf }
0x2283   :  { %5820 = vmax.xlane.f32.xlu1 %v5819_v39 }
0x2285   :  { %5651 = vmax.xlane.f32.xlu0 %v5650_v43 }
0x2287   :  { %5648 = vmax.xlane.f32.xlu1 %v5647_v55 }
0x230a   :  { %v5824_v32 = vpop.xlane.xlu0 %5823 }
0x230b   :  { %v5826_v16 = vsub.f32 %v5816_v37, %v5824_v32 }
0x230c   :  { %v5821_v25 = vpop.xlane.xlu1 %5820 }
0x230d   :  { %v5829_v46 = vmul.f32 1.442695, %v5826_v16  ;;  %v5825_v11 = vsub.f32 %v5743_v26, %v5821_v25  ;;  %v6305_v26 = vmul.f32 %v8790_v1, %v9425_v53 }
0x230e   :  { %v5652_v40 = vpop.xlane.xlu0 %5651 }
0x230f   :  { %8163 = vpow2.f32 %v5829_v46  ;;  %v5827_v38 = vmul.f32 1.442695, %v5825_v11  ;;  %v5654_v33 = vsub.f32 %v5644_v21, %v5652_v40  ;;  %v6306_v21 = vmul.f32 %v8790_v1, %v9416_v4 }
0x2310   :  { %v5649_v7 = vpop.xlane.xlu1 %5648 }
0x2311   :  { %8165 = vpow2.f32 %v5827_v38  ;;  %v5657_v47 = vmul.f32 1.442695, %v5654_v33  ;;  %v5653_v48 = vsub.f32 %v5568_v41, %v5649_v7 }
0x2313   :  { %8167 = vpow2.f32 %v5657_v47  ;;  %v5655_v49 = vmul.f32 1.442695, %v5653_v48 }
0x2315   :  { %8169 = vpow2.f32 %v5655_v49 }
0x231c   :  { %v8164_v50 = vpop.eup %8163 }
0x231d   :  { %v5834_v58 = vsel %vm790_vm8, %v8164_v50, 0.0 }
0x231e   :  { %v8166_v51 = vpop.eup %8165  ;;  %5835 = vadd.xlane.f32.xlu0 %v5834_v58 }
0x231f   :  { %v5831_v62 = vsel %vm790_vm8, %v8166_v51, 0.0 }
0x2320   :  { %v8168_v59 = vpop.eup %8167  ;;  %5832 = vadd.xlane.f32.xlu1 %v5831_v62 }
0x2321   :  { %v5662_v3 = vsel %vm790_vm8, %v8168_v59, 0.0 }
0x2322   :  { %v8170_v30 = vpop.eup %8169  ;;  %5663 = vadd.xlane.f32.xlu0 %v5662_v3 }
0x2323   :  { %v5659_v24 = vsel %vm790_vm8, %v8170_v30, 0.0 }
0x2324   :  { %5660 = vadd.xlane.f32.xlu1 %v5659_v24 }
0x23a7   :  { %v5836_v19 = vpop.xlane.xlu0 %5835 }
0x23a8   :  { %8171 = vrcp.f32 %v5836_v19 }
0x23a9   :  { %v5833_v57 = vpop.xlane.xlu1 %5832 }
0x23aa   :  { %8173 = vrcp.f32 %v5833_v57 }
0x23ab   :  { %v5664_v42 = vpop.xlane.xlu0 %5663 }
0x23ac   :  { %8175 = vrcp.f32 %v5664_v42 }
0x23ad   :  { %v5661_v34 = vpop.xlane.xlu1 %5660 }
0x23ae   :  { %8177 = vrcp.f32 %v5661_v34 }
0x23b5   :  { %v8172_v0 = vpop.eup %8171 }
0x23b6   :  { %v5840_v14 = vmul.f32 %v8172_v0, %v8164_v50 }
0x23b7   :  { %v8174_v63 = vpop.eup %8173 }
0x23b8   :  { %7944 = vmatmul.mubr.msk.f32.vlgmr.msra.gmra.mxu1 %vm790_vm8, %v5840_v14  ;;  %v5839_v60 = vmul.f32 %v8174_v63, %v8166_v51  ;;  %v6456_v63 = vmul.f32 %v8836_v15, %v8655_v2  ;;  %v6626_v2 = vmul.f32 %v8836_v15, %v9416_v4 }
0x23b9   :  { %v8176_v18 = vpop.eup %8175  ;;  %7952 = vmatpush3.msra.mxu1 %v5670_v36  ;;  %7953 = vmatprep.mubr.msk.f32.mxu1 %vm8371_vm3, %v8369_v6 }
0x23ba   :  { %7939 = vmatmul.mubr.msk.f32.vlgmr.msra.gmra.mxu0 %vm790_vm8, %v5839_v60  ;;  %7961 = vmatprep.subr.mxu1 %v8369_v6  ;;  %v5668_v29 = vmul.f32 %v8176_v18, %v8168_v59  ;;  %v6455_v60 = vmul.f32 %v8836_v15, %v9368_v52  ;;  %v6625_v52 = vmul.f32 %v8836_v15, %v9425_v53 }
0x23bb   :  { %v8178_v37 = vpop.eup %8177  ;;  %7947 = vmatpush3.msra.mxu0 %v5669_v35  ;;  %7948 = vmatprep.mubr.msk.f32.mxu0 %vm8371_vm3, %v8369_v6 }
0x23bc   :  { %7954 = vmatmul.mubr.msk.f32.vlgmr.msra.gmra.mxu1 %vm790_vm8, %v5668_v29  ;;  %7956 = vmatprep.subr.mxu0 %v8369_v6  ;;  %v5667_v20 = vmul.f32 %v8178_v37, %v8170_v30 }
0x23bd   :  { %7962 = vmatpush3.xpose.msk.msra.mxu1 %vm281_vm0, %v6136_v31  ;;  %7963 = vmatprep.mubr.msk.f32.mxu1 %vm8371_vm3, %v8369_v6 }
0x23be   :  { %7949 = vmatmul.mubr.msk.f32.vlgmr.msra.gmra.mxu0 %vm790_vm8, %v5667_v20  ;;  %7971 = vmatprep.subr.mxu1 %v8369_v6 }
0x23bf   :  { %7957 = vmatpush3.xpose.msk.msra.mxu0 %vm281_vm0, %v6135_v12  ;;  %7958 = vmatprep.mubr.msk.f32.mxu0 %vm8371_vm3, %v8369_v6 }
0x23c0   :  { %7964 = vmatmul.mubr.msk.f32.vlgmr.msra.gmra.mxu1 %vm281_vm0, %v9411_v9  ;;  %7966 = vmatprep.subr.mxu0 %v8369_v6 }
0x23c1   :  { %7972 = vmatpush3.msra.mxu1 %v6306_v21  ;;  %7973 = vmatprep.mubr.msk.f32.mxu1 %vm8371_vm3, %v8369_v6 }
0x23c2   :  { %7959 = vmatmul.mubr.msk.f32.vlgmr.msra.gmra.mxu0 %vm281_vm0, %v9418_v61  ;;  %7981 = vmatprep.subr.mxu1 %v8369_v6 }
0x23c3   :  { %7967 = vmatpush3.msra.mxu0 %v6305_v26  ;;  %7968 = vmatprep.mubr.msk.f32.mxu0 %vm8371_vm3, %v8369_v6 }
0x23c4   :  { %7976 = vmatprep.subr.mxu0 %v8369_v6 }
0x2478   :  { %v5985_v44 = vpop.f32.mrf.mxu1 }
0x247a   :  { %v5912_v45 = vpop.f32.mrf.mxu0  ;;  %v7945_v41 = vpop.f32.mrf.mxu1 }
0x247c   :  { %v7940_v39 = vpop.f32.mrf.mxu0  ;;  %v6131_v43 = vpop.f32.mrf.mxu1 }
0x247d   :  { %v6132_v1 = vadd.f32 %v6131_v43, %v5985_v44 }
0x247e   :  { %v6058_v55 = vpop.f32.mrf.mxu0  ;;  %v7955_v32 = vpop.f32.mrf.mxu1 }
0x247f   :  { %v6059_v16 = vadd.f32 %v6058_v55, %v5912_v45  ;;  %v5492_v32 = vld [vmem:[#allocation8 + $0x38] sm:$0xff] }
0x2480   :  { %v7950_v25 = vpop.f32.mrf.mxu0  ;;  %v6279_v46 = vpop.f32.mrf.mxu1 }
0x2481   :  { %v6280_v11 = vadd.f32 %v9454_v27, %v6279_v46 }
0x2482   :  { %v6206_v40 = vpop.f32.mrf.mxu0  ;;  %v7965_v38 = vpop.f32.mrf.mxu1 }
0x2483   :  { %v6207_v33 = vadd.f32 %v9461_v54, %v6206_v40  ;;  %v6286_v7 = vsel %vm790_vm8, %v6280_v11, -inf }
0x2484   :  { %6287 = vmax.xlane.f32.xlu0 %v6286_v7  ;;  %v7960_v47 = vpop.f32.mrf.mxu0  ;;  %v5490_v7 = vld [vmem:[#allocation8 + $0x28] sm:$0xff] }
0x2485   :  { %v6283_v48 = vsel %vm790_vm8, %v6207_v33, -inf  ;;  %v5489_v47 = vld [vmem:[#allocation8 + $0x20] sm:$0xff] }
0x2486   :  { %6284 = vmax.xlane.f32.xlu1 %v6283_v48 }
0x250d   :  { %v6288_v49 = vpop.xlane.xlu0 %6287 }
0x250e   :  { %v6290_v50 = vsub.f32 %v6280_v11, %v6288_v49 }
0x250f   :  { %v6285_v58 = vpop.xlane.xlu1 %6284 }
0x2510   :  { %v6293_v51 = vmul.f32 1.442695, %v6290_v50  ;;  %v6289_v62 = vsub.f32 %v6207_v33, %v6285_v58  ;;  %v5491_v33 = vld [vmem:[#allocation8 + $0x30] sm:$0xff] }
0x2512   :  { %8179 = vpow2.f32 %v6293_v51  ;;  %v6291_v59 = vmul.f32 1.442695, %v6289_v62 }
0x2514   :  { %8181 = vpow2.f32 %v6291_v59  ;;  %v8209_v59 = vld [vmem:[#allocation11 + $0x10] sm:$0xff] }
0x251f   :  { %v8180_v3 = vpop.eup %8179 }
0x2520   :  { %v6298_v30 = vsel %vm790_vm8, %v8180_v3, 0.0 }
0x2521   :  { %v8182_v24 = vpop.eup %8181  ;;  %6299 = vadd.xlane.f32.xlu0 %v6298_v30 }
0x2522   :  { %v6295_v19 = vsel %vm790_vm8, %v8182_v24, 0.0 }
0x2523   :  { %6296 = vadd.xlane.f32.xlu1 %v6295_v19 }
0x25aa   :  { %v6300_v57 = vpop.xlane.xlu0 %6299 }
0x25ab   :  { %8183 = vrcp.f32 %v6300_v57 }
0x25ac   :  { %v6297_v42 = vpop.xlane.xlu1 %6296 }
0x25ad   :  { %8185 = vrcp.f32 %v6297_v42 }
0x25b8   :  { %v8184_v34 = vpop.eup %8183 }
0x25b9   :  { %v6304_v0 = vmul.f32 %v8184_v34, %v8180_v3  ;;  %v6778_v3 = vrot.slane %v8209_v59, %v9084_v8 }
0x25ba   :  { %v8186_v14 = vpop.eup %8185 }
0x25bb   :  { %7974 = vmatmul.mubr.msk.f32.vlgmr.msra.gmra.mxu1 %vm790_vm8, %v6304_v0  ;;  %v6303_v36 = vmul.f32 %v8186_v14, %v8182_v24 }
0x25bc   :  { %7982 = vmatpush3.xpose.msk.msra.mxu1 %vm281_vm0, %v6456_v63  ;;  %7983 = vmatprep.mubr.msk.f32.mxu1 %vm8371_vm3, %v8369_v6 }
0x25bd   :  { %7969 = vmatmul.mubr.msk.f32.vlgmr.msra.gmra.mxu0 %vm790_vm8, %v6303_v36  ;;  %7991 = vmatprep.subr.mxu1 %v8369_v6 }
0x25be   :  { %7977 = vmatpush3.xpose.msk.msra.mxu0 %vm281_vm0, %v6455_v60  ;;  %7978 = vmatprep.mubr.msk.f32.mxu0 %vm8371_vm3, %v8369_v6 }
0x25bf   :  { %7984 = vmatmul.mubr.msk.f32.vlgmr.msra.gmra.mxu1 %vm281_vm0, %v9411_v9  ;;  %7986 = vmatprep.subr.mxu0 %v8369_v6 }
0x25c0   :  { %7992 = vmatpush3.msra.mxu1 %v6626_v2  ;;  %7993 = vmatprep.mubr.msk.f32.mxu1 %vm8371_vm3, %v8369_v6 }
0x25c1   :  { %7979 = vmatmul.mubr.msk.f32.vlgmr.msra.gmra.mxu0 %vm281_vm0, %v9418_v61 }
0x25c2   :  { %7987 = vmatpush3.msra.mxu0 %v6625_v52  ;;  %7988 = vmatprep.mubr.msk.f32.mxu0 %vm8371_vm3, %v8369_v6 }
0x25c3   :  { %7996 = vmatprep.subr.mxu0 %v5492_v32 }
0x267b   :  { %v6449_v4 = vpop.f32.mrf.mxu1 }
0x267c   :  { %v6454_v18 = vadd.f32 %v6449_v4, %v6132_v1 }
0x267d   :  { %v6376_v35 = vpop.f32.mrf.mxu0  ;;  %v7975_v9 = vpop.f32.mrf.mxu1 }
0x267e   :  { %v6453_v29 = vadd.f32 %v6376_v35, %v6059_v16 }
0x267f   :  { %v7970_v37 = vpop.f32.mrf.mxu0  ;;  %v6599_v31 = vpop.f32.mrf.mxu1 }
0x2680   :  { %v6600_v20 = vadd.f32 %v9454_v27, %v6599_v31  ;;  %v6902_v37 = vld [vmem:[#allocation10 + $0x28] sm:$0xff]  ;;  %v6901_v31 = vld [vmem:[#allocation10 + $0x20] sm:$0xff] }
0x2681   :  { %v6526_v15 = vpop.f32.mrf.mxu0  ;;  %v7985_v53 = vpop.f32.mrf.mxu1 }
0x2682   :  { %v6527_v12 = vadd.f32 %v9461_v54, %v6526_v15  ;;  %v6606_v21 = vsel %vm790_vm8, %v6600_v20, -inf  ;;  %v7304_v15 = vld [vmem:[%s9626_s12 + $0x70] sm:$0xff]  ;;  %v7303_v53 = vld [vmem:[%s9626_s12 + $0x68] sm:$0xff] }
0x2683   :  { %6607 = vmax.xlane.f32.xlu0 %v6606_v21  ;;  %v7980_v61 = vpop.f32.mrf.mxu0 }
0x2684   :  { %v6603_v26 = vsel %vm790_vm8, %v6527_v12, -inf }
0x2685   :  { %6604 = vmax.xlane.f32.xlu1 %v6603_v26 }
0x270c   :  { %v6608_v6 = vpop.xlane.xlu0 %6607 }
0x270d   :  { %v6610_v44 = vsub.f32 %v6600_v20, %v6608_v6  ;;  %v7305_v20 = vld [vmem:[%s9626_s12 + $0x78] sm:$0xff] }
0x270e   :  { %v6605_v45 = vpop.xlane.xlu1 %6604 }
0x270f   :  { %v6613_v41 = vmul.f32 1.442695, %v6610_v44  ;;  %v6609_v39 = vsub.f32 %v6527_v12, %v6605_v45  ;;  %v7302_v12 = vld [vmem:[%s9626_s12 + $0x60] sm:$0xff] }
0x2711   :  { %8187 = vpow2.f32 %v6613_v41  ;;  %v6611_v43 = vmul.f32 1.442695, %v6609_v39  ;;  %v6891_v39 = vrot.slane %v9387_v5, %v8930_v22  ;;  %v7300_v22 = vld [vmem:[%s9626_s12 + $0x50] sm:$0xff] }
0x2713   :  { %8189 = vpow2.f32 %v6611_v43 }
0x271e   :  { %v8188_v27 = vpop.eup %8187 }
0x271f   :  { %v6618_v1 = vsel %vm790_vm8, %v8188_v27, 0.0 }
0x2720   :  { %v8190_v55 = vpop.eup %8189  ;;  %6619 = vadd.xlane.f32.xlu0 %v6618_v1 }
0x2721   :  { %v6615_v54 = vsel %vm790_vm8, %v8190_v55, 0.0 }
0x2722   :  { %6616 = vadd.xlane.f32.xlu1 %v6615_v54  ;;  %v6897_v54 = vrot.slane %v9387_v5, %v8636_v56  ;;  %v7299_v56 = vld [vmem:[%s9626_s12 + $0x48] sm:$0xff] }
0x27a9   :  { %v6620_v16 = vpop.xlane.xlu0 %6619 }
0x27aa   :  { %8191 = vrcp.f32 %v6620_v16 }
0x27ab   :  { %v6617_v25 = vpop.xlane.xlu1 %6616 }
0x27ac   :  { %8193 = vrcp.f32 %v6617_v25 }
0x27b7   :  { %v8192_v46 = vpop.eup %8191 }
0x27b8   :  { %v6624_v11 = vmul.f32 %v8192_v46, %v8188_v27  ;;  %v7301_v46 = vld [vmem:[%s9626_s12 + $0x58] sm:$0xff] }
0x27b9   :  { %v8194_v40 = vpop.eup %8193 }
0x27ba   :  { %7994 = vmatmul.mubr.msk.f32.vlgmr.msra.gmra.mxu1 %vm790_vm8, %v6624_v11  ;;  %v6623_v38 = vmul.f32 %v8194_v40, %v8190_v55  ;;  %v7298_v11 = vld [vmem:[%s9626_s12 + $0x40] sm:$0xff]  ;;  %v6908_v40 = vrot.slane %v9387_v5, %v8692_v17  ;;  %s8372_s12 = smov [#allocation13]  }
0x27bb   :  { %s7133_s24 = sshll.u32 %s8372_s12, 4  ;;  %s7134_s24 = int_to_ptr.vmem [resolvable:$true] %s7133_s24 }
0x27bc   :  { %7989 = vmatmul.mubr.msk.f32.vlgmr.msra.gmra.mxu0 %vm790_vm8, %v6623_v38  ;;  %s8330_s8 = scalar_lea.vmem %s7134_s24, 256  ;;  %p8335_p3 = scmp.lt.s32.totalorder %s7134_s24, %s7134_s24 }
0x27bd   :  { %7997 = vmatpush3.msra.mxu0 %v5492_v32  ;;  %p8331_p2 = scmp.ne.s32.totalorder %s7134_s24, %s8330_s8  ;;  %p8336_p4 = scmp.lt.s32.totalorder %s8330_s8, %s8330_s8 }
0x27be   :  { %7998 = vmatprep.subr.mxu0 %v5491_v33 }
0x27bf   :  { %7999 = vmatpush3.msra.mxu0 %v5491_v33  ;;  %p8337_p5 = por %p8336_p4, %p8335_p3 }
0x27c0   :  { %8000 = vmatprep.subr.mxu0 %v5490_v7 }
0x27c1   :  { %8001 = vmatpush3.msra.mxu0 %v5490_v7  ;;  %p8338_p6 = pnand %p8337_p5, %p8331_p2 }
0x27c2   :  { %8002 = vmatprep.subr.mxu0 %v5489_v47 }
0x27c3   :  { %8003 = vmatpush3.msra.mxu0 %v5489_v47 }
0x27c4   :  { %8018 = vmatprep.subr.mxu0 %v7305_v20 }
0x287a   :  { %v6769_v48 = vpop.f32.mrf.mxu1 }
0x287b   :  { %v6774_v51 = vadd.f32 %v6769_v48, %v6454_v18 }
0x287c   :  { %v6696_v49 = vpop.f32.mrf.mxu0  ;;  %v7995_v50 = vpop.f32.mrf.mxu1 }
0x287d   :  { %v6773_v58 = vadd.f32 %v6696_v49, %v6453_v29  ;;  %v6904_v29 = vld [vmem:[#allocation10 + $0x38] sm:$0xff]  ;;  %v7004_v50 = vrot.slane %v9387_v5, %v8685_v13 }
0x287e   :  { %v7990_v62 = vpop.f32.mrf.mxu0  ;;  %8007 = vmatprep.subr.mxu1 %v6904_v29 }
0x287f   :  { %8004 = vmatprep.mubr.msk.f32.mxu0 %vm281_vm0, %v6773_v58  ;;  %8008 = vmatpush3.msra.mxu1 %v6904_v29 }
0x2880   :  { %8005 = vmatmul.mubr.msk.f32.vlgmr.msra.gmra.mxu0 %vm281_vm0, %v6774_v51 }
0x2881   :  { %8019 = vmatpush3.msra.mxu0 %v7305_v20 }
0x2882   :  { %8020 = vmatprep.subr.mxu0 %v7304_v15 }
0x2883   :  { %8021 = vmatpush3.msra.mxu0 %v7304_v15 }
0x2884   :  { %8022 = vmatprep.subr.mxu0 %v7303_v53 }
0x2885   :  { %8023 = vmatpush3.msra.mxu0 %v7303_v53 }
0x2886   :  { %8024 = vmatprep.subr.mxu0 %v7302_v12 }
0x2887   :  { %8025 = vmatpush3.msra.mxu0 %v7302_v12 }
0x2888   :  { %8026 = vmatprep.subr.mxu0 %v7301_v46 }
0x2889   :  { %8027 = vmatpush3.msra.mxu0 %v7301_v46 }
0x288a   :  { %8028 = vmatprep.subr.mxu0 %v7300_v22 }
0x288b   :  { %8029 = vmatpush3.msra.mxu0 %v7300_v22 }
0x288c   :  { %8030 = vmatprep.subr.mxu0 %v7299_v56 }
0x288d   :  { %8031 = vmatpush3.msra.mxu0 %v7299_v56 }
0x288e   :  { %8032 = vmatprep.subr.mxu0 %v7298_v11 }
0x288f   :  { %8033 = vmatpush3.msra.mxu0 %v7298_v11 }
0x2940   :  { %v8006_v30 = vpop.f32.mrf.mxu0 }
0x2941   :  { %v6857_v24 = vadd.f32 %v8006_v30, %v6778_v3 }
0x2942   :  { %v6851_v19 = vpop.f32.mrf.mxu0 }
0x2943   :  { %v6852_v57 = vadd.f32 %v6851_v19, %v6778_v3  ;;  %v6861_v42 = vadd.f32 %v6857_v24, %v9395_v10 }
0x2945   :  { %v6865_v34 = vsel %vm281_vm0, %v6861_v42, 0.0  ;;  %v6860_v0 = vadd.f32 %v6852_v57, %v9393_v28  ;;  %v6903_v28 = vld [vmem:[#allocation10 + $0x30] sm:$0xff] }
0x2946   :  { %6866 = vadd.xlane.f32.xlu0 %v6865_v34  ;;  %8009 = vmatprep.subr.mxu1 %v6903_v28 }
0x2947   :  { %v6862_v14 = vsel %vm281_vm0, %v6860_v0, 0.0  ;;  %8010 = vmatpush3.msra.mxu1 %v6903_v28 }
0x2948   :  { %6863 = vadd.xlane.f32.xlu1 %v6862_v14  ;;  %8011 = vmatprep.subr.mxu1 %v6902_v37 }
0x2949   :  { %8012 = vmatpush3.msra.mxu1 %v6902_v37  ;;  %v7123_v37 = vrot.slane %v9387_v5, %v9084_v8 }
0x294a   :  { %8013 = vmatprep.subr.mxu1 %v6901_v31 }
0x294b   :  { %8014 = vmatpush3.msra.mxu1 %v6901_v31 }
0x29cf   :  { %v6867_v63 = vpop.xlane.xlu0 %6866 }
0x29d0   :  { %v6869_v36 = vmul.f32 0.03125, %v6867_v63 }
0x29d1   :  { %v6864_v60 = vpop.xlane.xlu1 %6863 }
0x29d2   :  { %v6871_v2 = vsub.f32 %v6861_v42, %v6869_v36  ;;  %v6868_v52 = vmul.f32 0.03125, %v6864_v60 }
0x29d4   :  { %v6870_v4 = vsub.f32 %v6860_v0, %v6868_v52  ;;  %v6873_v18 = vmul.f32 %v6871_v2, %v6871_v2 }
0x29d6   :  { %v6877_v35 = vsel %vm281_vm0, %v6873_v18, 0.0  ;;  %v6872_v9 = vmul.f32 %v6870_v4, %v6870_v4 }
0x29d7   :  { %6878 = vadd.xlane.f32.xlu0 %v6877_v35 }
0x29d8   :  { %v6874_v10 = vsel %vm281_vm0, %v6872_v9, 0.0 }
0x29d9   :  { %6875 = vadd.xlane.f32.xlu1 %v6874_v10  ;;  %v7117_v10 = vrot.slane %v9387_v5, %v8933_v23 }
0x2a60   :  { %v6879_v21 = vpop.xlane.xlu0 %6878 }
0x2a61   :  { %v6881_v61 = vmul.f32 0.03125, %v6879_v21 }
0x2a62   :  { %v6876_v26 = vpop.xlane.xlu1 %6875 }
0x2a63   :  { %v6883_v6 = vadd.f32 1e-05, %v6881_v61  ;;  %v6880_v44 = vmul.f32 0.03125, %v6876_v26 }
0x2a65   :  { %8195 = vrsqrt.f32 %v6883_v6  ;;  %v6882_v45 = vadd.f32 1e-05, %v6880_v44 }
0x2a67   :  { %8197 = vrsqrt.f32 %v6882_v45 }
0x2a72   :  { %v8196_v41 = vpop.eup %8195 }
0x2a73   :  { %v6887_v43 = vmul.f32 %v8196_v41, %v6871_v2 }
0x2a74   :  { %v8198_v27 = vpop.eup %8197 }
0x2a75   :  { %v6886_v1 = vmul.f32 %v8198_v27, %v6870_v4  ;;  %v6893_v55 = vmul.f32 %v6891_v39, %v6887_v43 }
0x2a77   :  { %v6892_v32 = vmul.f32 %v6891_v39, %v6886_v1  ;;  %v6899_v25 = vadd.f32 %v6897_v54, %v6893_v55 }
0x2a79   :  { %v6898_v16 = vadd.f32 %v6897_v54, %v6892_v32 }
0x2a7b   :  { %8015 = vmatprep.mubr.msk.f32.mxu1 %vm281_vm0, %v6898_v16 }
0x2a7c   :  { %8016 = vmatmul.mubr.msk.f32.vlgmr.msra.gmra.mxu1 %vm281_vm0, %v6899_v25 }
0x2b3c   :  { %v8017_v38 = vpop.f32.mrf.mxu1 }
0x2b3d   :  { %v6987_v33 = vadd.f32 %v8017_v38, %v6908_v40 }
0x2b3e   :  { %v6981_v7 = vpop.f32.mrf.mxu1 }
0x2b3f   :  { %v6982_v47 = vadd.f32 %v6981_v7, %v6908_v40  ;;  %v6991_v49 = vmax.f32 %v6987_v33, 0.0 }
0x2b41   :  { %v6990_v48 = vmax.f32 %v6982_v47, 0.0 }
0x2b43   :  { %8034 = vmatprep.mubr.msk.f32.mxu0 %vm3660_vm15, %v6990_v48 }
0x2b44   :  { %8035 = vmatmul.mubr.msk.f32.vlgmr.msra.gmra.mxu0 %vm3660_vm15, %v6991_v49 }
0x2c04   :  { %v8036_v58 = vpop.f32.mrf.mxu0 }
0x2c05   :  { %v7083_v51 = vadd.f32 %v8036_v58, %v7004_v50 }
0x2c06   :  { %v7077_v62 = vpop.f32.mrf.mxu0 }
0x2c07   :  { %v7078_v59 = vadd.f32 %v7077_v62, %v7004_v50  ;;  %v7087_v3 = vadd.f32 %v7083_v51, %v6899_v25 }
0x2c09   :  { %v7091_v17 = vsel %vm281_vm0, %v7087_v3, 0.0  ;;  %v7086_v30 = vadd.f32 %v7078_v59, %v6898_v16 }
0x2c0a   :  { %7092 = vadd.xlane.f32.xlu0 %v7091_v17 }
0x2c0b   :  { %v7088_v24 = vsel %vm281_vm0, %v7086_v30, 0.0 }
0x2c0c   :  { %7089 = vadd.xlane.f32.xlu1 %v7088_v24 }
0x2c93   :  { %v7093_v19 = vpop.xlane.xlu0 %7092 }
0x2c94   :  { %v7095_v57 = vmul.f32 0.03125, %v7093_v19 }
0x2c95   :  { %v7090_v42 = vpop.xlane.xlu1 %7089 }
0x2c96   :  { %v7097_v34 = vsub.f32 %v7087_v3, %v7095_v57  ;;  %v7094_v0 = vmul.f32 0.03125, %v7090_v42 }
0x2c98   :  { %v7096_v14 = vsub.f32 %v7086_v30, %v7094_v0  ;;  %v7099_v63 = vmul.f32 %v7097_v34, %v7097_v34 }
0x2c9a   :  { %v7103_v13 = vsel %vm281_vm0, %v7099_v63, 0.0  ;;  %v7098_v36 = vmul.f32 %v7096_v14, %v7096_v14 }
0x2c9b   :  { %7104 = vadd.xlane.f32.xlu0 %v7103_v13 }
0x2c9c   :  { %v7100_v60 = vsel %vm281_vm0, %v7098_v36, 0.0 }
0x2c9d   :  { %7101 = vadd.xlane.f32.xlu1 %v7100_v60 }
0x2d24   :  { %v7105_v2 = vpop.xlane.xlu0 %7104 }
0x2d25   :  { %v7107_v52 = vmul.f32 0.03125, %v7105_v2 }
0x2d26   :  { %v7102_v4 = vpop.xlane.xlu1 %7101 }
0x2d27   :  { %v7109_v18 = vadd.f32 1e-05, %v7107_v52  ;;  %v7106_v35 = vmul.f32 0.03125, %v7102_v4 }
0x2d29   :  { %8199 = vrsqrt.f32 %v7109_v18  ;;  %v7108_v9 = vadd.f32 1e-05, %v7106_v35 }
0x2d2b   :  { %8201 = vrsqrt.f32 %v7108_v9 }
0x2d36   :  { %v8200_v29 = vpop.eup %8199 }
0x2d37   :  { %v7113_v28 = vmul.f32 %v8200_v29, %v7097_v34 }
0x2d38   :  { %v8202_v31 = vpop.eup %8201 }
0x2d39   :  { %v7112_v20 = vmul.f32 %v8202_v31, %v7096_v14  ;;  %v7119_v15 = vmul.f32 %v7117_v10, %v7113_v28 }
0x2d3b   :  { %v7118_v53 = vmul.f32 %v7117_v10, %v7112_v20  ;;  %v7125_v12 = vadd.f32 %v7123_v37, %v7119_v15 }
0x2d3d   :  { %v7124_v21 = vadd.f32 %v7123_v37, %v7118_v53  ;;  %7127 = vst.msk [vmem:[#allocation13 + $0x8] sm:$0xff] %vm281_vm0, %v7125_v12 }
0x2d3f   :  { %7126 = vst.msk [vmem:[#allocation13] sm:$0xff] %vm281_vm0, %v7124_v21 }
0x2d40   :  { %8341 = shalt.err (!%p8338_p6)
}
0x2d41   :  { %7139 = dma.vmem_to_hbm [thread:$0]  %s7134_s24, 256, %s9628_s14, [#allocation4], %s8362_s18, %s8362_s18, %s8363_s19  }
0x2d42   :  { %8358 = dma.done.wait [#allocation4], 256  }
0x2d43   :  { %8359 = vsyncadd [#allocation4], 4294967040 }
0x2d44   :  { %7143 = vsyncpa [#allocation3], 1 }
0x2d45   :  { %7144 = vsyncpa [#allocation6], 1 }
0x2d46   :  { %7145 = vsyncpa [#allocation9], 1 }
0x2d47   :  { %7146 = vsyncpa [#allocation12], 1 }
0x2d48   :  { %7147 = vsyncpa [#allocation4], 1 }

</bundles_post_ra>
